<compile_context>
chip_gen: v6e
topology: v6e:2x2x1
jax: 0.10.0
libtpu: 0.0.40
codegen_flags: <defaults>
</compile_context>

<pallas_src>
import numpy as np
import jax
import jax.numpy as jnp
from jax import lax
from jax.experimental import pallas as pl
from jax.experimental.pallas import tpu as pltpu


def bottleneck_kernel(x_ref, w1_ref, w2_ref, w3_ref, b1_ref, b2_ref, b3_ref,
                      o_ref, lhs_ref, acc_ref):
    nb, H, W, Cin = x_ref.shape
    P = w1_ref.shape[1]
    M = nb * H * W

    # ---- conv1 (1x1) + bn1 + relu : one (M, Cin) @ (Cin, P) bf16 matmul ----
    x_bf = x_ref[...].reshape(M, Cin).astype(jnp.bfloat16)
    t1 = jnp.dot(x_bf, w1_ref[...], preferred_element_type=jnp.float32)
    t1 = jnp.maximum(t1 + b1_ref[...], 0.0)                     # (M, P) f32
    t1b = t1.astype(jnp.bfloat16).reshape(nb, H, W, P)

    # ---- conv2 (3x3, pad=1) + bn2 + relu -----------------------------------
    # Build the im2col LHS in place: ky taps at lane offsets ky*P, H shift as
    # leading-axis slices (zero-padded edge rows rewritten every step).
    zrow = jnp.zeros((nb, 1, W, P), jnp.bfloat16)
    lhs_ref[:, :, :, P:2 * P] = t1b                             # ky = 1 (y)
    lhs_ref[:, 1:H, :, 0:P] = t1b[:, 0:H - 1]                   # ky = 0 (y-1)
    lhs_ref[:, 0:1, :, 0:P] = zrow
    lhs_ref[:, 0:H - 1, :, 2 * P:3 * P] = t1b[:, 1:H]           # ky = 2 (y+1)
    lhs_ref[:, H - 1:H, :, 2 * P:3 * P] = zrow

    # One fused (M, 3P) @ (3P, 3P) matmul produces all three kx taps at lane
    # offsets kx*P of the result (3x fewer MXU passes, 3x wider result tile).
    r = jnp.dot(lhs_ref[...].reshape(M, 3 * P), w2_ref[...],
                preferred_element_type=jnp.float32)
    r4 = r.reshape(nb, H, W, 3 * P)

    # kx taps land at W offsets in the (nb, H, W+2, P) accumulator; the valid
    # output is columns 1..W.  Columns 0 and W+1 are never read.
    acc_ref[:, :, 1:W + 1] = r4[..., P:2 * P]                   # kx = 1 (x)
    acc_ref[:, :, 0:W] += r4[..., 2 * P:3 * P]                  # kx = 2 (x+1)
    acc_ref[:, :, 2:W + 2] += r4[..., 0:P]                      # kx = 0 (x-1)

    t2 = acc_ref[:, :, 1:W + 1, :].reshape(M, P)
    t2 = jnp.maximum(t2 + b2_ref[...], 0.0)                     # (M, P) f32

    # ---- conv3 (1x1 -> 4P) + bn3 + residual + relu --------------------------
    t3 = jnp.dot(t2.astype(jnp.bfloat16), w3_ref[...],
                 preferred_element_type=jnp.float32)            # (M, 4P) f32
    res = x_ref[...].astype(jnp.float32).reshape(M, Cin)        # Cin == 4P
    out = jnp.maximum(t3 + b3_ref[...] + res, 0.0)
    o_ref[...] = out.reshape(nb, H, W, 4 * P).astype(o_ref.dtype)


def _default_images_per_step(N):
    """Batch folding: whole batch per step on single-TC chips (v5e/v6e); keep
    >= 2 grid steps on v7x so both TensorCores get a 'parallel' grid slice."""
    kind = ""
    try:
        kind = jax.devices()[0].device_kind.lower()
    except Exception:
        pass
    nb = max(1, N // 2) if ("v7" in kind or "tpu7" in kind) else N
    while N % nb:
        nb -= 1
    return nb


def bottleneck_pallas(x_nhwc, prep, images_per_step=None):
    """x_nhwc: (N, H, W, Cin) activations (bf16 or f32), channels-last."""
    N, H, W, Cin = x_nhwc.shape
    P = prep['w1'].shape[1]
    Cout = 4 * P
    assert Cin == Cout, "downsample=None requires inplanes == planes*4"

    nb = _default_images_per_step(N) if images_per_step is None else images_per_step
    assert N % nb == 0
    steps = N // nb

    def full_spec(shape):
        return pl.BlockSpec(shape, lambda n, _r=len(shape): (0,) * _r)

    flops = 2 * N * H * W * (Cin * P + 9 * P * P + P * Cout)
    bytes_accessed = int(
        x_nhwc.size * x_nhwc.dtype.itemsize + N * H * W * Cout * 2
        + sum(int(np.prod(prep[k].shape)) * prep[k].dtype.itemsize
              for k in ('w1', 'w2', 'w3', 'b1', 'b2', 'b3')))

    return pl.pallas_call(
        bottleneck_kernel,
        out_shape=jax.ShapeDtypeStruct((N, H, W, Cout), jnp.bfloat16),
        grid_spec=pltpu.PrefetchScalarGridSpec(
            num_scalar_prefetch=0,
            grid=(steps,),
            in_specs=[
                pl.BlockSpec((nb, H, W, Cin), lambda n: (n, 0, 0, 0)),
                full_spec(prep['w1'].shape), full_spec(prep['w2'].shape),
                full_spec(prep['w3'].shape),
                full_spec(prep['b1'].shape), full_spec(prep['b2'].shape),
                full_spec(prep['b3'].shape),
            ],
            out_specs=pl.BlockSpec((nb, H, W, Cout), lambda n: (n, 0, 0, 0)),
            scratch_shapes=[
                pltpu.VMEM((nb, H, W, 3 * P), jnp.bfloat16),   # im2col LHS
                pltpu.VMEM((nb, H, W + 2, P), jnp.float32),    # kx accumulator
            ],
        ),
        compiler_params=pltpu.CompilerParams(
            dimension_semantics=("parallel",)),
        cost_estimate=pl.CostEstimate(
            flops=flops, transcendentals=0, bytes_accessed=bytes_accessed),
    )(x_nhwc, prep['w1'], prep['w2'], prep['w3'],
      prep['b1'], prep['b2'], prep['b3'])


def bottleneck_ref(x_nhwc, prep):
    """Pure-JAX NHWC reference mirroring the kernel numerics (bf16 matmul
    operands, f32 accumulation / epilogue)."""
    x = x_nhwc.astype(jnp.float32)
    Cin, P = prep['w1'].shape

    def rnd(a):                       # mirror the kernel's bf16 operand cast
        return a.astype(jnp.bfloat16).astype(jnp.float32)

    def conv(inp, w_hwio, pad):
        return lax.conv_general_dilated(
            inp, w_hwio, (1, 1), pad,
            dimension_numbers=('NHWC', 'HWIO', 'NHWC'),
            precision=lax.Precision.HIGHEST)

    w1 = prep['w1'].astype(jnp.float32).reshape(1, 1, Cin, P)
    # un-fuse (3P, 3P) [ky*P+ci, kx*P+co] back to HWIO (ky, kx, ci, co)
    w2 = prep['w2'].astype(jnp.float32).reshape(3, P, 3, P).transpose(0, 2, 1, 3)
    w3 = prep['w3'].astype(jnp.float32).reshape(1, 1, P, 4 * P)

    t = jnp.maximum(conv(rnd(x), w1, 'VALID') + prep['b1'], 0.0)
    t = jnp.maximum(conv(rnd(t), w2, ((1, 1), (1, 1))) + prep['b2'], 0.0)
    t = conv(rnd(t), w3, 'VALID') + prep['b3']
    return jnp.maximum(t + x, 0.0)


def init_params(key, inplanes, planes):
    eps = 1e-5
    ks = jax.random.split(key, 15)

    def bn_fold(kg, kb, km, kv, c):
        gamma = jax.random.uniform(kg, (c,), jnp.float32, 0.5, 1.5)
        beta = 0.1 * jax.random.normal(kb, (c,), jnp.float32)
        mean = 0.1 * jax.random.normal(km, (c,), jnp.float32)
        var = jax.random.uniform(kv, (c,), jnp.float32, 0.5, 1.5)
        scale = gamma / jnp.sqrt(var + eps)
        shift = beta - mean * scale
        return scale.reshape(1, c), shift.reshape(1, c)

    P = planes
    w1 = 0.1 * jax.random.normal(ks[0], (inplanes, P), jnp.float32)   # (Cin, P)
    w2 = 0.1 * jax.random.normal(ks[1], (9, P, P), jnp.float32)       # (ky*3+kx, in, out)
    w3 = 0.1 * jax.random.normal(ks[2], (P, 4 * P), jnp.float32)      # (P, 4P)
    s1, b1 = bn_fold(ks[3], ks[4], ks[5], ks[6], P)
    s2, b2 = bn_fold(ks[7], ks[8], ks[9], ks[10], P)
    s3, b3 = bn_fold(ks[11], ks[12], ks[13], ks[14], 4 * P)
    return dict(w1=w1, w2=w2, w3=w3, s1=s1, b1=b1, s2=s2, b2=b2, s3=s3, b3=b3)


def prepare_params(p):
    """Fold BN scales into conv weights (host-side, once), fuse the 3x3 weight
    into a single (3P, 3P) operand [ky*P+cin, kx*P+cout], cast MXU operands to
    bf16; biases stay f32."""
    P = p['w2'].shape[1]
    w1 = (p['w1'] * p['s1']).astype(jnp.bfloat16)                     # (Cin, P)
    w2 = (p['w2'] * p['s2'].reshape(1, 1, -1)).reshape(3, 3, P, P)    # (ky,kx,ci,co)
    w2 = jnp.transpose(w2, (0, 2, 1, 3)).reshape(3 * P, 3 * P)        # [ky*P+ci, kx*P+co]
    w2 = w2.astype(jnp.bfloat16)
    w3 = (p['w3'] * p['s3']).astype(jnp.bfloat16)                     # (P, 4P)
    return dict(w1=w1, w2=w2, w3=w3, b1=p['b1'], b2=p['b2'], b3=p['b3'])


if __name__ == "__main__":
    key = jax.random.PRNGKey(0)
    kx_, kp = jax.random.split(key)

    planes = 32                       # -> P=32, Cin = Cout = 128 (lane dense)
    inplanes = 4 * planes             # residual add works with downsample=None
    N, H, W = 2, 16, 16

    # NHWC bf16 activations: channels-last is kept across the whole model, so
    # there are no per-block NCHW<->NHWC transposes around the kernel.
    x = jax.random.normal(kx_, (N, H, W, inplanes), jnp.float32).astype(jnp.bfloat16)
    raw = init_params(kp, inplanes, planes)
    prep = prepare_params(raw)

    out = bottleneck_pallas(x, prep)
    out = jax.block_until_ready(out)

    ref = bottleneck_ref(x, prep)
    np.testing.assert_allclose(np.asarray(out.astype(jnp.float32)),
                               np.asarray(ref), rtol=2e-2, atol=2e-2)
    print("KERNEL_OK")
</pallas_src>

<mosaic_0001>
module attributes {stable_mosaic.version = 11 : i64} {
  func.func @bottleneck_kernel(%arg0: i32, %arg1: memref<2x16x16x128xbf16, #tpu.memory_space<vmem>>, %arg2: memref<128x32xbf16, #tpu.memory_space<vmem>>, %arg3: memref<96x96xbf16, #tpu.memory_space<vmem>>, %arg4: memref<32x128xbf16, #tpu.memory_space<vmem>>, %arg5: memref<1x32xf32, #tpu.memory_space<vmem>>, %arg6: memref<1x32xf32, #tpu.memory_space<vmem>>, %arg7: memref<1x128xf32, #tpu.memory_space<vmem>>, %arg8: memref<2x16x16x128xbf16, #tpu.memory_space<vmem>>, %arg9: memref<2x16x16x96xbf16, #tpu.memory_space<vmem>>, %arg10: memref<2x16x18x32xf32, #tpu.memory_space<vmem>>) attributes {dimension_semantics = [#tpu.dimension_semantics<parallel>], iteration_bounds = array<i64: 1>, scalar_prefetch = 0 : i64, scratch_operands = 2 : i64, tpu.core_type = #tpu.core_type<tc>, window_params = [{transform_indices = @transform_0, window_bounds = array<i64: 2, 16, 16, 128>}, {pipeline_mode = #tpu.pipeline_mode<synchronous>, transform_indices = @transform_1, window_bounds = array<i64: 128, 32>}, {pipeline_mode = #tpu.pipeline_mode<synchronous>, transform_indices = @transform_2, window_bounds = array<i64: 96, 96>}, {pipeline_mode = #tpu.pipeline_mode<synchronous>, transform_indices = @transform_3, window_bounds = array<i64: 32, 128>}, {pipeline_mode = #tpu.pipeline_mode<synchronous>, transform_indices = @transform_4, window_bounds = array<i64: 1, 32>}, {pipeline_mode = #tpu.pipeline_mode<synchronous>, transform_indices = @transform_5, window_bounds = array<i64: 1, 32>}, {pipeline_mode = #tpu.pipeline_mode<synchronous>, transform_indices = @transform_6, window_bounds = array<i64: 1, 128>}, {transform_indices = @transform_7, window_bounds = array<i64: 2, 16, 16, 128>}]} {
    %c0 = arith.constant 0 : index
    %c0_0 = arith.constant 0 : index
    %c0_1 = arith.constant 0 : index
    %c0_2 = arith.constant 0 : index
    %0 = vector.load %arg1[%c0, %c0_0, %c0_1, %c0_2] : memref<2x16x16x128xbf16, #tpu.memory_space<vmem>>, vector<2x16x16x128xbf16>
    %1 = vector.shape_cast %0 : vector<2x16x16x128xbf16> to vector<512x128xbf16>
    %c0_3 = arith.constant 0 : index
    %c0_4 = arith.constant 0 : index
    %2 = vector.load %arg2[%c0_3, %c0_4] : memref<128x32xbf16, #tpu.memory_space<vmem>>, vector<128x32xbf16>
    %cst = arith.constant dense<0.000000e+00> : vector<512x32xf32>
    %3 = tpu.matmul %1, %2, %cst {dimension_numbers = #tpu.dot_dimension_numbers<[1], [0], [0], [1], [0, 0, 1, 1], [], []>} : vector<512x128xbf16>, vector<128x32xbf16>, vector<512x32xf32> -> vector<512x32xf32>
    %c0_5 = arith.constant 0 : index
    %c0_6 = arith.constant 0 : index
    %4 = vector.load %arg5[%c0_5, %c0_6] : memref<1x32xf32, #tpu.memory_space<vmem>>, vector<1x32xf32>
    %5 = vector.broadcast %4 : vector<1x32xf32> to vector<512x32xf32>
    %6 = arith.addf %3, %5 : vector<512x32xf32>
    %cst_7 = arith.constant 0.000000e+00 : f32
    %7 = vector.broadcast %cst_7 : f32 to vector<512x32xf32>
    %8 = arith.maximumf %6, %7 : vector<512x32xf32>
    %9 = arith.truncf %8 : vector<512x32xf32> to vector<512x32xbf16>
    %10 = vector.shape_cast %9 : vector<512x32xbf16> to vector<2x16x16x32xbf16>
    %cst_8 = arith.constant 0.000000e+00 : bf16
    %11 = vector.broadcast %cst_8 : bf16 to vector<2x1x16x32xbf16>
    %c0_9 = arith.constant 0 : index
    %c0_10 = arith.constant 0 : index
    %c0_11 = arith.constant 0 : index
    %c32 = arith.constant 32 : index
    %12 = vector.load %arg9[%c0_9, %c0_10, %c0_11, %c32] : memref<2x16x16x96xbf16, #tpu.memory_space<vmem>>, vector<2x16x16x32xbf16>
    tpu.vector_store %arg9[%c0_9, %c0_10, %c0_11, %c32], %10 {strides = array<i32>} : memref<2x16x16x96xbf16, #tpu.memory_space<vmem>>, vector<2x16x16x32xbf16>,
    %13 = vector.extract_strided_slice %10 {offsets = [0, 0, 0, 0], sizes = [2, 15, 16, 32], strides = [1, 1, 1, 1]} : vector<2x16x16x32xbf16> to vector<2x15x16x32xbf16>
    %c0_12 = arith.constant 0 : index
    %c1 = arith.constant 1 : index
    %c0_13 = arith.constant 0 : index
    %c0_14 = arith.constant 0 : index
    %14 = vector.load %arg9[%c0_12, %c1, %c0_13, %c0_14] : memref<2x16x16x96xbf16, #tpu.memory_space<vmem>>, vector<2x15x16x32xbf16>
    tpu.vector_store %arg9[%c0_12, %c1, %c0_13, %c0_14], %13 {strides = array<i32>} : memref<2x16x16x96xbf16, #tpu.memory_space<vmem>>, vector<2x15x16x32xbf16>,
    %c0_15 = arith.constant 0 : index
    %c0_16 = arith.constant 0 : index
    %c0_17 = arith.constant 0 : index
    %c0_18 = arith.constant 0 : index
    %15 = vector.load %arg9[%c0_15, %c0_16, %c0_17, %c0_18] : memref<2x16x16x96xbf16, #tpu.memory_space<vmem>>, vector<2x1x16x32xbf16>
    tpu.vector_store %arg9[%c0_15, %c0_16, %c0_17, %c0_18], %11 {strides = array<i32>} : memref<2x16x16x96xbf16, #tpu.memory_space<vmem>>, vector<2x1x16x32xbf16>,
    %16 = vector.extract_strided_slice %10 {offsets = [0, 1, 0, 0], sizes = [2, 15, 16, 32], strides = [1, 1, 1, 1]} : vector<2x16x16x32xbf16> to vector<2x15x16x32xbf16>
    %c0_19 = arith.constant 0 : index
    %c0_20 = arith.constant 0 : index
    %c0_21 = arith.constant 0 : index
    %c64 = arith.constant 64 : index
    %17 = vector.load %arg9[%c0_19, %c0_20, %c0_21, %c64] : memref<2x16x16x96xbf16, #tpu.memory_space<vmem>>, vector<2x15x16x32xbf16>
    tpu.vector_store %arg9[%c0_19, %c0_20, %c0_21, %c64], %16 {strides = array<i32>} : memref<2x16x16x96xbf16, #tpu.memory_space<vmem>>, vector<2x15x16x32xbf16>,
    %c0_22 = arith.constant 0 : index
    %c15 = arith.constant 15 : index
    %c0_23 = arith.constant 0 : index
    %c64_24 = arith.constant 64 : index
    %18 = vector.load %arg9[%c0_22, %c15, %c0_23, %c64_24] : memref<2x16x16x96xbf16, #tpu.memory_space<vmem>>, vector<2x1x16x32xbf16>
    tpu.vector_store %arg9[%c0_22, %c15, %c0_23, %c64_24], %11 {strides = array<i32>} : memref<2x16x16x96xbf16, #tpu.memory_space<vmem>>, vector<2x1x16x32xbf16>,
    %c0_25 = arith.constant 0 : index
    %c0_26 = arith.constant 0 : index
    %c0_27 = arith.constant 0 : index
    %c0_28 = arith.constant 0 : index
    %19 = vector.load %arg9[%c0_25, %c0_26, %c0_27, %c0_28] : memref<2x16x16x96xbf16, #tpu.memory_space<vmem>>, vector<2x16x16x96xbf16>
    %20 = vector.shape_cast %19 : vector<2x16x16x96xbf16> to vector<512x96xbf16>
    %c0_29 = arith.constant 0 : index
    %c0_30 = arith.constant 0 : index
    %21 = vector.load %arg3[%c0_29, %c0_30] : memref<96x96xbf16, #tpu.memory_space<vmem>>, vector<96x96xbf16>
    %cst_31 = arith.constant dense<0.000000e+00> : vector<512x96xf32>
    %22 = tpu.matmul %20, %21, %cst_31 {dimension_numbers = #tpu.dot_dimension_numbers<[1], [0], [0], [1], [0, 0, 1, 1], [], []>} : vector<512x96xbf16>, vector<96x96xbf16>, vector<512x96xf32> -> vector<512x96xf32>
    %23 = vector.shape_cast %22 : vector<512x96xf32> to vector<2x16x16x96xf32>
    %24 = vector.extract_strided_slice %23 {offsets = [0, 0, 0, 32], sizes = [2, 16, 16, 32], strides = [1, 1, 1, 1]} : vector<2x16x16x96xf32> to vector<2x16x16x32xf32>
    %c0_32 = arith.constant 0 : index
    %c0_33 = arith.constant 0 : index
    %c1_34 = arith.constant 1 : index
    %c0_35 = arith.constant 0 : index
    %25 = vector.load %arg10[%c0_32, %c0_33, %c1_34, %c0_35] : memref<2x16x18x32xf32, #tpu.memory_space<vmem>>, vector<2x16x16x32xf32>
    tpu.vector_store %arg10[%c0_32, %c0_33, %c1_34, %c0_35], %24 {strides = array<i32>} : memref<2x16x18x32xf32, #tpu.memory_space<vmem>>, vector<2x16x16x32xf32>,
    %c0_36 = arith.constant 0 : index
    %c0_37 = arith.constant 0 : index
    %c0_38 = arith.constant 0 : index
    %c0_39 = arith.constant 0 : index
    %26 = vector.load %arg10[%c0_36, %c0_37, %c0_38, %c0_39] : memref<2x16x18x32xf32, #tpu.memory_space<vmem>>, vector<2x16x16x32xf32>
    %27 = vector.extract_strided_slice %23 {offsets = [0, 0, 0, 64], sizes = [2, 16, 16, 32], strides = [1, 1, 1, 1]} : vector<2x16x16x96xf32> to vector<2x16x16x32xf32>
    %28 = arith.addf %26, %27 : vector<2x16x16x32xf32>
    %c0_40 = arith.constant 0 : index
    %c0_41 = arith.constant 0 : index
    %c0_42 = arith.constant 0 : index
    %c0_43 = arith.constant 0 : index
    %29 = vector.load %arg10[%c0_40, %c0_41, %c0_42, %c0_43] : memref<2x16x18x32xf32, #tpu.memory_space<vmem>>, vector<2x16x16x32xf32>
    tpu.vector_store %arg10[%c0_40, %c0_41, %c0_42, %c0_43], %28 {strides = array<i32>} : memref<2x16x18x32xf32, #tpu.memory_space<vmem>>, vector<2x16x16x32xf32>,
    %c0_44 = arith.constant 0 : index
    %c0_45 = arith.constant 0 : index
    %c2 = arith.constant 2 : index
    %c0_46 = arith.constant 0 : index
    %30 = vector.load %arg10[%c0_44, %c0_45, %c2, %c0_46] : memref<2x16x18x32xf32, #tpu.memory_space<vmem>>, vector<2x16x16x32xf32>
    %31 = vector.extract_strided_slice %23 {offsets = [0, 0, 0, 0], sizes = [2, 16, 16, 32], strides = [1, 1, 1, 1]} : vector<2x16x16x96xf32> to vector<2x16x16x32xf32>
    %32 = arith.addf %30, %31 : vector<2x16x16x32xf32>
    %c0_47 = arith.constant 0 : index
    %c0_48 = arith.constant 0 : index
    %c2_49 = arith.constant 2 : index
    %c0_50 = arith.constant 0 : index
    %33 = vector.load %arg10[%c0_47, %c0_48, %c2_49, %c0_50] : memref<2x16x18x32xf32, #tpu.memory_space<vmem>>, vector<2x16x16x32xf32>
    tpu.vector_store %arg10[%c0_47, %c0_48, %c2_49, %c0_50], %32 {strides = array<i32>} : memref<2x16x18x32xf32, #tpu.memory_space<vmem>>, vector<2x16x16x32xf32>,
    %c0_51 = arith.constant 0 : index
    %c0_52 = arith.constant 0 : index
    %c1_53 = arith.constant 1 : index
    %c0_54 = arith.constant 0 : index
    %34 = vector.load %arg10[%c0_51, %c0_52, %c1_53, %c0_54] : memref<2x16x18x32xf32, #tpu.memory_space<vmem>>, vector<2x16x16x32xf32>
    %35 = vector.shape_cast %34 : vector<2x16x16x32xf32> to vector<512x32xf32>
    %c0_55 = arith.constant 0 : index
    %c0_56 = arith.constant 0 : index
    %36 = vector.load %arg6[%c0_55, %c0_56] : memref<1x32xf32, #tpu.memory_space<vmem>>, vector<1x32xf32>
    %37 = vector.broadcast %36 : vector<1x32xf32> to vector<512x32xf32>
    %38 = arith.addf %35, %37 : vector<512x32xf32>
    %cst_57 = arith.constant 0.000000e+00 : f32
    %39 = vector.broadcast %cst_57 : f32 to vector<512x32xf32>
    %40 = arith.maximumf %38, %39 : vector<512x32xf32>
    %41 = arith.truncf %40 : vector<512x32xf32> to vector<512x32xbf16>
    %c0_58 = arith.constant 0 : index
    %c0_59 = arith.constant 0 : index
    %42 = vector.load %arg4[%c0_58, %c0_59] : memref<32x128xbf16, #tpu.memory_space<vmem>>, vector<32x128xbf16>
    %cst_60 = arith.constant dense<0.000000e+00> : vector<512x128xf32>
    %43 = tpu.matmul %41, %42, %cst_60 {dimension_numbers = #tpu.dot_dimension_numbers<[1], [0], [0], [1], [0, 0, 1, 1], [], []>} : vector<512x32xbf16>, vector<32x128xbf16>, vector<512x128xf32> -> vector<512x128xf32>
    %c0_61 = arith.constant 0 : index
    %c0_62 = arith.constant 0 : index
    %c0_63 = arith.constant 0 : index
    %c0_64 = arith.constant 0 : index
    %44 = vector.load %arg1[%c0_61, %c0_62, %c0_63, %c0_64] : memref<2x16x16x128xbf16, #tpu.memory_space<vmem>>, vector<2x16x16x128xbf16>
    %45 = arith.extf %44 : vector<2x16x16x128xbf16> to vector<2x16x16x128xf32>
    %46 = vector.shape_cast %45 : vector<2x16x16x128xf32> to vector<512x128xf32>
    %c0_65 = arith.constant 0 : index
    %c0_66 = arith.constant 0 : index
    %47 = vector.load %arg7[%c0_65, %c0_66] : memref<1x128xf32, #tpu.memory_space<vmem>>, vector<1x128xf32>
    %48 = vector.broadcast %47 : vector<1x128xf32> to vector<512x128xf32>
    %49 = arith.addf %43, %48 : vector<512x128xf32>
    %50 = arith.addf %49, %46 : vector<512x128xf32>
    %cst_67 = arith.constant 0.000000e+00 : f32
    %51 = vector.broadcast %cst_67 : f32 to vector<512x128xf32>
    %52 = arith.maximumf %50, %51 : vector<512x128xf32>
    %53 = vector.shape_cast %52 : vector<512x128xf32> to vector<2x16x16x128xf32>
    %54 = arith.truncf %53 : vector<2x16x16x128xf32> to vector<2x16x16x128xbf16>
    %c0_68 = arith.constant 0 : index
    %c0_69 = arith.constant 0 : index
    %c0_70 = arith.constant 0 : index
    %c0_71 = arith.constant 0 : index
    %55 = vector.load %arg8[%c0_68, %c0_69, %c0_70, %c0_71] : memref<2x16x16x128xbf16, #tpu.memory_space<vmem>>, vector<2x16x16x128xbf16>
    tpu.vector_store %arg8[%c0_68, %c0_69, %c0_70, %c0_71], %54 {strides = array<i32>} : memref<2x16x16x128xbf16, #tpu.memory_space<vmem>>, vector<2x16x16x128xbf16>,
    return
  }
  func.func @transform_0(%arg0: i32) -> (i32, i32, i32, i32) {
    %c0_i32 = arith.constant 0 : i32
    %c0_i32_0 = arith.constant 0 : i32
    %c0_i32_1 = arith.constant 0 : i32
    %c0_i32_2 = arith.constant 0 : i32
    return %arg0, %c0_i32, %c0_i32_0, %c0_i32_1 : i32, i32, i32, i32
  }
  func.func @transform_1(%arg0: i32) -> (i32, i32) {
    %c0_i32 = arith.constant 0 : i32
    %c0_i32_0 = arith.constant 0 : i32
    %c0_i32_1 = arith.constant 0 : i32
    return %c0_i32, %c0_i32_0 : i32, i32
  }
  func.func @transform_2(%arg0: i32) -> (i32, i32) {
    %c0_i32 = arith.constant 0 : i32
    %c0_i32_0 = arith.constant 0 : i32
    %c0_i32_1 = arith.constant 0 : i32
    return %c0_i32, %c0_i32_0 : i32, i32
  }
  func.func @transform_3(%arg0: i32) -> (i32, i32) {
    %c0_i32 = arith.constant 0 : i32
    %c0_i32_0 = arith.constant 0 : i32
    %c0_i32_1 = arith.constant 0 : i32
    return %c0_i32, %c0_i32_0 : i32, i32
  }
  func.func @transform_4(%arg0: i32) -> (i32, i32) {
    %c0_i32 = arith.constant 0 : i32
    %c0_i32_0 = arith.constant 0 : i32
    %c0_i32_1 = arith.constant 0 : i32
    return %c0_i32, %c0_i32_0 : i32, i32
  }
  func.func @transform_5(%arg0: i32) -> (i32, i32) {
    %c0_i32 = arith.constant 0 : i32
    %c0_i32_0 = arith.constant 0 : i32
    %c0_i32_1 = arith.constant 0 : i32
    return %c0_i32, %c0_i32_0 : i32, i32
  }
  func.func @transform_6(%arg0: i32) -> (i32, i32) {
    %c0_i32 = arith.constant 0 : i32
    %c0_i32_0 = arith.constant 0 : i32
    %c0_i32_1 = arith.constant 0 : i32
    return %c0_i32, %c0_i32_0 : i32, i32
  }
  func.func @transform_7(%arg0: i32) -> (i32, i32, i32, i32) {
    %c0_i32 = arith.constant 0 : i32
    %c0_i32_0 = arith.constant 0 : i32
    %c0_i32_1 = arith.constant 0 : i32
    %c0_i32_2 = arith.constant 0 : i32
    return %arg0, %c0_i32, %c0_i32_0, %c0_i32_1 : i32, i32, i32, i32
  }
}

</mosaic_0001>

<bundles_post_ra>
// kernel: tpu_custom_call.1
= control target key start
LH: loop header
LB: loop body
LE: loop exit
PB: predicated region body
PF: predicated region fallthrough
CT: control target
= control target key end

     0   :  { %12 = vsyncpa [#allocation5], 0  ;;  %s7206_s0 = inlined_call_operand.hbm [shape: bf16[2,16,16,128], index: 0, kind: input, shape index: {}]   ;;  %s7207_s1 = inlined_call_operand.vmem [shape: bf16[128,32], index: 1, kind: input, shape index: {}]   ;;  %s7208_s2 = inlined_call_operand.vmem [shape: bf16[96,96], index: 2, kind: input, shape index: {}]   ;;  %s7209_s3 = inlined_call_operand.vmem [shape: bf16[32,128], index: 3, kind: input, shape index: {}]   ;;  %s7210_s4 = inlined_call_operand.vmem [shape: f32[1,32], index: 4, kind: input, shape index: {}]   ;;  %s7211_s5 = inlined_call_operand.vmem [shape: f32[1,32], index: 5, kind: input, shape index: {}]   ;;  %s7212_s6 = inlined_call_operand.vmem [shape: f32[1,128], index: 6, kind: input, shape index: {}]   ;;  %s7213_s7 = inlined_call_operand.hbm [shape: bf16[2,16,16,128], index: 7, kind: output, shape index: {}]  }
   0x1   :  { %13 = vsyncpa [#allocation6], 0  ;;  %s5565_s24 = smov [#allocation4]  }
   0x2   :  { %s19_s25 = sshll.u32 %s5565_s24, 4  ;;  %s20_s25 = int_to_ptr.vmem [resolvable:$true] %s19_s25 }
   0x3   :  { %s5529_s26 = scalar_lea.vmem %s20_s25, 4096  ;;  %p5534_p1 = scmp.lt.s32.totalorder %s20_s25, %s20_s25 }
   0x4   :  { %p5530_p0 = scmp.ne.s32.totalorder %s20_s25, %s5529_s26  ;;  %p5535_p2 = scmp.lt.s32.totalorder %s5529_s26, %s5529_s26 }
   0x6   :  { %p5536_p3 = por %p5535_p2, %p5534_p1 }
   0x8   :  { %p5537_p4 = pnand %p5536_p3, %p5530_p0 }
   0xa   :  { %5540 = shalt.err (!%p5537_p4)
}
   0xb   :  { %s5566_s27 = smov 64   ;;  %s5567_s28 = smov 4  }
   0xc   :  { %25 = dma.hbm_to_vmem [thread:$0]  %s7206_s0, 4096, %s20_s25, [#allocation5], %s5566_s27, %s5566_s27, %s5567_s28  }
   0xd   :  { %5561 = dma.done.wait [#allocation5], 4096  }
   0xe   :  { %5562 = vsyncadd [#allocation5], 4294963200  ;;  %v5438_v0 = vld [vmem:[%s7207_s1 + $0x38] sm:$0xff]   ;;  %v5439_v1 = vld [vmem:[%s7207_s1 + $0x30] sm:$0xff]   ;;  %s5568_s0 = smov 32   ;;  %vm1106_vm0 = vcmask 519424  }
   0xf   :  { %5195 = vmatprep.subr.bf16.mxu0 %v5438_v0  ;;  %v5440_v2 = vld [vmem:[%s7207_s1 + $0x28] sm:$0xff]   ;;  %v5441_v3 = vld [vmem:[%s7207_s1 + $0x20] sm:$0xff]   ;;  %v5442_v5 = vld [vmem:[%s7207_s1 + $0x18] sm:$0xff]   ;;  %vm1232_vm1 = vcmask 257024   ;;  %vm1477_vm2 = vcmask 781824   ;;  %vm1815_vm3 = vcmask 785408  }
  0x10   :  { %5196 = vmatpush3.bf16.msra.mxu0 %v5438_v0  ;;  %v5446_v4 = vld [vmem:[#allocation4] sm:$0xff]   ;;  %v5443_v6 = vld [vmem:[%s7207_s1 + $0x10] sm:$0xff]   ;;  %v5444_v7 = vld [vmem:[%s7207_s1 + $0x8] sm:$0xff]   ;;  %vm2457_vm4 = vcmask 261120   ;;  %s5571_s25 = smov [#allocation7]  }
  0x11   :  { %5197 = vmatprep.subr.bf16.mxu0 %v5439_v1  ;;  %5211 = vmatprep.mubr.bf16.mxu0 %v5446_v4  ;;  %v5445_v8 = vld [vmem:[%s7207_s1] sm:$0xff]   ;;  %v5447_v9 = vld [vmem:[#allocation4 + $0x8] sm:$0xff]   ;;  %v5448_v10 = vld [vmem:[#allocation4 + $0x10] sm:$0xff]   ;;  %s4318_s26 = sshll.u32 %s5571_s25, 4  ;;  %s4319_s26 = int_to_ptr.vmem [resolvable:$true] %s4318_s26 }
  0x12   :  { %v5449_v11 = vld [vmem:[#allocation4 + $0x18] sm:$0xff]   ;;  %v5450_v12 = vld [vmem:[#allocation4 + $0x20] sm:$0xff]   ;;  %v5451_v13 = vld [vmem:[#allocation4 + $0x28] sm:$0xff]   ;;  %p5546_p6 = scmp.lt.s32.totalorder %s4319_s26, %s4319_s26 }
  0x13   :  { %v5452_v14 = vld [vmem:[#allocation4 + $0x30] sm:$0xff]   ;;  %v5453_v15 = vld [vmem:[#allocation4 + $0x38] sm:$0xff]   ;;  %v5454_v16 = vld [vmem:[#allocation4 + $0x40] sm:$0xff]  }
  0x14   :  { %5198 = vmatpush3.bf16.msra.mxu0 %v5439_v1  ;;  %v5455_v17 = vld [vmem:[#allocation4 + $0x48] sm:$0xff]   ;;  %v5456_v18 = vld [vmem:[#allocation4 + $0x50] sm:$0xff]   ;;  %v5457_v19 = vld [vmem:[#allocation4 + $0x58] sm:$0xff]  }
  0x15   :  { %5199 = vmatprep.subr.bf16.mxu0 %v5440_v2  ;;  %v5458_v20 = vld [vmem:[#allocation4 + $0x60] sm:$0xff]   ;;  %v5459_v21 = vld [vmem:[#allocation4 + $0x68] sm:$0xff]   ;;  %v5460_v22 = vld [vmem:[#allocation4 + $0x70] sm:$0xff]  }
  0x16   :  { %v5461_v23 = vld [vmem:[#allocation4 + $0x78] sm:$0xff]   ;;  %v5462_v24 = vld [vmem:[#allocation4 + $0x80] sm:$0xff]   ;;  %v5463_v25 = vld [vmem:[#allocation4 + $0x88] sm:$0xff]  }
  0x17   :  { %v5464_v26 = vld [vmem:[#allocation4 + $0x90] sm:$0xff]   ;;  %v5465_v27 = vld [vmem:[#allocation4 + $0x98] sm:$0xff]   ;;  %v5466_v28 = vld [vmem:[#allocation4 + $0xa0] sm:$0xff]  }
  0x18   :  { %5200 = vmatpush3.bf16.msra.mxu0 %v5440_v2  ;;  %v5467_v29 = vld [vmem:[#allocation4 + $0xa8] sm:$0xff]   ;;  %v5468_v30 = vld [vmem:[#allocation4 + $0xb0] sm:$0xff]   ;;  %v5469_v31 = vld [vmem:[#allocation4 + $0xb8] sm:$0xff]  }
  0x19   :  { %5201 = vmatprep.subr.bf16.mxu0 %v5441_v3  ;;  %v5470_v32 = vld [vmem:[#allocation4 + $0xc0] sm:$0xff]   ;;  %v5476_v33 = vld [vmem:[%s7208_s2 + $0x28] sm:$0xff]   ;;  %v5472_v35 = vld [vmem:[#allocation4 + $0xd0] sm:$0xff]  }
  0x1a   :  { %5419 = vmatprep.subr.bf16.mxu1 %v5476_v33  ;;  %v5471_v34 = vld [vmem:[#allocation4 + $0xc8] sm:$0xff]   ;;  %v5473_v36 = vld [vmem:[#allocation4 + $0xd8] sm:$0xff]   ;;  %v5474_v37 = vld [vmem:[#allocation4 + $0xe0] sm:$0xff]  }
  0x1b   :  { %5425 = vmatpush3.bf16.msra.mxu1 %v5476_v33  ;;  %v5479_v38 = vld [vmem:[%s7208_s2 + $0x20] sm:$0xff]   ;;  %v5475_v39 = vld [vmem:[#allocation4 + $0xe8] sm:$0xff]   ;;  %v5477_v40 = vld [vmem:[#allocation4 + $0xf0] sm:$0xff]  }
  0x1c   :  { %5202 = vmatpush3.bf16.msra.mxu0 %v5441_v3  ;;  %5420 = vmatprep.subr.bf16.mxu1 %v5479_v38  ;;  %v5478_v41 = vld [vmem:[#allocation4 + $0xf8] sm:$0xff]   ;;  %v5481_v43 = vld [vmem:[%s7208_s2 + $0x10] sm:$0xff]   ;;  %v5482_v44 = vld [vmem:[%s7208_s2 + $0x8] sm:$0xff]  }
  0x1d   :  { %5203 = vmatprep.subr.bf16.mxu0 %v5442_v5  ;;  %v5480_v42 = vld [vmem:[%s7208_s2 + $0x18] sm:$0xff]   ;;  %v5660_v45 = vld [vmem:[%s7210_s4] ss:$0 sm:$0xff] }
  0x1e   :  { %v5483_v52 = vld [vmem:[%s7208_s2] sm:$0xff]  }
  0x1f   :  { %5426 = vmatpush3.bf16.msra.mxu1 %v5479_v38 }
  0x20   :  { %5204 = vmatpush3.bf16.msra.mxu0 %v5442_v5  ;;  %5421 = vmatprep.subr.bf16.mxu1 %v5480_v42 }
  0x21   :  { %5205 = vmatprep.subr.bf16.mxu0 %v5443_v6 }
  0x23   :  { %5427 = vmatpush3.bf16.msra.mxu1 %v5480_v42 }
  0x24   :  { %5206 = vmatpush3.bf16.msra.mxu0 %v5443_v6  ;;  %5422 = vmatprep.subr.bf16.mxu1 %v5481_v43 }
  0x25   :  { %5207 = vmatprep.subr.bf16.mxu0 %v5444_v7 }
  0x27   :  { %5428 = vmatpush3.bf16.msra.mxu1 %v5481_v43 }
  0x28   :  { %5208 = vmatpush3.bf16.msra.mxu0 %v5444_v7  ;;  %5423 = vmatprep.subr.bf16.mxu1 %v5482_v44 }
  0x29   :  { %5209 = vmatprep.subr.bf16.mxu0 %v5445_v8 }
  0x2b   :  { %5429 = vmatpush3.bf16.msra.mxu1 %v5482_v44 }
  0x2c   :  { %5210 = vmatpush3.bf16.msra.mxu0 %v5445_v8  ;;  %5424 = vmatprep.subr.bf16.mxu1 %v5483_v52 }
  0x2d   :  { %5275 = vmatprep.subr.bf16.mxu0 %v5476_v33 }
  0x2f   :  { %5212 = vmatmul.mubr.bf16.vlgmr.msra.gmra.mxu0 %v5447_v9  ;;  %5430 = vmatpush3.bf16.msra.mxu1 %v5483_v52 }
  0x30   :  { %5215 = vmatprep.mubr.bf16.mxu0 %v5448_v10  ;;  %5276 = vmatpush3.bf16.msra.mxu0 %v5476_v33 }
  0x31   :  { %5277 = vmatprep.subr.bf16.mxu0 %v5479_v38 }
  0x34   :  { %5278 = vmatpush3.bf16.msra.mxu0 %v5479_v38 }
  0x35   :  { %5279 = vmatprep.subr.bf16.mxu0 %v5480_v42 }
  0x37   :  { %5216 = vmatmul.mubr.bf16.gmra.mxu0 %v5449_v11 }
  0x38   :  { %5219 = vmatprep.mubr.bf16.mxu0 %v5450_v12  ;;  %5280 = vmatpush3.bf16.msra.mxu0 %v5480_v42 }
  0x39   :  { %5281 = vmatprep.subr.bf16.mxu0 %v5481_v43 }
  0x3c   :  { %5282 = vmatpush3.bf16.msra.mxu0 %v5481_v43 }
  0x3d   :  { %5283 = vmatprep.subr.bf16.mxu0 %v5482_v44 }
  0x3f   :  { %5220 = vmatmul.mubr.bf16.gmra.mxu0 %v5451_v13 }
  0x40   :  { %5223 = vmatprep.mubr.bf16.mxu0 %v5452_v14  ;;  %5284 = vmatpush3.bf16.msra.mxu0 %v5482_v44 }
  0x41   :  { %5285 = vmatprep.subr.bf16.mxu0 %v5483_v52 }
  0x44   :  { %5286 = vmatpush3.bf16.msra.mxu0 %v5483_v52 }
  0x47   :  { %5224 = vmatmul.mubr.bf16.gmra.mxu0 %v5453_v15 }
  0x48   :  { %5227 = vmatprep.mubr.bf16.mxu0 %v5454_v16 }
  0x4f   :  { %5228 = vmatmul.mubr.bf16.gmra.mxu0 %v5455_v17 }
  0x50   :  { %5231 = vmatprep.mubr.bf16.mxu0 %v5456_v18 }
  0x57   :  { %5232 = vmatmul.mubr.bf16.gmra.mxu0 %v5457_v19 }
  0x58   :  { %5235 = vmatprep.mubr.bf16.mxu0 %v5458_v20 }
  0x5f   :  { %5236 = vmatmul.mubr.bf16.gmra.mxu0 %v5459_v21 }
  0x60   :  { %5239 = vmatprep.mubr.bf16.mxu0 %v5460_v22 }
  0x67   :  { %5240 = vmatmul.mubr.bf16.gmra.mxu0 %v5461_v23 }
  0x68   :  { %5243 = vmatprep.mubr.bf16.mxu0 %v5462_v24 }
  0x6f   :  { %5244 = vmatmul.mubr.bf16.gmra.mxu0 %v5463_v25 }
  0x70   :  { %5247 = vmatprep.mubr.bf16.mxu0 %v5464_v26 }
  0x77   :  { %5248 = vmatmul.mubr.bf16.gmra.mxu0 %v5465_v27 }
  0x78   :  { %5251 = vmatprep.mubr.bf16.mxu0 %v5466_v28 }
  0x7f   :  { %5252 = vmatmul.mubr.bf16.gmra.mxu0 %v5467_v29 }
  0x80   :  { %5255 = vmatprep.mubr.bf16.mxu0 %v5468_v30 }
  0x87   :  { %5256 = vmatmul.mubr.bf16.gmra.mxu0 %v5469_v31 }
  0x88   :  { %5259 = vmatprep.mubr.bf16.mxu0 %v5470_v32 }
  0x8f   :  { %5260 = vmatmul.mubr.bf16.gmra.mxu0 %v5471_v34 }
  0x90   :  { %5263 = vmatprep.mubr.bf16.mxu0 %v5472_v35 }
  0x97   :  { %5264 = vmatmul.mubr.bf16.gmra.mxu0 %v5473_v36 }
  0x98   :  { %5267 = vmatprep.mubr.bf16.mxu0 %v5474_v37 }
  0x9f   :  { %5268 = vmatmul.mubr.bf16.gmra.mxu0 %v5475_v39 }
  0xa0   :  { %5271 = vmatprep.mubr.bf16.mxu0 %v5477_v40 }
  0xa7   :  { %5272 = vmatmul.mubr.bf16.gmra.mxu0 %v5478_v41 }
  0xef   :  { %v5213_v46 = vpop.f32.mrf.mxu0 }
  0xf0   :  { %v412_v47 = vadd.f32 %v5213_v46, %v5660_v45 }
  0xf1   :  { %v403_v48 = vpop.f32.mrf.mxu0 }
  0xf2   :  { %v660_v49 = vmax.f32 %v412_v47, 0.0  ;;  %v404_v50 = vadd.f32 %v5660_v45, %v403_v48 }
  0xf3   :  { %v5214_v51 = vpop.f32.mrf.mxu0 }
  0xf4   :  { %v5667_v53 = vpack.c.bf16 %v660_v49, %v660_v49  ;;  %v658_v54 = vmax.f32 %v404_v50, 0.0  ;;  %v415_v55 = vadd.f32 %v5214_v51, %v5660_v45 }
  0xf5   :  { %v406_v56 = vpop.f32.mrf.mxu0 }
  0xf6   :  { %v661_v57 = vmax.f32 %v415_v55, 0.0  ;;  %v407_v58 = vadd.f32 %v5660_v45, %v406_v56  ;;  %1297 = vrot.lane.b32.xlu0 %v5667_v53, %s5566_s27  ;;  %918 = vrot.lane.b32.xlu1 %v5667_v53, %s5568_s0  ;;  %v5675_v60 = vpack.c.bf16 %v658_v54, %v658_v54 }
  0xf7   :  { %v5217_v59 = vpop.f32.mrf.mxu0 }
  0xf8   :  { %v5677_v61 = vpack.c.bf16 %v661_v57, %v661_v57  ;;  %v659_v62 = vmax.f32 %v407_v58, 0.0  ;;  %v428_v63 = vadd.f32 %v5217_v59, %v5660_v45 }
  0xf9   :  { %v419_v0 = vpop.f32.mrf.mxu0 }
  0xfa   :  { %920 = vrot.lane.b32.xlu1 %v5677_v61, %s5568_s0  ;;  %914 = vrot.lane.b32.xlu0 %v5675_v60, %s5568_s0  ;;  %v5684_v2 = vpack.c.bf16 %v659_v62, %v659_v62  ;;  %v664_v3 = vmax.f32 %v428_v63, 0.0  ;;  %v420_v9 = vadd.f32 %v5660_v45, %v419_v0 }
  0xfb   :  { %v5218_v1 = vpop.f32.mrf.mxu0 }
  0xfc   :  { %v431_v4 = vadd.f32 %v5218_v1, %v5660_v45  ;;  %v5691_v8 = vpack.c.bf16 %v664_v3, %v664_v3  ;;  %v662_v13 = vmax.f32 %v420_v9, 0.0 }
  0xfd   :  { %v422_v5 = vpop.f32.mrf.mxu0 }
  0xfe   :  { %v665_v6 = vmax.f32 %v431_v4, 0.0  ;;  %1299 = vrot.lane.b32.xlu1 %v5677_v61, %s5566_s27  ;;  %916 = vrot.lane.b32.xlu0 %v5684_v2, %s5568_s0  ;;  %v423_v11 = vadd.f32 %v5660_v45, %v422_v5  ;;  %v5705_v16 = vpack.c.bf16 %v662_v13, %v662_v13 }
  0xff   :  { %v5221_v7 = vpop.f32.mrf.mxu0 }
 0x100   :  { %v5694_v10 = vpack.c.bf16 %v665_v6, %v665_v6  ;;  %v663_v14 = vmax.f32 %v423_v11, 0.0  ;;  %v444_v18 = vadd.f32 %v5221_v7, %v5660_v45 }
 0x101   :  { %v435_v12 = vpop.f32.mrf.mxu0 }
 0x102   :  { %928 = vrot.lane.b32.xlu1 %v5694_v10, %s5568_s0  ;;  %926 = vrot.lane.b32.xlu0 %v5691_v8, %s5568_s0  ;;  %v5707_v17 = vpack.c.bf16 %v663_v14, %v663_v14  ;;  %v668_v20 = vmax.f32 %v444_v18, 0.0  ;;  %v436_v25 = vadd.f32 %v5660_v45, %v435_v12 }
 0x103   :  { %v5222_v15 = vpop.f32.mrf.mxu0 }
 0x104   :  { %v447_v19 = vadd.f32 %v5222_v15, %v5660_v45  ;;  %v5719_v24 = vpack.c.bf16 %v668_v20, %v668_v20  ;;  %v666_v29 = vmax.f32 %v436_v25, 0.0 }
 0x105   :  { %v438_v22 = vpop.f32.mrf.mxu0 }
 0x106   :  { %1307 = vrot.lane.b32.xlu1 %v5694_v10, %s5566_s27  ;;  %1305 = vrot.lane.b32.xlu0 %v5691_v8, %s5566_s27  ;;  %v669_v21 = vmax.f32 %v447_v19, 0.0  ;;  %v439_v27 = vadd.f32 %v5660_v45, %v438_v22  ;;  %v5733_v32 = vpack.c.bf16 %v666_v29, %v666_v29 }
 0x107   :  { %v5225_v23 = vpop.f32.mrf.mxu0 }
 0x108   :  { %v5722_v26 = vpack.c.bf16 %v669_v21, %v669_v21  ;;  %v667_v30 = vmax.f32 %v439_v27, 0.0  ;;  %v460_v34 = vadd.f32 %v5225_v23, %v5660_v45 }
 0x109   :  { %v451_v28 = vpop.f32.mrf.mxu0 }
 0x10a   :  { %1303 = vrot.lane.b32.xlu1 %v5707_v17, %s5566_s27  ;;  %1301 = vrot.lane.b32.xlu0 %v5705_v16, %s5566_s27  ;;  %v5735_v33 = vpack.c.bf16 %v667_v30, %v667_v30  ;;  %v672_v36 = vmax.f32 %v460_v34, 0.0  ;;  %v452_v41 = vadd.f32 %v5660_v45, %v451_v28 }
 0x10b   :  { %v5226_v31 = vpop.f32.mrf.mxu0 }
 0x10c   :  { %v463_v35 = vadd.f32 %v5226_v31, %v5660_v45  ;;  %v5747_v40 = vpack.c.bf16 %v672_v36, %v672_v36  ;;  %v670_v46 = vmax.f32 %v452_v41, 0.0 }
 0x10d   :  { %v454_v38 = vpop.f32.mrf.mxu0 }
 0x10e   :  { %924 = vrot.lane.b32.xlu1 %v5707_v17, %s5568_s0  ;;  %922 = vrot.lane.b32.xlu0 %v5705_v16, %s5568_s0  ;;  %v673_v37 = vmax.f32 %v463_v35, 0.0  ;;  %v455_v43 = vadd.f32 %v5660_v45, %v454_v38  ;;  %v5761_v49 = vpack.c.bf16 %v670_v46, %v670_v46 }
 0x10f   :  { %v5229_v39 = vpop.f32.mrf.mxu0 }
 0x110   :  { %v5750_v42 = vpack.c.bf16 %v673_v37, %v673_v37  ;;  %v671_v47 = vmax.f32 %v455_v43, 0.0  ;;  %v476_v51 = vadd.f32 %v5229_v39, %v5660_v45 }
 0x111   :  { %v467_v44 = vpop.f32.mrf.mxu0 }
 0x112   :  { %936 = vrot.lane.b32.xlu1 %v5722_v26, %s5568_s0  ;;  %934 = vrot.lane.b32.xlu0 %v5719_v24, %s5568_s0  ;;  %v5763_v50 = vpack.c.bf16 %v671_v47, %v671_v47  ;;  %v676_v54 = vmax.f32 %v476_v51, 0.0  ;;  %v468_v59 = vadd.f32 %v5660_v45, %v467_v44 }
 0x113   :  { %v5230_v48 = vpop.f32.mrf.mxu0 }
 0x114   :  { %v479_v52 = vadd.f32 %v5230_v48, %v5660_v45  ;;  %v5775_v58 = vpack.c.bf16 %v676_v54, %v676_v54  ;;  %v674_v1 = vmax.f32 %v468_v59, 0.0 }
 0x115   :  { %v470_v56 = vpop.f32.mrf.mxu0 }
 0x116   :  { %1315 = vrot.lane.b32.xlu1 %v5722_v26, %s5566_s27  ;;  %1313 = vrot.lane.b32.xlu0 %v5719_v24, %s5566_s27  ;;  %v677_v55 = vmax.f32 %v479_v52, 0.0  ;;  %v471_v63 = vadd.f32 %v5660_v45, %v470_v56  ;;  %v5789_v5 = vpack.c.bf16 %v674_v1, %v674_v1 }
 0x117   :  { %v5233_v57 = vpop.f32.mrf.mxu0 }
 0x118   :  { %v5778_v62 = vpack.c.bf16 %v677_v55, %v677_v55  ;;  %v675_v3 = vmax.f32 %v471_v63, 0.0  ;;  %v492_v7 = vadd.f32 %v5233_v57, %v5660_v45 }
 0x119   :  { %v483_v0 = vpop.f32.mrf.mxu0 }
 0x11a   :  { %1311 = vrot.lane.b32.xlu1 %v5735_v33, %s5566_s27  ;;  %1309 = vrot.lane.b32.xlu0 %v5733_v32, %s5566_s27  ;;  %v5791_v6 = vpack.c.bf16 %v675_v3, %v675_v3  ;;  %v680_v11 = vmax.f32 %v492_v7, 0.0  ;;  %v484_v18 = vadd.f32 %v5660_v45, %v483_v0 }
 0x11b   :  { %v5234_v4 = vpop.f32.mrf.mxu0 }
 0x11c   :  { %v495_v9 = vadd.f32 %v5234_v4, %v5660_v45  ;;  %v5803_v15 = vpack.c.bf16 %v680_v11, %v680_v11  ;;  %v678_v22 = vmax.f32 %v484_v18, 0.0 }
 0x11d   :  { %v486_v13 = vpop.f32.mrf.mxu0 }
 0x11e   :  { %932 = vrot.lane.b32.xlu1 %v5735_v33, %s5568_s0  ;;  %930 = vrot.lane.b32.xlu0 %v5733_v32, %s5568_s0  ;;  %v681_v12 = vmax.f32 %v495_v9, 0.0  ;;  %v487_v20 = vadd.f32 %v5660_v45, %v486_v13  ;;  %v5817_v27 = vpack.c.bf16 %v678_v22, %v678_v22 }
 0x11f   :  { %v5237_v14 = vpop.f32.mrf.mxu0 }
 0x120   :  { %v5806_v19 = vpack.c.bf16 %v681_v12, %v681_v12  ;;  %v679_v23 = vmax.f32 %v487_v20, 0.0  ;;  %v508_v29 = vadd.f32 %v5237_v14, %v5660_v45 }
 0x121   :  { %v499_v21 = vpop.f32.mrf.mxu0 }
 0x122   :  { %944 = vrot.lane.b32.xlu1 %v5750_v42, %s5568_s0  ;;  %942 = vrot.lane.b32.xlu0 %v5747_v40, %s5568_s0  ;;  %v5819_v28 = vpack.c.bf16 %v679_v23, %v679_v23  ;;  %v684_v34 = vmax.f32 %v508_v29, 0.0  ;;  %v500_v38 = vadd.f32 %v5660_v45, %v499_v21 }
 0x123   :  { %v5238_v25 = vpop.f32.mrf.mxu0 }
 0x124   :  { %v511_v30 = vadd.f32 %v5238_v25, %v5660_v45  ;;  %v5831_v37 = vpack.c.bf16 %v684_v34, %v684_v34  ;;  %v682_v44 = vmax.f32 %v500_v38, 0.0 }
 0x125   :  { %v502_v31 = vpop.f32.mrf.mxu0 }
 0x126   :  { %1323 = vrot.lane.b32.xlu1 %v5750_v42, %s5566_s27  ;;  %1321 = vrot.lane.b32.xlu0 %v5747_v40, %s5566_s27  ;;  %v685_v35 = vmax.f32 %v511_v30, 0.0  ;;  %v503_v41 = vadd.f32 %v5660_v45, %v502_v31  ;;  %v5845_v48 = vpack.c.bf16 %v682_v44, %v682_v44 }
 0x127   :  { %v5241_v36 = vpop.f32.mrf.mxu0 }
 0x128   :  { %v5834_v39 = vpack.c.bf16 %v685_v35, %v685_v35  ;;  %v683_v46 = vmax.f32 %v503_v41, 0.0  ;;  %v524_v52 = vadd.f32 %v5241_v36, %v5660_v45 }
 0x129   :  { %v515_v43 = vpop.f32.mrf.mxu0 }
 0x12a   :  { %1319 = vrot.lane.b32.xlu1 %v5763_v50, %s5566_s27  ;;  %1317 = vrot.lane.b32.xlu0 %v5761_v49, %s5566_s27  ;;  %v5847_v51 = vpack.c.bf16 %v683_v46, %v683_v46  ;;  %v688_v57 = vmax.f32 %v524_v52, 0.0  ;;  %v516_v1 = vadd.f32 %v5660_v45, %v515_v43 }
 0x12b   :  { %v5242_v47 = vpop.f32.mrf.mxu0 }
 0x12c   :  { %v527_v54 = vadd.f32 %v5242_v47, %v5660_v45  ;;  %v4635_v0 = vpack.c.bf16 %v688_v57, %v688_v57  ;;  %v686_v9 = vmax.f32 %v516_v1, 0.0 }
 0x12d   :  { %v518_v55 = vpop.f32.mrf.mxu0 }
 0x12e   :  { %940 = vrot.lane.b32.xlu1 %v5763_v50, %s5568_s0  ;;  %938 = vrot.lane.b32.xlu0 %v5761_v49, %s5568_s0  ;;  %v689_v59 = vmax.f32 %v527_v54, 0.0  ;;  %v519_v4 = vadd.f32 %v5660_v45, %v518_v55  ;;  %v5867_v18 = vpack.c.bf16 %v686_v9, %v686_v9 }
 0x12f   :  { %v5245_v56 = vpop.f32.mrf.mxu0 }
 0x130   :  { %v4636_v3 = vpack.c.bf16 %v689_v59, %v689_v59  ;;  %v687_v11 = vmax.f32 %v519_v4, 0.0  ;;  %v540_v12 = vadd.f32 %v5245_v56, %v5660_v45 }
 0x131   :  { %v531_v63 = vpop.f32.mrf.mxu0 }
 0x132   :  { %952 = vrot.lane.b32.xlu1 %v5778_v62, %s5568_s0  ;;  %950 = vrot.lane.b32.xlu0 %v5775_v58, %s5568_s0  ;;  %v5869_v20 = vpack.c.bf16 %v687_v11, %v687_v11  ;;  %v692_v25 = vmax.f32 %v540_v12, 0.0  ;;  %v532_v38 = vadd.f32 %v5660_v45, %v531_v63 }
 0x133   :  { %v5246_v7 = vpop.f32.mrf.mxu0 }
 0x134   :  { %v543_v13 = vadd.f32 %v5246_v7, %v5660_v45  ;;  %v5880_v35 = vpack.c.bf16 %v692_v25, %v692_v25  ;;  %v690_v52 = vmax.f32 %v532_v38, 0.0 }
 0x135   :  { %v534_v14 = vpop.f32.mrf.mxu0 }
 0x136   :  { %1331 = vrot.lane.b32.xlu1 %v5778_v62, %s5566_s27  ;;  %1329 = vrot.lane.b32.xlu0 %v5775_v58, %s5566_s27  ;;  %v693_v29 = vmax.f32 %v543_v13, 0.0  ;;  %v535_v41 = vadd.f32 %v5660_v45, %v534_v14 }
 0x137   :  { %v5249_v23 = vpop.f32.mrf.mxu0 }
 0x138   :  { %v5882_v36 = vpack.c.bf16 %v693_v29, %v693_v29  ;;  %v556_v46 = vadd.f32 %v5249_v23, %v5660_v45  ;;  %v691_v54 = vmax.f32 %v535_v41, 0.0 }
 0x139   :  { %v547_v34 = vpop.f32.mrf.mxu0 }
 0x13a   :  { %1327 = vrot.lane.b32.xlu1 %v5791_v6, %s5566_s27  ;;  %1325 = vrot.lane.b32.xlu0 %v5789_v5, %s5566_s27  ;;  %v696_v57 = vmax.f32 %v556_v46, 0.0  ;;  %v5917_v1 = vpack.c.bf16 %v691_v54, %v691_v54  ;;  %v548_v11 = vadd.f32 %v5660_v45, %v547_v34 }
 0x13e   :  { %948 = vrot.lane.b32.xlu1 %v5791_v6, %s5568_s0  ;;  %946 = vrot.lane.b32.xlu0 %v5789_v5, %s5568_s0 }
 0x142   :  { %960 = vrot.lane.b32.xlu1 %v5806_v19, %s5568_s0  ;;  %958 = vrot.lane.b32.xlu0 %v5803_v15, %s5568_s0 }
 0x146   :  { %1339 = vrot.lane.b32.xlu1 %v5806_v19, %s5566_s27  ;;  %1337 = vrot.lane.b32.xlu0 %v5803_v15, %s5566_s27 }
 0x14a   :  { %1335 = vrot.lane.b32.xlu1 %v5819_v28, %s5566_s27  ;;  %1333 = vrot.lane.b32.xlu0 %v5817_v27, %s5566_s27 }
 0x14e   :  { %956 = vrot.lane.b32.xlu1 %v5819_v28, %s5568_s0  ;;  %954 = vrot.lane.b32.xlu0 %v5817_v27, %s5568_s0 }
 0x152   :  { %968 = vrot.lane.b32.xlu1 %v5834_v39, %s5568_s0  ;;  %966 = vrot.lane.b32.xlu0 %v5831_v37, %s5568_s0 }
 0x156   :  { %1347 = vrot.lane.b32.xlu1 %v5834_v39, %s5566_s27  ;;  %1345 = vrot.lane.b32.xlu0 %v5831_v37, %s5566_s27 }
 0x15a   :  { %1343 = vrot.lane.b32.xlu1 %v5847_v51, %s5566_s27  ;;  %1341 = vrot.lane.b32.xlu0 %v5845_v48, %s5566_s27 }
 0x15e   :  { %964 = vrot.lane.b32.xlu1 %v5847_v51, %s5568_s0  ;;  %962 = vrot.lane.b32.xlu0 %v5845_v48, %s5568_s0 }
 0x162   :  { %976 = vrot.lane.b32.xlu1 %v4636_v3, %s5568_s0  ;;  %974 = vrot.lane.b32.xlu0 %v4635_v0, %s5568_s0 }
 0x166   :  { %1355 = vrot.lane.b32.xlu1 %v4636_v3, %s5566_s27  ;;  %1353 = vrot.lane.b32.xlu0 %v4635_v0, %s5566_s27  ;;  %v5915_v0 = vpack.c.bf16 %v690_v52, %v690_v52 }
 0x168   :  { %v1298_v21 = vpop.permute.xlu0 %1297  ;;  %v919_v22 = vpop.permute.xlu1 %918 }
 0x169   :  { %1109 = vst.msk [vmem:[#allocation2 + $0x8] sm:$0xf] %vm1106_vm0, %v919_v22  ;;  %v694_v22 = vmax.f32 %v548_v11, 0.0 }
 0x16a   :  { %1233 = vst.msk [vmem:[#allocation2 + $0x8] sm:$0xf] %vm1232_vm1, %v5675_v60  ;;  %1351 = vrot.lane.b32.xlu1 %v5869_v20, %s5566_s27  ;;  %1349 = vrot.lane.b32.xlu0 %v5867_v18, %s5566_s27  ;;  %v5569_v60 = vmov 0  }
 0x16b   :  { %v5950_v38 = vpack.c.bf16 %v694_v22, %v694_v22 }
 0x16c   :  { %v921_v30 = vpop.permute.xlu1 %920  ;;  %v915_v31 = vpop.permute.xlu0 %914 }
 0x16d   :  { %1110 = vst.msk [vmem:[#allocation2 + $0xc] sm:$0xf] %vm1106_vm0, %v921_v30  ;;  %1107 = vst.msk [vmem:[#allocation2] sm:$0xf] %vm1106_vm0, %v915_v31 }
 0x16e   :  { %1234 = vst.msk [vmem:[#allocation2 + $0xc] sm:$0xf] %vm1232_vm1, %v5684_v2  ;;  %1293 = vst.msk [vmem:[#allocation2] sm:$0xf] %vm1232_vm1, %v5569_v60  ;;  %972 = vrot.lane.b32.xlu1 %v5869_v20, %s5568_s0  ;;  %970 = vrot.lane.b32.xlu0 %v5867_v18, %s5568_s0  ;;  %v5250_v2 = vpop.f32.mrf.mxu0 }
 0x16f   :  { %1478 = vst.msk [vmem:[#allocation2] sm:$0xf] %vm1477_vm2, %v1298_v21  ;;  %v559_v47 = vadd.f32 %v5250_v2, %v5660_v45 }
 0x170   :  { %v1300_v43 = vpop.permute.xlu1 %1299  ;;  %v917_v44 = vpop.permute.xlu0 %916 }
 0x171   :  { %1108 = vst.msk [vmem:[#allocation2 + $0x4] sm:$0xf] %vm1106_vm0, %v917_v44  ;;  %v697_v59 = vmax.f32 %v559_v47, 0.0  ;;  %v550_v63 = vpop.f32.mrf.mxu0 }
 0x172   :  { %1294 = vst.msk [vmem:[#allocation2 + $0x4] sm:$0xf] %vm1232_vm1, %v5569_v60  ;;  %984 = vrot.lane.b32.xlu1 %v5882_v36, %s5568_s0  ;;  %982 = vrot.lane.b32.xlu0 %v5880_v35, %s5568_s0  ;;  %v551_v12 = vadd.f32 %v5660_v45, %v550_v63 }
 0x173   :  { %1479 = vst.msk [vmem:[#allocation2 + $0x4] sm:$0xf] %vm1477_vm2, %v1300_v43  ;;  %v5253_v7 = vpop.f32.mrf.mxu0  ;;  %v5921_v9 = vpack.c.bf16 %v697_v59, %v697_v59 }
 0x174   :  { %v929_v55 = vpop.permute.xlu1 %928  ;;  %v927_v56 = vpop.permute.xlu0 %926  ;;  %v695_v23 = vmax.f32 %v551_v12, 0.0  ;;  %v572_v31 = vadd.f32 %v5253_v7, %v5660_v45 }
 0x175   :  { %1114 = vst.msk [vmem:[#allocation2 + $0x1c] sm:$0xf] %vm1106_vm0, %v929_v55  ;;  %1113 = vst.msk [vmem:[#allocation2 + $0x18] sm:$0xf] %vm1106_vm0, %v927_v56  ;;  %v563_v21 = vpop.f32.mrf.mxu0 }
 0x176   :  { %1238 = vst.msk [vmem:[#allocation2 + $0x1c] sm:$0xf] %vm1232_vm1, %v5707_v17  ;;  %1237 = vst.msk [vmem:[#allocation2 + $0x18] sm:$0xf] %vm1232_vm1, %v5705_v16  ;;  %1359 = vrot.lane.b32.xlu1 %v5882_v36, %s5566_s27  ;;  %1357 = vrot.lane.b32.xlu0 %v5880_v35, %s5566_s27  ;;  %v5919_v17 = vpack.c.bf16 %v696_v57, %v696_v57  ;;  %v700_v44 = vmax.f32 %v572_v31, 0.0 }
 0x177   :  { %v5254_v30 = vpop.f32.mrf.mxu0 }
 0x178   :  { %v1308_v3 = vpop.permute.xlu1 %1307  ;;  %v1306_v4 = vpop.permute.xlu0 %1305  ;;  %v575_v34 = vadd.f32 %v5254_v30, %v5660_v45  ;;  %v5965_v55 = vpack.c.bf16 %v700_v44, %v700_v44 }
 0x179   :  { %v566_v46 = vpop.f32.mrf.mxu0 }
 0x17a   :  { %980 = vrot.lane.b32.xlu1 %v5917_v1, %s5568_s0  ;;  %978 = vrot.lane.b32.xlu0 %v5915_v0, %s5568_s0  ;;  %v5484_v16 = vld [vmem:[#allocation2] sm:$0xff]   ;;  %v701_v2 = vmax.f32 %v575_v34, 0.0  ;;  %v567_v57 = vadd.f32 %v5660_v45, %v566_v46 }
 0x17b   :  { %5287 = vmatprep.mubr.msk.bf16.mxu0 %vm1815_vm3, %v5484_v16  ;;  %v5257_v54 = vpop.f32.mrf.mxu0 }
 0x17c   :  { %v1304_v13 = vpop.permute.xlu1 %1303  ;;  %v1302_v14 = vpop.permute.xlu0 %1301  ;;  %v5967_v56 = vpack.c.bf16 %v701_v2, %v701_v2  ;;  %v699_v7 = vmax.f32 %v567_v57, 0.0 }
 0x17d   :  { %1481 = vst.msk [vmem:[#allocation2 + $0xc] sm:$0xf] %vm1477_vm2, %v1304_v13  ;;  %1480 = vst.msk [vmem:[#allocation2 + $0x8] sm:$0xf] %vm1477_vm2, %v1302_v14  ;;  %v588_v13 = vadd.f32 %v5257_v54, %v5660_v45 }
 0x17e   :  { %992 = vrot.lane.b32.xlu1 %v5921_v9, %s5568_s0  ;;  %990 = vrot.lane.b32.xlu0 %v5919_v17, %s5568_s0 }
 0x180   :  { %v925_v25 = vpop.permute.xlu1 %924  ;;  %v923_v29 = vpop.permute.xlu0 %922 }
 0x181   :  { %1112 = vst.msk [vmem:[#allocation2 + $0x14] sm:$0xf] %vm1106_vm0, %v925_v25  ;;  %1111 = vst.msk [vmem:[#allocation2 + $0x10] sm:$0xf] %vm1106_vm0, %v923_v29  ;;  %v704_v25 = vmax.f32 %v588_v13, 0.0 }
 0x182   :  { %1236 = vst.msk [vmem:[#allocation2 + $0x14] sm:$0xf] %vm1232_vm1, %v5677_v61  ;;  %1235 = vst.msk [vmem:[#allocation2 + $0x10] sm:$0xf] %vm1232_vm1, %v5667_v53  ;;  %1367 = vrot.lane.b32.xlu1 %v5921_v9, %s5566_s27  ;;  %1365 = vrot.lane.b32.xlu0 %v5919_v17, %s5566_s27  ;;  %v5952_v61 = vpack.c.bf16 %v695_v23, %v695_v23 }
 0x183   :  { %1483 = vst.msk [vmem:[#allocation2 + $0x14] sm:$0xf] %vm1477_vm2, %v1308_v3  ;;  %1482 = vst.msk [vmem:[#allocation2 + $0x10] sm:$0xf] %vm1477_vm2, %v1306_v4  ;;  %v579_v3 = vpop.f32.mrf.mxu0 }
 0x184   :  { %v937_v41 = vpop.permute.xlu1 %936  ;;  %v935_v53 = vpop.permute.xlu0 %934  ;;  %v5485_v43 = vld [vmem:[#allocation2 + $0x8] sm:$0xff]  }
 0x185   :  { %1118 = vst.msk [vmem:[#allocation2 + $0x2c] sm:$0xf] %vm1106_vm0, %v937_v41  ;;  %1117 = vst.msk [vmem:[#allocation2 + $0x28] sm:$0xf] %vm1106_vm0, %v935_v53  ;;  %5288 = vmatmul.mubr.msk.bf16.vlgmr.msra.gmra.mxu0 %vm1815_vm3, %v5485_v43  ;;  %v5258_v12 = vpop.f32.mrf.mxu0  ;;  %v6011_v53 = vpack.c.bf16 %v704_v25, %v704_v25 }
 0x186   :  { %1242 = vst.msk [vmem:[#allocation2 + $0x2c] sm:$0xf] %vm1232_vm1, %v5735_v33  ;;  %1241 = vst.msk [vmem:[#allocation2 + $0x28] sm:$0xf] %vm1232_vm1, %v5733_v32  ;;  %1363 = vrot.lane.b32.xlu1 %v5952_v61, %s5566_s27  ;;  %1361 = vrot.lane.b32.xlu0 %v5950_v38, %s5566_s27  ;;  %v564_v33 = vadd.f32 %v5660_v45, %v563_v21  ;;  %v591_v14 = vadd.f32 %v5258_v12, %v5660_v45 }
 0x187   :  { %v582_v30 = vpop.f32.mrf.mxu0 }
 0x188   :  { %v1316_v47 = vpop.permute.xlu1 %1315  ;;  %v1314_v52 = vpop.permute.xlu0 %1313  ;;  %v698_v4 = vmax.f32 %v564_v33, 0.0  ;;  %v705_v29 = vmax.f32 %v591_v14, 0.0  ;;  %v583_v44 = vadd.f32 %v5660_v45, %v582_v30 }
 0x189   :  { %v5261_v41 = vpop.f32.mrf.mxu0 }
 0x18a   :  { %988 = vrot.lane.b32.xlu1 %v5952_v61, %s5568_s0  ;;  %986 = vrot.lane.b32.xlu0 %v5950_v38, %s5568_s0  ;;  %v5486_v32 = vld [vmem:[#allocation2 + $0x10] sm:$0xff]   ;;  %v5996_v21 = vpack.c.bf16 %v698_v4, %v698_v4  ;;  %v6013_v43 = vpack.c.bf16 %v705_v29, %v705_v29  ;;  %v703_v54 = vmax.f32 %v583_v44, 0.0 }
 0x18b   :  { %5291 = vmatprep.mubr.msk.bf16.mxu0 %vm1815_vm3, %v5486_v32 }
 0x18c   :  { %v1312_v59 = vpop.permute.xlu1 %1311  ;;  %v1310_v63 = vpop.permute.xlu0 %1309 }
 0x18d   :  { %1485 = vst.msk [vmem:[#allocation2 + $0x1c] sm:$0xf] %vm1477_vm2, %v1312_v59  ;;  %1484 = vst.msk [vmem:[#allocation2 + $0x18] sm:$0xf] %vm1477_vm2, %v1310_v63  ;;  %v604_v59 = vadd.f32 %v5261_v41, %v5660_v45 }
 0x18e   :  { %1000 = vrot.lane.b32.xlu1 %v5967_v56, %s5568_s0  ;;  %998 = vrot.lane.b32.xlu0 %v5965_v55, %s5568_s0 }
 0x190   :  { %v933_v16 = vpop.permute.xlu1 %932  ;;  %v931_v11 = vpop.permute.xlu0 %930 }
 0x191   :  { %1116 = vst.msk [vmem:[#allocation2 + $0x24] sm:$0xf] %vm1106_vm0, %v933_v16  ;;  %1115 = vst.msk [vmem:[#allocation2 + $0x20] sm:$0xf] %vm1106_vm0, %v931_v11  ;;  %v708_v16 = vmax.f32 %v604_v59, 0.0 }
 0x192   :  { %1240 = vst.msk [vmem:[#allocation2 + $0x24] sm:$0xf] %vm1232_vm1, %v5694_v10  ;;  %1239 = vst.msk [vmem:[#allocation2 + $0x20] sm:$0xf] %vm1232_vm1, %v5691_v8  ;;  %1375 = vrot.lane.b32.xlu1 %v5967_v56, %s5566_s27  ;;  %1373 = vrot.lane.b32.xlu0 %v5965_v55, %s5566_s27  ;;  %v5998_v10 = vpack.c.bf16 %v699_v7, %v699_v7 }
 0x193   :  { %1487 = vst.msk [vmem:[#allocation2 + $0x24] sm:$0xf] %vm1477_vm2, %v1316_v47  ;;  %1486 = vst.msk [vmem:[#allocation2 + $0x20] sm:$0xf] %vm1477_vm2, %v1314_v52  ;;  %v595_v47 = vpop.f32.mrf.mxu0 }
 0x194   :  { %v945_v22 = vpop.permute.xlu1 %944  ;;  %v943_v8 = vpop.permute.xlu0 %942  ;;  %v5487_v23 = vld [vmem:[#allocation2 + $0x18] sm:$0xff]  }
 0x195   :  { %1122 = vst.msk [vmem:[#allocation2 + $0x3c] sm:$0xf] %vm1106_vm0, %v945_v22  ;;  %1121 = vst.msk [vmem:[#allocation2 + $0x38] sm:$0xf] %vm1106_vm0, %v943_v8  ;;  %5292 = vmatmul.mubr.msk.bf16.gmra.mxu0 %vm1815_vm3, %v5487_v23  ;;  %v5262_v57 = vpop.f32.mrf.mxu0  ;;  %v6057_v8 = vpack.c.bf16 %v708_v16, %v708_v16 }
 0x196   :  { %1246 = vst.msk [vmem:[#allocation2 + $0x3c] sm:$0xf] %vm1232_vm1, %v5763_v50  ;;  %1245 = vst.msk [vmem:[#allocation2 + $0x38] sm:$0xf] %vm1232_vm1, %v5761_v49  ;;  %1371 = vrot.lane.b32.xlu1 %v5998_v10, %s5566_s27  ;;  %1369 = vrot.lane.b32.xlu0 %v5996_v21, %s5566_s27  ;;  %v580_v50 = vadd.f32 %v5660_v45, %v579_v3  ;;  %v607_v63 = vadd.f32 %v5262_v57, %v5660_v45 }
 0x197   :  { %v598_v12 = vpop.f32.mrf.mxu0 }
 0x198   :  { %v1324_v31 = vpop.permute.xlu1 %1323  ;;  %v1322_v34 = vpop.permute.xlu0 %1321  ;;  %v702_v52 = vmax.f32 %v580_v50, 0.0  ;;  %v709_v11 = vmax.f32 %v607_v63, 0.0  ;;  %v599_v25 = vadd.f32 %v5660_v45, %v598_v12 }
 0x199   :  { %v5265_v22 = vpop.f32.mrf.mxu0 }
 0x19a   :  { %996 = vrot.lane.b32.xlu1 %v5998_v10, %s5568_s0  ;;  %994 = vrot.lane.b32.xlu0 %v5996_v21, %s5568_s0  ;;  %v5488_v49 = vld [vmem:[#allocation2 + $0x20] sm:$0xff]   ;;  %v6042_v3 = vpack.c.bf16 %v702_v52, %v702_v52  ;;  %v6059_v23 = vpack.c.bf16 %v709_v11, %v709_v11  ;;  %v707_v41 = vmax.f32 %v599_v25, 0.0 }
 0x19b   :  { %5295 = vmatprep.mubr.msk.bf16.mxu0 %vm1815_vm3, %v5488_v49 }
 0x19c   :  { %v1320_v2 = vpop.permute.xlu1 %1319  ;;  %v1318_v46 = vpop.permute.xlu0 %1317 }
 0x19d   :  { %1489 = vst.msk [vmem:[#allocation2 + $0x2c] sm:$0xf] %vm1477_vm2, %v1320_v2  ;;  %1488 = vst.msk [vmem:[#allocation2 + $0x28] sm:$0xf] %vm1477_vm2, %v1318_v46  ;;  %v620_v2 = vadd.f32 %v5265_v22, %v5660_v45 }
 0x19e   :  { %1008 = vrot.lane.b32.xlu1 %v6013_v43, %s5568_s0  ;;  %1006 = vrot.lane.b32.xlu0 %v6011_v53, %s5568_s0 }
 0x1a0   :  { %v941_v32 = vpop.permute.xlu1 %940  ;;  %v939_v33 = vpop.permute.xlu0 %938 }
 0x1a1   :  { %1120 = vst.msk [vmem:[#allocation2 + $0x34] sm:$0xf] %vm1106_vm0, %v941_v32  ;;  %1119 = vst.msk [vmem:[#allocation2 + $0x30] sm:$0xf] %vm1106_vm0, %v939_v33  ;;  %v712_v32 = vmax.f32 %v620_v2, 0.0 }
 0x1a2   :  { %1244 = vst.msk [vmem:[#allocation2 + $0x34] sm:$0xf] %vm1232_vm1, %v5722_v26  ;;  %1243 = vst.msk [vmem:[#allocation2 + $0x30] sm:$0xf] %vm1232_vm1, %v5719_v24  ;;  %1383 = vrot.lane.b32.xlu1 %v6013_v43, %s5566_s27  ;;  %1381 = vrot.lane.b32.xlu0 %v6011_v53, %s5566_s27  ;;  %v6044_v26 = vpack.c.bf16 %v703_v54, %v703_v54 }
 0x1a3   :  { %1491 = vst.msk [vmem:[#allocation2 + $0x34] sm:$0xf] %vm1477_vm2, %v1324_v31  ;;  %1490 = vst.msk [vmem:[#allocation2 + $0x30] sm:$0xf] %vm1477_vm2, %v1322_v34  ;;  %v611_v31 = vpop.f32.mrf.mxu0 }
 0x1a4   :  { %v953_v4 = vpop.permute.xlu1 %952  ;;  %v951_v24 = vpop.permute.xlu0 %950  ;;  %v5489_v7 = vld [vmem:[#allocation2 + $0x28] sm:$0xff]  }
 0x1a5   :  { %1126 = vst.msk [vmem:[#allocation2 + $0x4c] sm:$0xf] %vm1106_vm0, %v953_v4  ;;  %1125 = vst.msk [vmem:[#allocation2 + $0x48] sm:$0xf] %vm1106_vm0, %v951_v24  ;;  %5296 = vmatmul.mubr.msk.bf16.gmra.mxu0 %vm1815_vm3, %v5489_v7  ;;  %v5266_v44 = vpop.f32.mrf.mxu0  ;;  %v6103_v24 = vpack.c.bf16 %v712_v32, %v712_v32 }
 0x1a6   :  { %1250 = vst.msk [vmem:[#allocation2 + $0x4c] sm:$0xf] %vm1232_vm1, %v5791_v6  ;;  %1249 = vst.msk [vmem:[#allocation2 + $0x48] sm:$0xf] %vm1232_vm1, %v5789_v5  ;;  %1379 = vrot.lane.b32.xlu1 %v6044_v26, %s5566_s27  ;;  %1377 = vrot.lane.b32.xlu0 %v6042_v3, %s5566_s27  ;;  %v596_v6 = vadd.f32 %v5660_v45, %v595_v47  ;;  %v623_v46 = vadd.f32 %v5266_v44, %v5660_v45 }
 0x1a7   :  { %v614_v57 = vpop.f32.mrf.mxu0 }
 0x1a8   :  { %v1332_v13 = vpop.permute.xlu1 %1331  ;;  %v1330_v14 = vpop.permute.xlu0 %1329  ;;  %v706_v34 = vmax.f32 %v596_v6, 0.0  ;;  %v713_v33 = vmax.f32 %v623_v46, 0.0  ;;  %v615_v16 = vadd.f32 %v5660_v45, %v614_v57 }
 0x1a9   :  { %v5269_v4 = vpop.f32.mrf.mxu0 }
 0x1aa   :  { %1004 = vrot.lane.b32.xlu1 %v6044_v26, %s5568_s0  ;;  %1002 = vrot.lane.b32.xlu0 %v6042_v3, %s5568_s0  ;;  %v5490_v5 = vld [vmem:[#allocation2 + $0x30] sm:$0xff]   ;;  %v6088_v47 = vpack.c.bf16 %v706_v34, %v706_v34  ;;  %v6105_v7 = vpack.c.bf16 %v713_v33, %v713_v33  ;;  %v711_v22 = vmax.f32 %v615_v16, 0.0 }
 0x1ab   :  { %5299 = vmatprep.mubr.msk.bf16.mxu0 %vm1815_vm3, %v5490_v5 }
 0x1ac   :  { %v1328_v29 = vpop.permute.xlu1 %1327  ;;  %v1326_v30 = vpop.permute.xlu0 %1325 }
 0x1ad   :  { %1493 = vst.msk [vmem:[#allocation2 + $0x3c] sm:$0xf] %vm1477_vm2, %v1328_v29  ;;  %1492 = vst.msk [vmem:[#allocation2 + $0x38] sm:$0xf] %vm1477_vm2, %v1326_v30  ;;  %v636_v29 = vadd.f32 %v5269_v4, %v5660_v45 }
 0x1ae   :  { %1016 = vrot.lane.b32.xlu1 %v6059_v23, %s5568_s0  ;;  %1014 = vrot.lane.b32.xlu0 %v6057_v8, %s5568_s0 }
 0x1b0   :  { %v949_v49 = vpop.permute.xlu1 %948  ;;  %v947_v50 = vpop.permute.xlu0 %946 }
 0x1b1   :  { %1124 = vst.msk [vmem:[#allocation2 + $0x44] sm:$0xf] %vm1106_vm0, %v949_v49  ;;  %1123 = vst.msk [vmem:[#allocation2 + $0x40] sm:$0xf] %vm1106_vm0, %v947_v50  ;;  %v716_v50 = vmax.f32 %v636_v29, 0.0 }
 0x1b2   :  { %1248 = vst.msk [vmem:[#allocation2 + $0x44] sm:$0xf] %vm1232_vm1, %v5750_v42  ;;  %1247 = vst.msk [vmem:[#allocation2 + $0x40] sm:$0xf] %vm1232_vm1, %v5747_v40  ;;  %1391 = vrot.lane.b32.xlu1 %v6059_v23, %s5566_s27  ;;  %1389 = vrot.lane.b32.xlu0 %v6057_v8, %s5566_s27  ;;  %v6090_v42 = vpack.c.bf16 %v707_v41, %v707_v41 }
 0x1b3   :  { %1495 = vst.msk [vmem:[#allocation2 + $0x44] sm:$0xf] %vm1477_vm2, %v1332_v13  ;;  %1494 = vst.msk [vmem:[#allocation2 + $0x40] sm:$0xf] %vm1477_vm2, %v1330_v14  ;;  %v627_v13 = vpop.f32.mrf.mxu0 }
 0x1b4   :  { %v961_v52 = vpop.permute.xlu1 %960  ;;  %v959_v40 = vpop.permute.xlu0 %958  ;;  %v5491_v54 = vld [vmem:[#allocation2 + $0x38] sm:$0xff]  }
 0x1b5   :  { %1130 = vst.msk [vmem:[#allocation2 + $0x5c] sm:$0xf] %vm1106_vm0, %v961_v52  ;;  %1129 = vst.msk [vmem:[#allocation2 + $0x58] sm:$0xf] %vm1106_vm0, %v959_v40  ;;  %5300 = vmatmul.mubr.msk.bf16.gmra.mxu0 %vm1815_vm3, %v5491_v54  ;;  %v5270_v25 = vpop.f32.mrf.mxu0  ;;  %v6149_v52 = vpack.c.bf16 %v716_v50, %v716_v50  ;;  %v5518_v54 = vld [vmem:[%s7210_s4] ss:$0 sm:$0xff] }
 0x1b6   :  { %1254 = vst.msk [vmem:[#allocation2 + $0x5c] sm:$0xf] %vm1232_vm1, %v5819_v28  ;;  %1253 = vst.msk [vmem:[#allocation2 + $0x58] sm:$0xf] %vm1232_vm1, %v5817_v27  ;;  %1387 = vrot.lane.b32.xlu1 %v6090_v42, %s5566_s27  ;;  %1385 = vrot.lane.b32.xlu0 %v6088_v47, %s5566_s27  ;;  %v612_v28 = vadd.f32 %v5660_v45, %v611_v31  ;;  %v639_v30 = vadd.f32 %v5270_v25, %v5660_v45  ;;  %s5570_s4 = smov 96  }
 0x1b7   :  { %v630_v49 = vpop.f32.mrf.mxu0  ;;  %v628_v32 = vadd.f32 %v5518_v54, %v627_v13 }
 0x1b8   :  { %v1340_v59 = vpop.permute.xlu1 %1339  ;;  %v1338_v63 = vpop.permute.xlu0 %1337  ;;  %v710_v14 = vmax.f32 %v612_v28, 0.0  ;;  %v717_v45 = vmax.f32 %v639_v30, 0.0  ;;  %v631_v33 = vadd.f32 %v5518_v54, %v630_v49 }
 0x1b9   :  { %v5273_v44 = vpop.f32.mrf.mxu0  ;;  %v714_v4 = vmax.f32 %v628_v32, 0.0 }
 0x1ba   :  { %1012 = vrot.lane.b32.xlu1 %v6090_v42, %s5568_s0  ;;  %1010 = vrot.lane.b32.xlu0 %v6088_v47, %s5568_s0  ;;  %v5492_v27 = vld [vmem:[#allocation2 + $0x40] sm:$0xff]   ;;  %v6134_v31 = vpack.c.bf16 %v710_v14, %v710_v14  ;;  %v6151_v40 = vpack.c.bf16 %v717_v45, %v717_v45 }
 0x1bb   :  { %5303 = vmatprep.mubr.msk.bf16.mxu0 %vm1815_vm3, %v5492_v27  ;;  %v715_v27 = vmax.f32 %v631_v33, 0.0  ;;  %v6179_v14 = vpack.c.bf16 %v714_v4, %v714_v4 }
 0x1bc   :  { %v1336_v11 = vpop.permute.xlu1 %1335  ;;  %v1334_v12 = vpop.permute.xlu0 %1333 }
 0x1bd   :  { %1497 = vst.msk [vmem:[#allocation2 + $0x4c] sm:$0xf] %vm1477_vm2, %v1336_v11  ;;  %1496 = vst.msk [vmem:[#allocation2 + $0x48] sm:$0xf] %vm1477_vm2, %v1334_v12  ;;  %v652_v11 = vadd.f32 %v5518_v54, %v5273_v44 }
 0x1be   :  { %1024 = vrot.lane.b32.xlu1 %v6105_v7, %s5568_s0  ;;  %1022 = vrot.lane.b32.xlu0 %v6103_v24, %s5568_s0 }
 0x1bf   :  { %v720_v25 = vmax.f32 %v652_v11, 0.0 }
 0x1c0   :  { %v957_v5 = vpop.permute.xlu1 %956  ;;  %v955_v6 = vpop.permute.xlu0 %954 }
 0x1c1   :  { %1128 = vst.msk [vmem:[#allocation2 + $0x54] sm:$0xf] %vm1106_vm0, %v957_v5  ;;  %1127 = vst.msk [vmem:[#allocation2 + $0x50] sm:$0xf] %vm1106_vm0, %v955_v6 }
 0x1c2   :  { %1252 = vst.msk [vmem:[#allocation2 + $0x54] sm:$0xf] %vm1232_vm1, %v5778_v62  ;;  %1251 = vst.msk [vmem:[#allocation2 + $0x50] sm:$0xf] %vm1232_vm1, %v5775_v58  ;;  %1399 = vrot.lane.b32.xlu1 %v6105_v7, %s5566_s27  ;;  %1397 = vrot.lane.b32.xlu0 %v6103_v24, %s5566_s27  ;;  %v6136_v62 = vpack.c.bf16 %v711_v22, %v711_v22  ;;  %v6181_v22 = vpack.c.bf16 %v715_v27, %v715_v27 }
 0x1c3   :  { %1499 = vst.msk [vmem:[#allocation2 + $0x54] sm:$0xf] %vm1477_vm2, %v1340_v59  ;;  %1498 = vst.msk [vmem:[#allocation2 + $0x50] sm:$0xf] %vm1477_vm2, %v1338_v63 }
 0x1c4   :  { %v969_v34 = vpop.permute.xlu1 %968  ;;  %v967_v58 = vpop.permute.xlu0 %966  ;;  %v5493_v41 = vld [vmem:[#allocation2 + $0x48] sm:$0xff]  }
 0x1c5   :  { %1134 = vst.msk [vmem:[#allocation2 + $0x6c] sm:$0xf] %vm1106_vm0, %v969_v34  ;;  %1133 = vst.msk [vmem:[#allocation2 + $0x68] sm:$0xf] %vm1106_vm0, %v967_v58  ;;  %5304 = vmatmul.mubr.msk.bf16.gmra.mxu0 %vm1815_vm3, %v5493_v41 }
 0x1c6   :  { %1258 = vst.msk [vmem:[#allocation2 + $0x6c] sm:$0xf] %vm1232_vm1, %v5847_v51  ;;  %1257 = vst.msk [vmem:[#allocation2 + $0x68] sm:$0xf] %vm1232_vm1, %v5845_v48  ;;  %1395 = vrot.lane.b32.xlu1 %v6136_v62, %s5566_s27  ;;  %1393 = vrot.lane.b32.xlu0 %v6134_v31, %s5566_s27  ;;  %v643_v51 = vpop.f32.mrf.mxu0 }
 0x1c7   :  { %v644_v6 = vadd.f32 %v5518_v54, %v643_v51 }
 0x1c8   :  { %v1348_v2 = vpop.permute.xlu1 %1347  ;;  %v1346_v46 = vpop.permute.xlu0 %1345 }
 0x1c9   :  { %v5274_v63 = vpop.f32.mrf.mxu0  ;;  %v718_v58 = vmax.f32 %v644_v6, 0.0 }
 0x1ca   :  { %1020 = vrot.lane.b32.xlu1 %v6136_v62, %s5568_s0  ;;  %1018 = vrot.lane.b32.xlu0 %v6134_v31, %s5568_s0  ;;  %v5494_v48 = vld [vmem:[#allocation2 + $0x50] sm:$0xff]   ;;  %v655_v12 = vadd.f32 %v5518_v54, %v5274_v63 }
 0x1cb   :  { %5307 = vmatprep.mubr.msk.bf16.mxu0 %vm1815_vm3, %v5494_v48  ;;  %v646_v13 = vpop.f32.mrf.mxu0 }
 0x1cc   :  { %v1344_v57 = vpop.permute.xlu1 %1343  ;;  %v1342_v59 = vpop.permute.xlu0 %1341  ;;  %v721_v29 = vmax.f32 %v655_v12, 0.0  ;;  %v647_v30 = vadd.f32 %v5518_v54, %v646_v13 }
 0x1cd   :  { %1501 = vst.msk [vmem:[#allocation2 + $0x5c] sm:$0xf] %vm1477_vm2, %v1344_v57  ;;  %1500 = vst.msk [vmem:[#allocation2 + $0x58] sm:$0xf] %vm1477_vm2, %v1342_v59 }
 0x1ce   :  { %1032 = vrot.lane.b32.xlu1 %v6151_v40, %s5568_s0  ;;  %1030 = vrot.lane.b32.xlu0 %v6149_v52, %s5568_s0  ;;  %v4668_v41 = vpack.c.bf16 %v721_v29, %v721_v29  ;;  %v719_v49 = vmax.f32 %v647_v30, 0.0 }
 0x1d0   :  { %v965_v28 = vpop.permute.xlu1 %964  ;;  %v963_v16 = vpop.permute.xlu0 %962 }
 0x1d1   :  { %1132 = vst.msk [vmem:[#allocation2 + $0x64] sm:$0xf] %vm1106_vm0, %v965_v28  ;;  %1131 = vst.msk [vmem:[#allocation2 + $0x60] sm:$0xf] %vm1106_vm0, %v963_v16 }
 0x1d2   :  { %1256 = vst.msk [vmem:[#allocation2 + $0x64] sm:$0xf] %vm1232_vm1, %v5806_v19  ;;  %1255 = vst.msk [vmem:[#allocation2 + $0x60] sm:$0xf] %vm1232_vm1, %v5803_v15  ;;  %1407 = vrot.lane.b32.xlu1 %v6151_v40, %s5566_s27  ;;  %1405 = vrot.lane.b32.xlu0 %v6149_v52, %s5566_s27 }
 0x1d3   :  { %1503 = vst.msk [vmem:[#allocation2 + $0x64] sm:$0xf] %vm1477_vm2, %v1348_v2  ;;  %1502 = vst.msk [vmem:[#allocation2 + $0x60] sm:$0xf] %vm1477_vm2, %v1346_v46  ;;  %v6205_v2 = vpack.c.bf16 %v718_v58, %v718_v58  ;;  %v6207_v46 = vpack.c.bf16 %v719_v49, %v719_v49 }
 0x1d4   :  { %v977_v19 = vpop.permute.xlu1 %976  ;;  %v975_v5 = vpop.permute.xlu0 %974  ;;  %v5495_v15 = vld [vmem:[#allocation2 + $0x58] sm:$0xff]  }
 0x1d5   :  { %1138 = vst.msk [vmem:[#allocation2 + $0x7c] sm:$0xf] %vm1106_vm0, %v977_v19  ;;  %1137 = vst.msk [vmem:[#allocation2 + $0x78] sm:$0xf] %vm1106_vm0, %v975_v5  ;;  %5308 = vmatmul.mubr.msk.bf16.gmra.mxu0 %vm1815_vm3, %v5495_v15 }
 0x1d6   :  { %1262 = vst.msk [vmem:[#allocation2 + $0x7c] sm:$0xf] %vm1232_vm1, %v5869_v20  ;;  %1261 = vst.msk [vmem:[#allocation2 + $0x78] sm:$0xf] %vm1232_vm1, %v5867_v18  ;;  %1403 = vrot.lane.b32.xlu1 %v6181_v22, %s5566_s27  ;;  %1401 = vrot.lane.b32.xlu0 %v6179_v14, %s5566_s27  ;;  %v4667_v18 = vpack.c.bf16 %v720_v25, %v720_v25 }
 0x1d7   :  { %1540 = vst.msk [vmem:[#allocation2 + $0x7c] sm:$0xf] %vm1477_vm2, %v5569_v60  ;;  %1539 = vst.msk [vmem:[#allocation2 + $0x78] sm:$0xf] %vm1477_vm2, %v5569_v60 }
 0x1d8   :  { %v1356_v20 = vpop.permute.xlu1 %1355  ;;  %v1354_v34 = vpop.permute.xlu0 %1353 }
 0x1da   :  { %1028 = vrot.lane.b32.xlu1 %v6181_v22, %s5568_s0  ;;  %1026 = vrot.lane.b32.xlu0 %v6179_v14, %s5568_s0  ;;  %v5496_v50 = vld [vmem:[#allocation2 + $0x60] sm:$0xff]  }
 0x1db   :  { %5311 = vmatprep.mubr.msk.bf16.mxu0 %vm1815_vm3, %v5496_v50 }
 0x1dc   :  { %v1352_v45 = vpop.permute.xlu1 %1351  ;;  %v1350_v44 = vpop.permute.xlu0 %1349 }
 0x1dd   :  { %1505 = vst.msk [vmem:[#allocation2 + $0x6c] sm:$0xf] %vm1477_vm2, %v1352_v45  ;;  %1504 = vst.msk [vmem:[#allocation2 + $0x68] sm:$0xf] %vm1477_vm2, %v1350_v44 }
 0x1de   :  { %1040 = vrot.lane.b32.xlu1 %v4668_v41, %s5568_s0  ;;  %1038 = vrot.lane.b32.xlu0 %v4667_v18, %s5568_s0  ;;  %v5499_v57 = vld [vmem:[#allocation2 + $0x78] sm:$0xff]  }
 0x1e0   :  { %v973_v48 = vpop.permute.xlu1 %972  ;;  %v971_v51 = vpop.permute.xlu0 %970 }
 0x1e1   :  { %1136 = vst.msk [vmem:[#allocation2 + $0x74] sm:$0xf] %vm1106_vm0, %v973_v48  ;;  %1135 = vst.msk [vmem:[#allocation2 + $0x70] sm:$0xf] %vm1106_vm0, %v971_v51 }
 0x1e2   :  { %1260 = vst.msk [vmem:[#allocation2 + $0x74] sm:$0xf] %vm1232_vm1, %v5834_v39  ;;  %1259 = vst.msk [vmem:[#allocation2 + $0x70] sm:$0xf] %vm1232_vm1, %v5831_v37  ;;  %1411 = vrot.lane.b32.xlu1 %v6207_v46, %s5566_s27  ;;  %1409 = vrot.lane.b32.xlu0 %v6205_v2, %s5566_s27 }
 0x1e3   :  { %1507 = vst.msk [vmem:[#allocation2 + $0x74] sm:$0xf] %vm1477_vm2, %v1356_v20  ;;  %1506 = vst.msk [vmem:[#allocation2 + $0x70] sm:$0xf] %vm1477_vm2, %v1354_v34 }
 0x1e4   :  { %v985_v54 = vpop.permute.xlu1 %984  ;;  %v983_v32 = vpop.permute.xlu0 %982  ;;  %v5497_v33 = vld [vmem:[#allocation2 + $0x68] sm:$0xff]  }
 0x1e5   :  { %1142 = vst.msk [vmem:[#allocation2 + $0x8c] sm:$0xf] %vm1106_vm0, %v985_v54  ;;  %1141 = vst.msk [vmem:[#allocation2 + $0x88] sm:$0xf] %vm1106_vm0, %v983_v32  ;;  %5312 = vmatmul.mubr.msk.bf16.gmra.mxu0 %vm1815_vm3, %v5497_v33 }
 0x1e6   :  { %1264 = vst.msk [vmem:[#allocation2 + $0x8c] sm:$0xf] %vm1232_vm1, %v5917_v1  ;;  %1263 = vst.msk [vmem:[#allocation2 + $0x88] sm:$0xf] %vm1232_vm1, %v5915_v0  ;;  %1036 = vrot.lane.b32.xlu1 %v6207_v46, %s5568_s0  ;;  %1034 = vrot.lane.b32.xlu0 %v6205_v2, %s5568_s0 }
 0x1e8   :  { %v1360_v37 = vpop.permute.xlu1 %1359  ;;  %v1358_v39 = vpop.permute.xlu0 %1357 }
 0x1ea   :  { %1415 = vrot.lane.b32.xlu1 %v4668_v41, %s5566_s27  ;;  %1413 = vrot.lane.b32.xlu0 %v4667_v18, %s5566_s27  ;;  %v5498_v59 = vld [vmem:[#allocation2 + $0x70] sm:$0xff]  }
 0x1eb   :  { %5315 = vmatprep.mubr.msk.bf16.mxu1 %vm1815_vm3, %v5498_v59 }
 0x1ec   :  { %v981_v1 = vpop.permute.xlu1 %980  ;;  %v979_v63 = vpop.permute.xlu0 %978  ;;  %5316 = vmatmul.mubr.msk.bf16.vlgmr.msra.gmra.mxu1 %vm1815_vm3, %v5499_v57 }
 0x1ed   :  { %1140 = vst.msk [vmem:[#allocation2 + $0x84] sm:$0xf] %vm1106_vm0, %v981_v1  ;;  %1139 = vst.msk [vmem:[#allocation2 + $0x80] sm:$0xf] %vm1106_vm0, %v979_v63 }
 0x1ee   :  { %1296 = vst.msk [vmem:[#allocation2 + $0x84] sm:$0xf] %vm1232_vm1, %v5569_v60  ;;  %1295 = vst.msk [vmem:[#allocation2 + $0x80] sm:$0xf] %vm1232_vm1, %v5569_v60 }
 0x1ef   :  { %1509 = vst.msk [vmem:[#allocation2 + $0x84] sm:$0xf] %vm1477_vm2, %v1360_v37  ;;  %1508 = vst.msk [vmem:[#allocation2 + $0x80] sm:$0xf] %vm1477_vm2, %v1358_v39 }
 0x1f0   :  { %v993_v0 = vpop.permute.xlu1 %992  ;;  %v991_v4 = vpop.permute.xlu0 %990 }
 0x1f1   :  { %1146 = vst.msk [vmem:[#allocation2 + $0x9c] sm:$0xf] %vm1106_vm0, %v993_v0  ;;  %1145 = vst.msk [vmem:[#allocation2 + $0x98] sm:$0xf] %vm1106_vm0, %v991_v4 }
 0x1f2   :  { %1268 = vst.msk [vmem:[#allocation2 + $0x9c] sm:$0xf] %vm1232_vm1, %v5952_v61  ;;  %1267 = vst.msk [vmem:[#allocation2 + $0x98] sm:$0xf] %vm1232_vm1, %v5950_v38 }
 0x1f4   :  { %v1368_v27 = vpop.permute.xlu1 %1367  ;;  %v1366_v28 = vpop.permute.xlu0 %1365 }
 0x1f6   :  { %v5500_v16 = vld [vmem:[#allocation2 + $0x80] sm:$0xff]  }
 0x1f7   :  { %5319 = vmatprep.mubr.msk.bf16.mxu1 %vm1815_vm3, %v5500_v16 }
 0x1f8   :  { %v1364_v11 = vpop.permute.xlu1 %1363  ;;  %v1362_v12 = vpop.permute.xlu0 %1361 }
 0x1f9   :  { %1511 = vst.msk [vmem:[#allocation2 + $0x8c] sm:$0xf] %vm1477_vm2, %v1364_v11  ;;  %1510 = vst.msk [vmem:[#allocation2 + $0x88] sm:$0xf] %vm1477_vm2, %v1362_v12 }
 0x1fc   :  { %v989_v13 = vpop.permute.xlu1 %988  ;;  %v987_v19 = vpop.permute.xlu0 %986 }
 0x1fd   :  { %1144 = vst.msk [vmem:[#allocation2 + $0x94] sm:$0xf] %vm1106_vm0, %v989_v13  ;;  %1143 = vst.msk [vmem:[#allocation2 + $0x90] sm:$0xf] %vm1106_vm0, %v987_v19 }
 0x1fe   :  { %1266 = vst.msk [vmem:[#allocation2 + $0x94] sm:$0xf] %vm1232_vm1, %v5882_v36  ;;  %1265 = vst.msk [vmem:[#allocation2 + $0x90] sm:$0xf] %vm1232_vm1, %v5880_v35 }
 0x1ff   :  { %1513 = vst.msk [vmem:[#allocation2 + $0x94] sm:$0xf] %vm1477_vm2, %v1368_v27  ;;  %1512 = vst.msk [vmem:[#allocation2 + $0x90] sm:$0xf] %vm1477_vm2, %v1366_v28 }
 0x200   :  { %v1001_v38 = vpop.permute.xlu1 %1000  ;;  %v999_v61 = vpop.permute.xlu0 %998  ;;  %v5501_v5 = vld [vmem:[#allocation2 + $0x88] sm:$0xff]  }
 0x201   :  { %1150 = vst.msk [vmem:[#allocation2 + $0xac] sm:$0xf] %vm1106_vm0, %v1001_v38  ;;  %1149 = vst.msk [vmem:[#allocation2 + $0xa8] sm:$0xf] %vm1106_vm0, %v999_v61  ;;  %5320 = vmatmul.mubr.msk.bf16.gmra.mxu1 %vm1815_vm3, %v5501_v5 }
 0x202   :  { %1272 = vst.msk [vmem:[#allocation2 + $0xac] sm:$0xf] %vm1232_vm1, %v5998_v10  ;;  %1271 = vst.msk [vmem:[#allocation2 + $0xa8] sm:$0xf] %vm1232_vm1, %v5996_v21 }
 0x204   :  { %v1376_v35 = vpop.permute.xlu1 %1375  ;;  %v1374_v36 = vpop.permute.xlu0 %1373 }
 0x206   :  { %v5502_v15 = vld [vmem:[#allocation2 + $0x90] sm:$0xff]  }
 0x207   :  { %5323 = vmatprep.mubr.msk.bf16.mxu1 %vm1815_vm3, %v5502_v15 }
 0x208   :  { %v1372_v6 = vpop.permute.xlu1 %1371  ;;  %v1370_v25 = vpop.permute.xlu0 %1369 }
 0x209   :  { %1515 = vst.msk [vmem:[#allocation2 + $0x9c] sm:$0xf] %vm1477_vm2, %v1372_v6  ;;  %1514 = vst.msk [vmem:[#allocation2 + $0x98] sm:$0xf] %vm1477_vm2, %v1370_v25 }
 0x20c   :  { %v997_v29 = vpop.permute.xlu1 %996  ;;  %v995_v30 = vpop.permute.xlu0 %994 }
 0x20d   :  { %1148 = vst.msk [vmem:[#allocation2 + $0xa4] sm:$0xf] %vm1106_vm0, %v997_v29  ;;  %1147 = vst.msk [vmem:[#allocation2 + $0xa0] sm:$0xf] %vm1106_vm0, %v995_v30  ;;  %v5517_v29 = vld [vmem:[%s7209_s3] sm:$0xff]  }
 0x20e   :  { %1270 = vst.msk [vmem:[#allocation2 + $0xa4] sm:$0xf] %vm1232_vm1, %v5921_v9  ;;  %1269 = vst.msk [vmem:[#allocation2 + $0xa0] sm:$0xf] %vm1232_vm1, %v5919_v17 }
 0x20f   :  { %1517 = vst.msk [vmem:[#allocation2 + $0xa4] sm:$0xf] %vm1477_vm2, %v1376_v35  ;;  %1516 = vst.msk [vmem:[#allocation2 + $0xa0] sm:$0xf] %vm1477_vm2, %v1374_v36 }
 0x210   :  { %v1009_v21 = vpop.permute.xlu1 %1008  ;;  %v1007_v10 = vpop.permute.xlu0 %1006  ;;  %v5503_v20 = vld [vmem:[#allocation2 + $0x98] sm:$0xff]  }
 0x211   :  { %1154 = vst.msk [vmem:[#allocation2 + $0xbc] sm:$0xf] %vm1106_vm0, %v1009_v21  ;;  %1153 = vst.msk [vmem:[#allocation2 + $0xb8] sm:$0xf] %vm1106_vm0, %v1007_v10  ;;  %5324 = vmatmul.mubr.msk.bf16.gmra.mxu1 %vm1815_vm3, %v5503_v20 }
 0x212   :  { %1276 = vst.msk [vmem:[#allocation2 + $0xbc] sm:$0xf] %vm1232_vm1, %v6044_v26  ;;  %1275 = vst.msk [vmem:[#allocation2 + $0xb8] sm:$0xf] %vm1232_vm1, %v6042_v3 }
 0x214   :  { %v1384_v17 = vpop.permute.xlu1 %1383  ;;  %v1382_v9 = vpop.permute.xlu0 %1381 }
 0x216   :  { %v5504_v34 = vld [vmem:[#allocation2 + $0xa0] sm:$0xff]  }
 0x217   :  { %5327 = vmatprep.mubr.msk.bf16.mxu1 %vm1815_vm3, %v5504_v34 }
 0x218   :  { %v1380_v58 = vpop.permute.xlu1 %1379  ;;  %v1378_v18 = vpop.permute.xlu0 %1377 }
 0x219   :  { %1519 = vst.msk [vmem:[#allocation2 + $0xac] sm:$0xf] %vm1477_vm2, %v1380_v58  ;;  %1518 = vst.msk [vmem:[#allocation2 + $0xa8] sm:$0xf] %vm1477_vm2, %v1378_v18 }
 0x21c   :  { %v1005_v41 = vpop.permute.xlu1 %1004  ;;  %v1003_v49 = vpop.permute.xlu0 %1002 }
 0x21d   :  { %1152 = vst.msk [vmem:[#allocation2 + $0xb4] sm:$0xf] %vm1106_vm0, %v1005_v41  ;;  %1151 = vst.msk [vmem:[#allocation2 + $0xb0] sm:$0xf] %vm1106_vm0, %v1003_v49 }
 0x21e   :  { %1274 = vst.msk [vmem:[#allocation2 + $0xb4] sm:$0xf] %vm1232_vm1, %v5967_v56  ;;  %1273 = vst.msk [vmem:[#allocation2 + $0xb0] sm:$0xf] %vm1232_vm1, %v5965_v55 }
 0x21f   :  { %1521 = vst.msk [vmem:[#allocation2 + $0xb4] sm:$0xf] %vm1477_vm2, %v1384_v17  ;;  %1520 = vst.msk [vmem:[#allocation2 + $0xb0] sm:$0xf] %vm1477_vm2, %v1382_v9 }
 0x220   :  { %v1017_v3 = vpop.permute.xlu1 %1016  ;;  %v1015_v26 = vpop.permute.xlu0 %1014  ;;  %v5505_v50 = vld [vmem:[#allocation2 + $0xa8] sm:$0xff]  }
 0x221   :  { %1158 = vst.msk [vmem:[#allocation2 + $0xcc] sm:$0xf] %vm1106_vm0, %v1017_v3  ;;  %1157 = vst.msk [vmem:[#allocation2 + $0xc8] sm:$0xf] %vm1106_vm0, %v1015_v26  ;;  %5328 = vmatmul.mubr.msk.bf16.gmra.mxu1 %vm1815_vm3, %v5505_v50 }
 0x222   :  { %1280 = vst.msk [vmem:[#allocation2 + $0xcc] sm:$0xf] %vm1232_vm1, %v6090_v42  ;;  %1279 = vst.msk [vmem:[#allocation2 + $0xc8] sm:$0xf] %vm1232_vm1, %v6088_v47 }
 0x224   :  { %v1392_v55 = vpop.permute.xlu1 %1391  ;;  %v1390_v56 = vpop.permute.xlu0 %1389 }
 0x226   :  { %v5506_v45 = vld [vmem:[#allocation2 + $0xb0] sm:$0xff]  }
 0x227   :  { %5331 = vmatprep.mubr.msk.bf16.mxu1 %vm1815_vm3, %v5506_v45 }
 0x228   :  { %v1388_v44 = vpop.permute.xlu1 %1387  ;;  %v1386_v48 = vpop.permute.xlu0 %1385 }
 0x229   :  { %1523 = vst.msk [vmem:[#allocation2 + $0xbc] sm:$0xf] %vm1477_vm2, %v1388_v44  ;;  %1522 = vst.msk [vmem:[#allocation2 + $0xb8] sm:$0xf] %vm1477_vm2, %v1386_v48 }
 0x22c   :  { %v1013_v51 = vpop.permute.xlu1 %1012  ;;  %v1011_v54 = vpop.permute.xlu0 %1010 }
 0x22d   :  { %1156 = vst.msk [vmem:[#allocation2 + $0xc4] sm:$0xf] %vm1106_vm0, %v1013_v51  ;;  %1155 = vst.msk [vmem:[#allocation2 + $0xc0] sm:$0xf] %vm1106_vm0, %v1011_v54 }
 0x22e   :  { %1278 = vst.msk [vmem:[#allocation2 + $0xc4] sm:$0xf] %vm1232_vm1, %v6013_v43  ;;  %1277 = vst.msk [vmem:[#allocation2 + $0xc0] sm:$0xf] %vm1232_vm1, %v6011_v53 }
 0x22f   :  { %1525 = vst.msk [vmem:[#allocation2 + $0xc4] sm:$0xf] %vm1477_vm2, %v1392_v55  ;;  %1524 = vst.msk [vmem:[#allocation2 + $0xc0] sm:$0xf] %vm1477_vm2, %v1390_v56 }
 0x230   :  { %v1025_v47 = vpop.permute.xlu1 %1024  ;;  %v1023_v42 = vpop.permute.xlu0 %1022  ;;  %v5507_v32 = vld [vmem:[#allocation2 + $0xb8] sm:$0xff]  }
 0x231   :  { %1162 = vst.msk [vmem:[#allocation2 + $0xdc] sm:$0xf] %vm1106_vm0, %v1025_v47  ;;  %1161 = vst.msk [vmem:[#allocation2 + $0xd8] sm:$0xf] %vm1106_vm0, %v1023_v42  ;;  %5332 = vmatmul.mubr.msk.bf16.gmra.mxu1 %vm1815_vm3, %v5507_v32 }
 0x232   :  { %1284 = vst.msk [vmem:[#allocation2 + $0xdc] sm:$0xf] %vm1232_vm1, %v6136_v62  ;;  %1283 = vst.msk [vmem:[#allocation2 + $0xd8] sm:$0xf] %vm1232_vm1, %v6134_v31 }
 0x234   :  { %v1400_v53 = vpop.permute.xlu1 %1399  ;;  %v1398_v43 = vpop.permute.xlu0 %1397 }
 0x236   :  { %v5508_v33 = vld [vmem:[#allocation2 + $0xc0] sm:$0xff]  }
 0x237   :  { %5335 = vmatprep.mubr.msk.bf16.mxu1 %vm1815_vm3, %v5508_v33 }
 0x238   :  { %v1396_v37 = vpop.permute.xlu1 %1395  ;;  %v1394_v39 = vpop.permute.xlu0 %1393 }
 0x239   :  { %1527 = vst.msk [vmem:[#allocation2 + $0xcc] sm:$0xf] %vm1477_vm2, %v1396_v37  ;;  %1526 = vst.msk [vmem:[#allocation2 + $0xc8] sm:$0xf] %vm1477_vm2, %v1394_v39 }
 0x23c   :  { %v1021_v57 = vpop.permute.xlu1 %1020  ;;  %v1019_v59 = vpop.permute.xlu0 %1018 }
 0x23d   :  { %1160 = vst.msk [vmem:[#allocation2 + $0xd4] sm:$0xf] %vm1106_vm0, %v1021_v57  ;;  %1159 = vst.msk [vmem:[#allocation2 + $0xd0] sm:$0xf] %vm1106_vm0, %v1019_v59 }
 0x23e   :  { %1282 = vst.msk [vmem:[#allocation2 + $0xd4] sm:$0xf] %vm1232_vm1, %v6059_v23  ;;  %1281 = vst.msk [vmem:[#allocation2 + $0xd0] sm:$0xf] %vm1232_vm1, %v6057_v8 }
 0x23f   :  { %1529 = vst.msk [vmem:[#allocation2 + $0xd4] sm:$0xf] %vm1477_vm2, %v1400_v53  ;;  %1528 = vst.msk [vmem:[#allocation2 + $0xd0] sm:$0xf] %vm1477_vm2, %v1398_v43 }
 0x240   :  { %v1033_v31 = vpop.permute.xlu1 %1032  ;;  %v1031_v62 = vpop.permute.xlu0 %1030  ;;  %v5509_v1 = vld [vmem:[#allocation2 + $0xc8] sm:$0xff]  }
 0x241   :  { %1166 = vst.msk [vmem:[#allocation2 + $0xec] sm:$0xf] %vm1106_vm0, %v1033_v31  ;;  %1165 = vst.msk [vmem:[#allocation2 + $0xe8] sm:$0xf] %vm1106_vm0, %v1031_v62  ;;  %5336 = vmatmul.mubr.msk.bf16.gmra.mxu1 %vm1815_vm3, %v5509_v1 }
 0x242   :  { %1288 = vst.msk [vmem:[#allocation2 + $0xec] sm:$0xf] %vm1232_vm1, %v6181_v22  ;;  %1287 = vst.msk [vmem:[#allocation2 + $0xe8] sm:$0xf] %vm1232_vm1, %v6179_v14 }
 0x244   :  { %v1408_v8 = vpop.permute.xlu1 %1407  ;;  %v1406_v23 = vpop.permute.xlu0 %1405 }
 0x245   :  { %v6342_v0 = vpop.f32.mrf.mxu0 }
 0x246   :  { %v5510_v63 = vld [vmem:[#allocation2 + $0xd0] sm:$0xff]   ;;  %2269 = vrot.lane.b32.xlu0 %v6342_v0, %s5570_s4 }
 0x247   :  { %5339 = vmatprep.mubr.msk.bf16.mxu1 %vm1815_vm3, %v5510_v63  ;;  %v6349_v14 = vpop.f32.mrf.mxu0 }
 0x248   :  { %v1404_v4 = vpop.permute.xlu1 %1403  ;;  %v1402_v27 = vpop.permute.xlu0 %1401 }
 0x249   :  { %1531 = vst.msk [vmem:[#allocation2 + $0xdc] sm:$0xf] %vm1477_vm2, %v1404_v4  ;;  %1530 = vst.msk [vmem:[#allocation2 + $0xd8] sm:$0xf] %vm1477_vm2, %v1402_v27  ;;  %v6351_v22 = vpop.f32.mrf.mxu0 }
 0x24a   :  { %2590 = vrot.lane.b32.xlu0 %v6342_v0, %s5566_s27  ;;  %2271 = vrot.lane.b32.xlu1 %v6351_v22, %s5570_s4 }
 0x24c   :  { %v1029_v28 = vpop.permute.xlu1 %1028  ;;  %v1027_v16 = vpop.permute.xlu0 %1026 }
 0x24d   :  { %1164 = vst.msk [vmem:[#allocation2 + $0xe4] sm:$0xf] %vm1106_vm0, %v1029_v28  ;;  %1163 = vst.msk [vmem:[#allocation2 + $0xe0] sm:$0xf] %vm1106_vm0, %v1027_v16 }
 0x24e   :  { %1286 = vst.msk [vmem:[#allocation2 + $0xe4] sm:$0xf] %vm1232_vm1, %v6105_v7  ;;  %1285 = vst.msk [vmem:[#allocation2 + $0xe0] sm:$0xf] %vm1232_vm1, %v6103_v24  ;;  %2265 = vrot.lane.b32.xlu0 %v6349_v14, %s5570_s4  ;;  %2592 = vrot.lane.b32.xlu1 %v6351_v22, %s5566_s27  ;;  %v6376_v24 = vpop.f32.mrf.mxu0 }
 0x24f   :  { %1533 = vst.msk [vmem:[#allocation2 + $0xe4] sm:$0xf] %vm1477_vm2, %v1408_v8  ;;  %1532 = vst.msk [vmem:[#allocation2 + $0xe0] sm:$0xf] %vm1477_vm2, %v1406_v23 }
 0x250   :  { %v1041_v11 = vpop.permute.xlu1 %1040  ;;  %v1039_v12 = vpop.permute.xlu0 %1038  ;;  %v5511_v13 = vld [vmem:[#allocation2 + $0xd8] sm:$0xff]  }
 0x251   :  { %1170 = vst.msk [vmem:[#allocation2 + $0xfc] sm:$0xf] %vm1106_vm0, %v1041_v11  ;;  %1169 = vst.msk [vmem:[#allocation2 + $0xf8] sm:$0xf] %vm1106_vm0, %v1039_v12  ;;  %5340 = vmatmul.mubr.msk.bf16.gmra.mxu1 %vm1815_vm3, %v5511_v13 }
 0x252   :  { %1292 = vst.msk [vmem:[#allocation2 + $0xfc] sm:$0xf] %vm1232_vm1, %v6207_v46  ;;  %1291 = vst.msk [vmem:[#allocation2 + $0xf8] sm:$0xf] %vm1232_vm1, %v6205_v2  ;;  %2586 = vrot.lane.b32.xlu0 %v6349_v14, %s5566_s27  ;;  %2267 = vrot.lane.b32.xlu1 %v6376_v24, %s5570_s4 }
 0x253   :  { %1542 = vst.msk [vmem:[#allocation2 + $0xfc] sm:$0xf] %vm1477_vm2, %v5569_v60  ;;  %1541 = vst.msk [vmem:[#allocation2 + $0xf8] sm:$0xf] %vm1477_vm2, %v5569_v60 }
 0x254   :  { %v1412_v7 = vpop.permute.xlu1 %1411  ;;  %v1410_v19 = vpop.permute.xlu0 %1409 }
 0x255   :  { %1535 = vst.msk [vmem:[#allocation2 + $0xec] sm:$0xf] %vm1477_vm2, %v1412_v7  ;;  %1534 = vst.msk [vmem:[#allocation2 + $0xe8] sm:$0xf] %vm1477_vm2, %v1410_v19  ;;  %v6388_v46 = vpop.f32.mrf.mxu0 }
 0x256   :  { %v5512_v2 = vld [vmem:[#allocation2 + $0xe0] sm:$0xff]   ;;  %2588 = vrot.lane.b32.xlu1 %v6376_v24, %s5566_s27  ;;  %2277 = vrot.lane.b32.xlu0 %v6388_v46, %s5570_s4 }
 0x257   :  { %v6396_v60 = vpop.f32.mrf.mxu0  ;;  %5343 = vmatprep.mubr.msk.bf16.mxu1 %vm1815_vm3, %v5512_v2 }
 0x258   :  { %v1037_v38 = vpop.permute.xlu1 %1036  ;;  %v1035_v61 = vpop.permute.xlu0 %1034 }
 0x259   :  { %1168 = vst.msk [vmem:[#allocation2 + $0xf4] sm:$0xf] %vm1106_vm0, %v1037_v38  ;;  %1167 = vst.msk [vmem:[#allocation2 + $0xf0] sm:$0xf] %vm1106_vm0, %v1035_v61  ;;  %v6403_v5 = vpop.f32.mrf.mxu0 }
 0x25a   :  { %1290 = vst.msk [vmem:[#allocation2 + $0xf4] sm:$0xf] %vm1232_vm1, %v6151_v40  ;;  %1289 = vst.msk [vmem:[#allocation2 + $0xf0] sm:$0xf] %vm1232_vm1, %v6149_v52  ;;  %2598 = vrot.lane.b32.xlu0 %v6388_v46, %s5566_s27  ;;  %2279 = vrot.lane.b32.xlu1 %v6403_v5, %s5570_s4  ;;  %v5516_v52 = vld [vmem:[%s7209_s3 + $0x8] sm:$0xff]   ;;  %v5515_v6 = vld [vmem:[#allocation2 + $0xf8] sm:$0xff]  }
 0x25b   :  { %5351 = vmatprep.subr.bf16.mxu1 %v5516_v52  ;;  %v6419_v40 = vpop.f32.mrf.mxu0 }
 0x25c   :  { %v1416_v35 = vpop.permute.xlu1 %1415  ;;  %v1414_v36 = vpop.permute.xlu0 %1413  ;;  %v5513_v15 = vld [vmem:[#allocation2 + $0xe8] sm:$0xff]   ;;  %5352 = vmatpush3.bf16.msra.mxu1 %v5516_v52 }
 0x25d   :  { %1537 = vst.msk [vmem:[#allocation2 + $0xf4] sm:$0xf] %vm1477_vm2, %v1416_v35  ;;  %1536 = vst.msk [vmem:[#allocation2 + $0xf0] sm:$0xf] %vm1477_vm2, %v1414_v36  ;;  %5344 = vmatmul.mubr.msk.bf16.gmra.mxu1 %vm1815_vm3, %v5513_v15  ;;  %5353 = vmatprep.subr.bf16.mxu1 %v5517_v29 }
 0x25e   :  { %2273 = vrot.lane.b32.xlu0 %v6396_v60, %s5570_s4  ;;  %2600 = vrot.lane.b32.xlu1 %v6403_v5, %s5566_s27 }
 0x260   :  { %5354 = vmatpush3.bf16.msra.mxu1 %v5517_v29 }
 0x262   :  { %2594 = vrot.lane.b32.xlu0 %v6396_v60, %s5566_s27  ;;  %2275 = vrot.lane.b32.xlu1 %v6419_v40, %s5570_s4 }
 0x264   :  { %v5514_v25 = vld [vmem:[#allocation2 + $0xf0] sm:$0xff]  }
 0x265   :  { %5347 = vmatprep.mubr.msk.bf16.mxu1 %vm1815_vm3, %v5514_v25  ;;  %v6429_v30 = vpop.f32.mrf.mxu0 }
 0x266   :  { %5348 = vmatmul.mubr.msk.bf16.gmra.mxu1 %vm1815_vm3, %v5515_v6  ;;  %2596 = vrot.lane.b32.xlu1 %v6419_v40, %s5566_s27 }
 0x267   :  { %2285 = vrot.lane.b32.xlu0 %v6429_v30, %s5570_s4  ;;  %v6436_v21 = vpop.f32.mrf.mxu0 }
 0x269   :  { %v6438_v10 = vpop.f32.mrf.mxu0 }
 0x26a   :  { %2287 = vrot.lane.b32.xlu1 %v6438_v10, %s5570_s4 }
 0x26b   :  { %2606 = vrot.lane.b32.xlu0 %v6429_v30, %s5566_s27  ;;  %v6448_v20 = vpop.f32.mrf.mxu0 }
 0x26e   :  { %2608 = vrot.lane.b32.xlu1 %v6438_v10, %s5566_s27 }
 0x26f   :  { %2281 = vrot.lane.b32.xlu0 %v6436_v21, %s5570_s4 }
 0x272   :  { %2283 = vrot.lane.b32.xlu1 %v6448_v20, %s5570_s4 }
 0x273   :  { %2602 = vrot.lane.b32.xlu0 %v6436_v21, %s5566_s27 }
 0x275   :  { %v6454_v17 = vpop.f32.mrf.mxu0 }
 0x276   :  { %2604 = vrot.lane.b32.xlu1 %v6448_v20, %s5566_s27 }
 0x277   :  { %2293 = vrot.lane.b32.xlu0 %v6454_v17, %s5570_s4  ;;  %v6460_v9 = vpop.f32.mrf.mxu0 }
 0x279   :  { %v6462_v34 = vpop.f32.mrf.mxu0 }
 0x27a   :  { %2295 = vrot.lane.b32.xlu1 %v6462_v34, %s5570_s4 }
 0x27b   :  { %2614 = vrot.lane.b32.xlu0 %v6454_v17, %s5566_s27  ;;  %v6472_v58 = vpop.f32.mrf.mxu0 }
 0x27e   :  { %2616 = vrot.lane.b32.xlu1 %v6462_v34, %s5566_s27 }
 0x27f   :  { %2289 = vrot.lane.b32.xlu0 %v6460_v9, %s5570_s4 }
 0x282   :  { %2291 = vrot.lane.b32.xlu1 %v6472_v58, %s5570_s4 }
 0x283   :  { %2610 = vrot.lane.b32.xlu0 %v6460_v9, %s5566_s27 }
 0x285   :  { %v6478_v18 = vpop.f32.mrf.mxu0 }
 0x286   :  { %2612 = vrot.lane.b32.xlu1 %v6472_v58, %s5566_s27 }
 0x287   :  { %2301 = vrot.lane.b32.xlu0 %v6478_v18, %s5570_s4  ;;  %v6484_v41 = vpop.f32.mrf.mxu0 }
 0x289   :  { %v6486_v49 = vpop.f32.mrf.mxu0 }
 0x28a   :  { %2303 = vrot.lane.b32.xlu1 %v6486_v49, %s5570_s4 }
 0x28b   :  { %2622 = vrot.lane.b32.xlu0 %v6478_v18, %s5566_s27  ;;  %v6496_v3 = vpop.f32.mrf.mxu0 }
 0x28e   :  { %2624 = vrot.lane.b32.xlu1 %v6486_v49, %s5566_s27 }
 0x28f   :  { %2297 = vrot.lane.b32.xlu0 %v6484_v41, %s5570_s4 }
 0x292   :  { %2299 = vrot.lane.b32.xlu1 %v6496_v3, %s5570_s4 }
 0x293   :  { %2618 = vrot.lane.b32.xlu0 %v6484_v41, %s5566_s27 }
 0x295   :  { %v6502_v26 = vpop.f32.mrf.mxu0 }
 0x296   :  { %2620 = vrot.lane.b32.xlu1 %v6496_v3, %s5566_s27 }
 0x297   :  { %2309 = vrot.lane.b32.xlu0 %v6502_v26, %s5570_s4  ;;  %v6508_v50 = vpop.f32.mrf.mxu0 }
 0x299   :  { %v6510_v55 = vpop.f32.mrf.mxu0 }
 0x29a   :  { %2311 = vrot.lane.b32.xlu1 %v6510_v55, %s5570_s4 }
 0x29b   :  { %2630 = vrot.lane.b32.xlu0 %v6502_v26, %s5566_s27  ;;  %v6520_v56 = vpop.f32.mrf.mxu0 }
 0x29e   :  { %2632 = vrot.lane.b32.xlu1 %v6510_v55, %s5566_s27 }
 0x29f   :  { %2305 = vrot.lane.b32.xlu0 %v6508_v50, %s5570_s4 }
 0x2a2   :  { %2307 = vrot.lane.b32.xlu1 %v6520_v56, %s5570_s4 }
 0x2a3   :  { %2626 = vrot.lane.b32.xlu0 %v6508_v50, %s5566_s27 }
 0x2a5   :  { %v6526_v45 = vpop.f32.mrf.mxu0 }
 0x2a6   :  { %2628 = vrot.lane.b32.xlu1 %v6520_v56, %s5566_s27 }
 0x2a7   :  { %2317 = vrot.lane.b32.xlu0 %v6526_v45, %s5570_s4  ;;  %v6532_v44 = vpop.f32.mrf.mxu0 }
 0x2a9   :  { %v6534_v48 = vpop.f32.mrf.mxu0 }
 0x2aa   :  { %2319 = vrot.lane.b32.xlu1 %v6534_v48, %s5570_s4 }
 0x2ab   :  { %2638 = vrot.lane.b32.xlu0 %v6526_v45, %s5566_s27  ;;  %v6544_v51 = vpop.f32.mrf.mxu0 }
 0x2ac   :  { %v6546_v54 = vpop.f32.mrf.mxu1 }
 0x2ae   :  { %2640 = vrot.lane.b32.xlu1 %v6534_v48, %s5566_s27  ;;  %v6552_v47 = vpop.f32.mrf.mxu1 }
 0x2af   :  { %2313 = vrot.lane.b32.xlu0 %v6532_v44, %s5570_s4 }
 0x2b0   :  { %v6558_v32 = vpop.f32.mrf.mxu1 }
 0x2b2   :  { %2315 = vrot.lane.b32.xlu1 %v6544_v51, %s5570_s4  ;;  %v6570_v33 = vpop.f32.mrf.mxu1 }
 0x2b3   :  { %2634 = vrot.lane.b32.xlu0 %v6532_v44, %s5566_s27 }
 0x2b6   :  { %2636 = vrot.lane.b32.xlu1 %v6544_v51, %s5566_s27 }
 0x2b7   :  { %2325 = vrot.lane.b32.xlu0 %v6546_v54, %s5570_s4 }
 0x2b8   :  { %v2270_v42 = vpop.permute.xlu0 %2269 }
 0x2b9   :  { %2460 = vst.msk [vmem:[#allocation3 + $0x19] sm:$0xff] %vm2457_vm4, %v2270_v42 }
 0x2ba   :  { %2327 = vrot.lane.b32.xlu1 %v6558_v32, %s5570_s4 }
 0x2bb   :  { %2646 = vrot.lane.b32.xlu0 %v6546_v54, %s5566_s27 }
 0x2bc   :  { %v2591_v53 = vpop.permute.xlu0 %2590  ;;  %v2272_v43 = vpop.permute.xlu1 %2271 }
 0x2bd   :  { %2461 = vst.msk [vmem:[#allocation3 + $0x21] sm:$0xff] %vm2457_vm4, %v2272_v43 }
 0x2be   :  { %2648 = vrot.lane.b32.xlu1 %v6558_v32, %s5566_s27 }
 0x2bf   :  { %2321 = vrot.lane.b32.xlu0 %v6552_v47, %s5570_s4 }
 0x2c0   :  { %v2524_v37 = vld [vmem:[#allocation3 + $0x18] sm:$0xff]  ;;  %v2266_v39 = vpop.permute.xlu0 %2265  ;;  %v2593_v57 = vpop.permute.xlu1 %2592 }
 0x2c1   :  { %v2780_v59 = vadd.f32 %v2591_v53, %v2524_v37  ;;  %2458 = vst.msk [vmem:[#allocation3 + $0x1] sm:$0xff] %vm2457_vm4, %v2266_v39  ;;  %v6573_v31 = vpop.f32.mrf.mxu1 }
 0x2c2   :  { %2323 = vrot.lane.b32.xlu1 %v6570_v33, %s5570_s4 }
 0x2c3   :  { %2642 = vrot.lane.b32.xlu0 %v6552_v47, %s5566_s27  ;;  %2844 = vst.msk [vmem:[#allocation3 + $0x18] sm:$0xff] %vm2457_vm4, %v2780_v59  ;;  %v6580_v63 = vpop.f32.mrf.mxu1 }
 0x2c4   :  { %v2525_v62 = vld [vmem:[#allocation3 + $0x20] sm:$0xff]  ;;  %v2587_v1 = vpop.permute.xlu0 %2586  ;;  %v2268_v8 = vpop.permute.xlu1 %2267 }
 0x2c5   :  { %v2781_v23 = vadd.f32 %v2593_v57, %v2525_v62  ;;  %2459 = vst.msk [vmem:[#allocation3 + $0x9] sm:$0xff] %vm2457_vm4, %v2268_v8  ;;  %v6588_v11 = vpop.f32.mrf.mxu1 }
 0x2c6   :  { %2644 = vrot.lane.b32.xlu1 %v6570_v33, %s5566_s27 }
 0x2c7   :  { %2333 = vrot.lane.b32.xlu0 %v6573_v31, %s5570_s4  ;;  %2845 = vst.msk [vmem:[#allocation3 + $0x20] sm:$0xff] %vm2457_vm4, %v2781_v23  ;;  %v6603_v36 = vpop.f32.mrf.mxu1 }
 0x2c8   :  { %v2522_v4 = vld [vmem:[#allocation3] sm:$0xff]  ;;  %v2589_v27 = vpop.permute.xlu1 %2588  ;;  %v2278_v28 = vpop.permute.xlu0 %2277 }
 0x2c9   :  { %v2778_v16 = vadd.f32 %v2587_v1, %v2522_v4  ;;  %2464 = vst.msk [vmem:[#allocation3 + $0x49] sm:$0xff] %vm2457_vm4, %v2278_v28 }
 0x2ca   :  { %2335 = vrot.lane.b32.xlu1 %v6588_v11, %s5570_s4 }
 0x2cb   :  { %2654 = vrot.lane.b32.xlu0 %v6573_v31, %s5566_s27  ;;  %2842 = vst.msk [vmem:[#allocation3] sm:$0xff] %vm2457_vm4, %v2778_v16 }
 0x2cc   :  { %v2523_v12 = vld [vmem:[#allocation3 + $0x8] sm:$0xff]  ;;  %v2599_v13 = vpop.permute.xlu0 %2598  ;;  %v2280_v7 = vpop.permute.xlu1 %2279 }
 0x2cd   :  { %v2779_v19 = vadd.f32 %v2589_v27, %v2523_v12  ;;  %2465 = vst.msk [vmem:[#allocation3 + $0x51] sm:$0xff] %vm2457_vm4, %v2280_v7 }
 0x2ce   :  { %v2908_v2 = vld [vmem:[#allocation3 + $0x1a] sm:$0xff]  ;;  %v2909_v38 = vld [vmem:[#allocation3 + $0x22] sm:$0xff]  ;;  %2656 = vrot.lane.b32.xlu1 %v6588_v11, %s5566_s27 }
 0x2cf   :  { %2329 = vrot.lane.b32.xlu0 %v6580_v63, %s5570_s4  ;;  %v2972_v61 = vadd.f32 %v6342_v0, %v2908_v2  ;;  %v2973_v35 = vadd.f32 %v6351_v22, %v2909_v38  ;;  %2843 = vst.msk [vmem:[#allocation3 + $0x8] sm:$0xff] %vm2457_vm4, %v2779_v19 }
 0x2d0   :  { %v2528_v15 = vld [vmem:[#allocation3 + $0x48] sm:$0xff]  ;;  %v2274_v52 = vpop.permute.xlu0 %2273  ;;  %v2601_v6 = vpop.permute.xlu1 %2600 }
 0x2d1   :  { %3036 = vst.msk [vmem:[#allocation3 + $0x1a] sm:$0xff] %vm2457_vm4, %v2972_v61  ;;  %3037 = vst.msk [vmem:[#allocation3 + $0x22] sm:$0xff] %vm2457_vm4, %v2973_v35  ;;  %v2784_v25 = vadd.f32 %v2599_v13, %v2528_v15  ;;  %v6609_v29 = vpop.f32.mrf.mxu1 }
 0x2d2   :  { %2462 = vst.msk [vmem:[#allocation3 + $0x31] sm:$0xff] %vm2457_vm4, %v2274_v52  ;;  %2331 = vrot.lane.b32.xlu1 %v6603_v36, %s5570_s4 }
 0x2d3   :  { %2650 = vrot.lane.b32.xlu0 %v6580_v63, %s5566_s27  ;;  %2848 = vst.msk [vmem:[#allocation3 + $0x48] sm:$0xff] %vm2457_vm4, %v2784_v25  ;;  %v6616_v43 = vpop.f32.mrf.mxu1 }
 0x2d4   :  { %v2529_v0 = vld [vmem:[#allocation3 + $0x50] sm:$0xff]  ;;  %v2595_v22 = vpop.permute.xlu0 %2594  ;;  %v2276_v42 = vpop.permute.xlu1 %2275 }
 0x2d5   :  { %v2785_v53 = vadd.f32 %v2601_v6, %v2529_v0  ;;  %2463 = vst.msk [vmem:[#allocation3 + $0x39] sm:$0xff] %vm2457_vm4, %v2276_v42  ;;  %v6628_v4 = vpop.f32.mrf.mxu1 }
 0x2d6   :  { %v2906_v37 = vld [vmem:[#allocation3 + $0x2] sm:$0xff]  ;;  %v2907_v39 = vld [vmem:[#allocation3 + $0xa] sm:$0xff]  ;;  %2652 = vrot.lane.b32.xlu1 %v6603_v36, %s5566_s27 }
 0x2d7   :  { %2341 = vrot.lane.b32.xlu0 %v6609_v29, %s5570_s4  ;;  %v2970_v57 = vadd.f32 %v2906_v37, %v6349_v14  ;;  %v2971_v59 = vadd.f32 %v2907_v39, %v6376_v24  ;;  %2849 = vst.msk [vmem:[#allocation3 + $0x50] sm:$0xff] %vm2457_vm4, %v2785_v53  ;;  %v6639_v14 = vld [vmem:[%s7211_s5] ss:$0 sm:$0xff]  ;;  %v6650_v15 = vpop.f32.mrf.mxu1 }
 0x2d8   :  { %v2597_v1 = vpop.permute.xlu1 %2596  ;;  %v3100_v24 = vld [vmem:[#allocation3 + $0x19] sm:$0xff]  ;;  %v3101_v27 = vld [vmem:[#allocation3 + $0x21] sm:$0xff] }
 0x2d9   :  { %v2526_v62 = vld [vmem:[#allocation3 + $0x30] sm:$0xff]  ;;  %v2286_v8 = vpop.permute.xlu0 %2285  ;;  %3034 = vst.msk [vmem:[#allocation3 + $0x2] sm:$0xff] %vm2457_vm4, %v2970_v57  ;;  %3035 = vst.msk [vmem:[#allocation3 + $0xa] sm:$0xff] %vm2457_vm4, %v2971_v59  ;;  %v3171_v2 = vadd.f32 %v6639_v14, %v3100_v24  ;;  %v3172_v38 = vadd.f32 %v6639_v14, %v3101_v27 }
 0x2da   :  { %v2782_v23 = vadd.f32 %v2595_v22, %v2526_v62  ;;  %2468 = vst.msk [vmem:[#allocation3 + $0x79] sm:$0xff] %vm2457_vm4, %v2286_v8  ;;  %2343 = vrot.lane.b32.xlu1 %v6628_v4, %s5570_s4 }
 0x2db   :  { %2662 = vrot.lane.b32.xlu0 %v6609_v29, %s5566_s27  ;;  %v3235_v37 = vmax.f32 %v3171_v2, 0.0  ;;  %v3236_v39 = vmax.f32 %v3172_v38, 0.0 }
 0x2dc   :  { %2846 = vst.msk [vmem:[#allocation3 + $0x30] sm:$0xff] %vm2457_vm4, %v2782_v23  ;;  %v2527_v28 = vld [vmem:[#allocation3 + $0x38] sm:$0xff]  ;;  %v2288_v12 = vpop.permute.xlu1 %2287 }
 0x2dd   :  { %v2607_v16 = vpop.permute.xlu0 %2606  ;;  %v2783_v13 = vadd.f32 %v2597_v1, %v2527_v28  ;;  %2469 = vst.msk [vmem:[#allocation3 + $0x81] sm:$0xff] %vm2457_vm4, %v2288_v12  ;;  %v3298_v12 = vpack.c.bf16 %v3236_v39, %v3235_v37 }
 0x2de   :  { %v2912_v7 = vld [vmem:[#allocation3 + $0x4a] sm:$0xff]  ;;  %v2913_v19 = vld [vmem:[#allocation3 + $0x52] sm:$0xff]  ;;  %2664 = vrot.lane.b32.xlu1 %v6628_v4, %s5566_s27 }
 0x2df   :  { %2337 = vrot.lane.b32.xlu0 %v6616_v43, %s5570_s4  ;;  %v2976_v61 = vadd.f32 %v6388_v46, %v2912_v7  ;;  %v2977_v35 = vadd.f32 %v6403_v5, %v2913_v19  ;;  %2847 = vst.msk [vmem:[#allocation3 + $0x38] sm:$0xff] %vm2457_vm4, %v2783_v13 }
 0x2e0   :  { %v2609_v25 = vpop.permute.xlu1 %2608  ;;  %v3098_v0 = vld [vmem:[#allocation3 + $0x1] sm:$0xff]  ;;  %v3099_v22 = vld [vmem:[#allocation3 + $0x9] sm:$0xff] }
 0x2e1   :  { %v2532_v52 = vld [vmem:[#allocation3 + $0x78] sm:$0xff]  ;;  %v2282_v6 = vpop.permute.xlu0 %2281  ;;  %3040 = vst.msk [vmem:[#allocation3 + $0x4a] sm:$0xff] %vm2457_vm4, %v2976_v61  ;;  %3041 = vst.msk [vmem:[#allocation3 + $0x52] sm:$0xff] %vm2457_vm4, %v2977_v35  ;;  %v6656_v53 = vpop.f32.mrf.mxu1  ;;  %v3169_v46 = vadd.f32 %v6639_v14, %v3098_v0  ;;  %v3170_v5 = vadd.f32 %v6639_v14, %v3099_v22 }
 0x2e2   :  { %v2788_v42 = vadd.f32 %v2607_v16, %v2532_v52  ;;  %2466 = vst.msk [vmem:[#allocation3 + $0x61] sm:$0xff] %vm2457_vm4, %v2282_v6  ;;  %2339 = vrot.lane.b32.xlu1 %v6650_v15, %s5570_s4 }
 0x2e3   :  { %2658 = vrot.lane.b32.xlu0 %v6616_v43, %s5566_s27  ;;  %v3233_v57 = vmax.f32 %v3169_v46, 0.0  ;;  %v3234_v59 = vmax.f32 %v3170_v5, 0.0  ;;  %v6665_v24 = vpop.f32.mrf.mxu1 }
 0x2e4   :  { %2852 = vst.msk [vmem:[#allocation3 + $0x78] sm:$0xff] %vm2457_vm4, %v2788_v42  ;;  %v2533_v62 = vld [vmem:[#allocation3 + $0x80] sm:$0xff]  ;;  %v2284_v8 = vpop.permute.xlu1 %2283 }
 0x2e5   :  { %v2603_v1 = vpop.permute.xlu0 %2602  ;;  %v2789_v23 = vadd.f32 %v2609_v25, %v2533_v62  ;;  %2467 = vst.msk [vmem:[#allocation3 + $0x69] sm:$0xff] %vm2457_vm4, %v2284_v8  ;;  %v3297_v27 = vpack.c.bf16 %v3234_v59, %v3233_v57  ;;  %v6679_v35 = vpop.f32.mrf.mxu1 }
 0x2e6   :  { %v2910_v28 = vld [vmem:[#allocation3 + $0x32] sm:$0xff]  ;;  %v2911_v16 = vld [vmem:[#allocation3 + $0x3a] sm:$0xff]  ;;  %2660 = vrot.lane.b32.xlu1 %v6650_v15, %s5566_s27 }
 0x2e7   :  { %2349 = vrot.lane.b32.xlu0 %v6656_v53, %s5570_s4  ;;  %v2974_v13 = vadd.f32 %v2910_v28, %v6396_v60  ;;  %v2975_v7 = vadd.f32 %v2911_v16, %v6419_v40  ;;  %2853 = vst.msk [vmem:[#allocation3 + $0x80] sm:$0xff] %vm2457_vm4, %v2789_v23  ;;  %5355 = vmatprep.mubr.msk.bf16.mxu1 %vm2457_vm4, %v3297_v27  ;;  %v6696_v57 = vpop.f32.mrf.mxu1 }
 0x2e8   :  { %5356 = vmatmul.mubr.msk.bf16.vlgmr.msra.gmra.mxu1 %vm2457_vm4, %v3298_v12  ;;  %v2605_v2 = vpop.permute.xlu1 %2604  ;;  %v3104_v60 = vld [vmem:[#allocation3 + $0x49] sm:$0xff]  ;;  %v3105_v40 = vld [vmem:[#allocation3 + $0x51] sm:$0xff] }
 0x2e9   :  { %v2530_v19 = vld [vmem:[#allocation3 + $0x60] sm:$0xff]  ;;  %v2294_v38 = vpop.permute.xlu0 %2293  ;;  %3038 = vst.msk [vmem:[#allocation3 + $0x32] sm:$0xff] %vm2457_vm4, %v2974_v13  ;;  %3039 = vst.msk [vmem:[#allocation3 + $0x3a] sm:$0xff] %vm2457_vm4, %v2975_v7  ;;  %v3175_v46 = vadd.f32 %v6639_v14, %v3104_v60  ;;  %v3176_v5 = vadd.f32 %v6639_v14, %v3105_v40 }
 0x2ea   :  { %v2786_v61 = vadd.f32 %v2603_v1, %v2530_v19  ;;  %2472 = vst.msk [vmem:[#allocation3 + $0xa9] sm:$0xff] %vm2457_vm4, %v2294_v38  ;;  %2351 = vrot.lane.b32.xlu1 %v6679_v35, %s5570_s4 }
 0x2eb   :  { %2670 = vrot.lane.b32.xlu0 %v6656_v53, %s5566_s27  ;;  %v3239_v16 = vmax.f32 %v3175_v46, 0.0  ;;  %v3240_v12 = vmax.f32 %v3176_v5, 0.0 }
 0x2ec   :  { %2850 = vst.msk [vmem:[#allocation3 + $0x60] sm:$0xff] %vm2457_vm4, %v2786_v61  ;;  %v2531_v52 = vld [vmem:[#allocation3 + $0x68] sm:$0xff]  ;;  %v2296_v25 = vpop.permute.xlu1 %2295 }
 0x2ed   :  { %v2615_v6 = vpop.permute.xlu0 %2614  ;;  %v2787_v0 = vadd.f32 %v2605_v2, %v2531_v52  ;;  %2473 = vst.msk [vmem:[#allocation3 + $0xb1] sm:$0xff] %vm2457_vm4, %v2296_v25  ;;  %v3300_v25 = vpack.c.bf16 %v3240_v12, %v3239_v16 }
 0x2ee   :  { %v2916_v22 = vld [vmem:[#allocation3 + $0x7a] sm:$0xff]  ;;  %v2917_v42 = vld [vmem:[#allocation3 + $0x82] sm:$0xff]  ;;  %2672 = vrot.lane.b32.xlu1 %v6679_v35, %s5566_s27 }
 0x2ef   :  { %2345 = vrot.lane.b32.xlu0 %v6665_v24, %s5570_s4  ;;  %v2980_v37 = vadd.f32 %v6429_v30, %v2916_v22  ;;  %v2981_v39 = vadd.f32 %v6438_v10, %v2917_v42  ;;  %2851 = vst.msk [vmem:[#allocation3 + $0x68] sm:$0xff] %vm2457_vm4, %v2787_v0 }
 0x2f0   :  { %v2617_v1 = vpop.permute.xlu1 %2616  ;;  %v3102_v8 = vld [vmem:[#allocation3 + $0x31] sm:$0xff]  ;;  %v3103_v23 = vld [vmem:[#allocation3 + $0x39] sm:$0xff] }
 0x2f1   :  { %v2536_v59 = vld [vmem:[#allocation3 + $0xa8] sm:$0xff]  ;;  %v2290_v62 = vpop.permute.xlu0 %2289  ;;  %3044 = vst.msk [vmem:[#allocation3 + $0x7a] sm:$0xff] %vm2457_vm4, %v2980_v37  ;;  %3045 = vst.msk [vmem:[#allocation3 + $0x82] sm:$0xff] %vm2457_vm4, %v2981_v39  ;;  %v6702_v28 = vpop.f32.mrf.mxu1  ;;  %v3173_v30 = vadd.f32 %v6639_v14, %v3102_v8  ;;  %v3174_v10 = vadd.f32 %v6639_v14, %v3103_v23 }
 0x2f2   :  { %v2792_v27 = vadd.f32 %v2615_v6, %v2536_v59  ;;  %2470 = vst.msk [vmem:[#allocation3 + $0x91] sm:$0xff] %vm2457_vm4, %v2290_v62  ;;  %2347 = vrot.lane.b32.xlu1 %v6696_v57, %s5570_s4 }
 0x2f3   :  { %2666 = vrot.lane.b32.xlu0 %v6665_v24, %s5566_s27  ;;  %v3237_v13 = vmax.f32 %v3173_v30, 0.0  ;;  %v3238_v7 = vmax.f32 %v3174_v10, 0.0  ;;  %v6711_v60 = vpop.f32.mrf.mxu1 }
 0x2f4   :  { %2856 = vst.msk [vmem:[#allocation3 + $0xa8] sm:$0xff] %vm2457_vm4, %v2792_v27  ;;  %v2537_v19 = vld [vmem:[#allocation3 + $0xb0] sm:$0xff]  ;;  %v2292_v38 = vpop.permute.xlu1 %2291 }
 0x2f5   :  { %v2611_v2 = vpop.permute.xlu0 %2610  ;;  %v2793_v61 = vadd.f32 %v2617_v1, %v2537_v19  ;;  %2471 = vst.msk [vmem:[#allocation3 + $0x99] sm:$0xff] %vm2457_vm4, %v2292_v38  ;;  %v3299_v40 = vpack.c.bf16 %v3238_v7, %v3237_v13  ;;  %v6725_v39 = vpop.f32.mrf.mxu1 }
 0x2f6   :  { %v2914_v52 = vld [vmem:[#allocation3 + $0x62] sm:$0xff]  ;;  %v2915_v6 = vld [vmem:[#allocation3 + $0x6a] sm:$0xff]  ;;  %2668 = vrot.lane.b32.xlu1 %v6696_v57, %s5566_s27 }
 0x2f7   :  { %2357 = vrot.lane.b32.xlu0 %v6702_v28, %s5570_s4  ;;  %v2978_v0 = vadd.f32 %v2914_v52, %v6436_v21  ;;  %v2979_v22 = vadd.f32 %v2915_v6, %v6448_v20  ;;  %2857 = vst.msk [vmem:[#allocation3 + $0xb0] sm:$0xff] %vm2457_vm4, %v2793_v61  ;;  %5359 = vmatprep.mubr.msk.bf16.mxu1 %vm2457_vm4, %v3299_v40  ;;  %v6742_v13 = vpop.f32.mrf.mxu1 }
 0x2f8   :  { %5360 = vmatmul.mubr.msk.bf16.gmra.mxu1 %vm2457_vm4, %v3300_v25  ;;  %v2613_v46 = vpop.permute.xlu1 %2612  ;;  %v3108_v21 = vld [vmem:[#allocation3 + $0x79] sm:$0xff]  ;;  %v3109_v20 = vld [vmem:[#allocation3 + $0x81] sm:$0xff] }
 0x2f9   :  { %v2534_v42 = vld [vmem:[#allocation3 + $0x90] sm:$0xff]  ;;  %v2302_v5 = vpop.permute.xlu0 %2301  ;;  %3042 = vst.msk [vmem:[#allocation3 + $0x62] sm:$0xff] %vm2457_vm4, %v2978_v0  ;;  %3043 = vst.msk [vmem:[#allocation3 + $0x6a] sm:$0xff] %vm2457_vm4, %v2979_v22  ;;  %v3179_v30 = vadd.f32 %v6639_v14, %v3108_v21  ;;  %v3180_v10 = vadd.f32 %v6639_v14, %v3109_v20 }
 0x2fa   :  { %v2790_v37 = vadd.f32 %v2611_v2, %v2534_v42  ;;  %2476 = vst.msk [vmem:[#allocation3 + $0xd9] sm:$0xff] %vm2457_vm4, %v2302_v5  ;;  %2359 = vrot.lane.b32.xlu1 %v6725_v39, %s5570_s4 }
 0x2fb   :  { %2678 = vrot.lane.b32.xlu0 %v6702_v28, %s5566_s27  ;;  %v3243_v6 = vmax.f32 %v3179_v30, 0.0  ;;  %v3244_v25 = vmax.f32 %v3180_v10, 0.0 }
 0x2fc   :  { %2854 = vst.msk [vmem:[#allocation3 + $0x90] sm:$0xff] %vm2457_vm4, %v2790_v37  ;;  %v2535_v59 = vld [vmem:[#allocation3 + $0x98] sm:$0xff]  ;;  %v2304_v1 = vpop.permute.xlu1 %2303 }
 0x2fd   :  { %v2623_v62 = vpop.permute.xlu0 %2622  ;;  %v2791_v8 = vadd.f32 %v2613_v46, %v2535_v59  ;;  %2477 = vst.msk [vmem:[#allocation3 + $0xe1] sm:$0xff] %vm2457_vm4, %v2304_v1  ;;  %v3302_v1 = vpack.c.bf16 %v3244_v25, %v3243_v6 }
 0x2fe   :  { %v2920_v23 = vld [vmem:[#allocation3 + $0xaa] sm:$0xff]  ;;  %v2921_v27 = vld [vmem:[#allocation3 + $0xb2] sm:$0xff]  ;;  %2680 = vrot.lane.b32.xlu1 %v6725_v39, %s5566_s27 }
 0x2ff   :  { %2353 = vrot.lane.b32.xlu0 %v6711_v60, %s5570_s4  ;;  %v2984_v16 = vadd.f32 %v6454_v17, %v2920_v23  ;;  %v2985_v12 = vadd.f32 %v6462_v34, %v2921_v27  ;;  %2855 = vst.msk [vmem:[#allocation3 + $0x98] sm:$0xff] %vm2457_vm4, %v2791_v8 }
 0x300   :  { %v2625_v2 = vpop.permute.xlu1 %2624  ;;  %v3106_v38 = vld [vmem:[#allocation3 + $0x61] sm:$0xff]  ;;  %v3107_v61 = vld [vmem:[#allocation3 + $0x69] sm:$0xff] }
 0x301   :  { %v2540_v7 = vld [vmem:[#allocation3 + $0xd8] sm:$0xff]  ;;  %v2298_v19 = vpop.permute.xlu0 %2297  ;;  %3048 = vst.msk [vmem:[#allocation3 + $0xaa] sm:$0xff] %vm2457_vm4, %v2984_v16  ;;  %3049 = vst.msk [vmem:[#allocation3 + $0xb2] sm:$0xff] %vm2457_vm4, %v2985_v12  ;;  %v6748_v52 = vpop.f32.mrf.mxu1  ;;  %v3177_v17 = vadd.f32 %v6639_v14, %v3106_v38  ;;  %v3178_v34 = vadd.f32 %v6639_v14, %v3107_v61 }
 0x302   :  { %v2796_v40 = vadd.f32 %v2623_v62, %v2540_v7  ;;  %2474 = vst.msk [vmem:[#allocation3 + $0xc1] sm:$0xff] %vm2457_vm4, %v2298_v19  ;;  %2355 = vrot.lane.b32.xlu1 %v6742_v13, %s5570_s4 }
 0x303   :  { %2674 = vrot.lane.b32.xlu0 %v6711_v60, %s5566_s27  ;;  %v3241_v0 = vmax.f32 %v3177_v17, 0.0  ;;  %v3242_v22 = vmax.f32 %v3178_v34, 0.0  ;;  %v6757_v21 = vpop.f32.mrf.mxu1 }
 0x304   :  { %2860 = vst.msk [vmem:[#allocation3 + $0xd8] sm:$0xff] %vm2457_vm4, %v2796_v40  ;;  %v2541_v42 = vld [vmem:[#allocation3 + $0xe0] sm:$0xff]  ;;  %v2300_v5 = vpop.permute.xlu1 %2299 }
 0x305   :  { %v2619_v46 = vpop.permute.xlu0 %2618  ;;  %v2797_v37 = vadd.f32 %v2625_v2, %v2541_v42  ;;  %2475 = vst.msk [vmem:[#allocation3 + $0xc9] sm:$0xff] %vm2457_vm4, %v2300_v5  ;;  %v3301_v20 = vpack.c.bf16 %v3242_v22, %v3241_v0  ;;  %v6771_v12 = vpop.f32.mrf.mxu1 }
 0x306   :  { %v2918_v59 = vld [vmem:[#allocation3 + $0x92] sm:$0xff]  ;;  %v2919_v62 = vld [vmem:[#allocation3 + $0x9a] sm:$0xff]  ;;  %2676 = vrot.lane.b32.xlu1 %v6742_v13, %s5566_s27 }
 0x307   :  { %2365 = vrot.lane.b32.xlu0 %v6748_v52, %s5570_s4  ;;  %v2982_v8 = vadd.f32 %v2918_v59, %v6460_v9  ;;  %v2983_v23 = vadd.f32 %v2919_v62, %v6472_v58  ;;  %2861 = vst.msk [vmem:[#allocation3 + $0xe0] sm:$0xff] %vm2457_vm4, %v2797_v37  ;;  %5363 = vmatprep.mubr.msk.bf16.mxu1 %vm2457_vm4, %v3301_v20  ;;  %v6788_v0 = vpop.f32.mrf.mxu1 }
 0x308   :  { %5364 = vmatmul.mubr.msk.bf16.gmra.mxu1 %vm2457_vm4, %v3302_v1  ;;  %v2621_v30 = vpop.permute.xlu1 %2620  ;;  %v3112_v9 = vld [vmem:[#allocation3 + $0xa9] sm:$0xff]  ;;  %v3113_v58 = vld [vmem:[#allocation3 + $0xb1] sm:$0xff] }
 0x309   :  { %v2538_v27 = vld [vmem:[#allocation3 + $0xc0] sm:$0xff]  ;;  %v2310_v10 = vpop.permute.xlu0 %2309  ;;  %3046 = vst.msk [vmem:[#allocation3 + $0x92] sm:$0xff] %vm2457_vm4, %v2982_v8  ;;  %3047 = vst.msk [vmem:[#allocation3 + $0x9a] sm:$0xff] %vm2457_vm4, %v2983_v23  ;;  %v3183_v17 = vadd.f32 %v6639_v14, %v3112_v9  ;;  %v3184_v34 = vadd.f32 %v6639_v14, %v3113_v58 }
 0x30a   :  { %v2794_v16 = vadd.f32 %v2619_v46, %v2538_v27  ;;  %2480 = vst.msk [vmem:[#allocation3 + $0x109] sm:$0xff] %vm2457_vm4, %v2310_v10  ;;  %2367 = vrot.lane.b32.xlu1 %v6771_v12, %s5570_s4 }
 0x30b   :  { %2686 = vrot.lane.b32.xlu0 %v6748_v52, %s5566_s27  ;;  %v3247_v62 = vmax.f32 %v3183_v17, 0.0  ;;  %v3248_v1 = vmax.f32 %v3184_v34, 0.0 }
 0x30c   :  { %2858 = vst.msk [vmem:[#allocation3 + $0xc0] sm:$0xff] %vm2457_vm4, %v2794_v16  ;;  %v2539_v7 = vld [vmem:[#allocation3 + $0xc8] sm:$0xff]  ;;  %v2312_v2 = vpop.permute.xlu1 %2311 }
 0x30d   :  { %v2631_v19 = vpop.permute.xlu0 %2630  ;;  %v2795_v38 = vadd.f32 %v2621_v30, %v2539_v7  ;;  %2481 = vst.msk [vmem:[#allocation3 + $0x111] sm:$0xff] %vm2457_vm4, %v2312_v2  ;;  %v3304_v2 = vpack.c.bf16 %v3248_v1, %v3247_v62 }
 0x30e   :  { %v2924_v61 = vld [vmem:[#allocation3 + $0xda] sm:$0xff]  ;;  %v2925_v40 = vld [vmem:[#allocation3 + $0xe2] sm:$0xff]  ;;  %2688 = vrot.lane.b32.xlu1 %v6771_v12, %s5566_s27 }
 0x30f   :  { %2361 = vrot.lane.b32.xlu0 %v6757_v21, %s5570_s4  ;;  %v2988_v6 = vadd.f32 %v6478_v18, %v2924_v61  ;;  %v2989_v25 = vadd.f32 %v6486_v49, %v2925_v40  ;;  %2859 = vst.msk [vmem:[#allocation3 + $0xc8] sm:$0xff] %vm2457_vm4, %v2795_v38 }
 0x310   :  { %v2633_v46 = vpop.permute.xlu1 %2632  ;;  %v3110_v5 = vld [vmem:[#allocation3 + $0x91] sm:$0xff]  ;;  %v3111_v37 = vld [vmem:[#allocation3 + $0x99] sm:$0xff] }
 0x311   :  { %v2544_v22 = vld [vmem:[#allocation3 + $0x108] sm:$0xff]  ;;  %v2306_v42 = vpop.permute.xlu0 %2305  ;;  %3052 = vst.msk [vmem:[#allocation3 + $0xda] sm:$0xff] %vm2457_vm4, %v2988_v6  ;;  %3053 = vst.msk [vmem:[#allocation3 + $0xe2] sm:$0xff] %vm2457_vm4, %v2989_v25  ;;  %v6794_v59 = vpop.f32.mrf.mxu1  ;;  %v3181_v18 = vadd.f32 %v6639_v14, %v3110_v5  ;;  %v3182_v49 = vadd.f32 %v6639_v14, %v3111_v37 }
 0x312   :  { %v2800_v20 = vadd.f32 %v2631_v19, %v2544_v22  ;;  %2478 = vst.msk [vmem:[#allocation3 + $0xf1] sm:$0xff] %vm2457_vm4, %v2306_v42  ;;  %2363 = vrot.lane.b32.xlu1 %v6788_v0, %s5570_s4 }
 0x313   :  { %2682 = vrot.lane.b32.xlu0 %v6757_v21, %s5566_s27  ;;  %v3245_v8 = vmax.f32 %v3181_v18, 0.0  ;;  %v3246_v23 = vmax.f32 %v3182_v49, 0.0  ;;  %v6803_v9 = vpop.f32.mrf.mxu1 }
 0x314   :  { %2864 = vst.msk [vmem:[#allocation3 + $0x108] sm:$0xff] %vm2457_vm4, %v2800_v20  ;;  %v2545_v27 = vld [vmem:[#allocation3 + $0x110] sm:$0xff]  ;;  %v2308_v10 = vpop.permute.xlu1 %2307 }
 0x315   :  { %v2627_v30 = vpop.permute.xlu0 %2626  ;;  %v2801_v16 = vadd.f32 %v2633_v46, %v2545_v27  ;;  %2479 = vst.msk [vmem:[#allocation3 + $0xf9] sm:$0xff] %vm2457_vm4, %v2308_v10  ;;  %v3303_v58 = vpack.c.bf16 %v3246_v23, %v3245_v8  ;;  %v6817_v25 = vpop.f32.mrf.mxu1 }
 0x316   :  { %v2922_v7 = vld [vmem:[#allocation3 + $0xc2] sm:$0xff]  ;;  %v2923_v19 = vld [vmem:[#allocation3 + $0xca] sm:$0xff]  ;;  %2684 = vrot.lane.b32.xlu1 %v6788_v0, %s5566_s27 }
 0x317   :  { %2373 = vrot.lane.b32.xlu0 %v6794_v59, %s5570_s4  ;;  %v2986_v38 = vadd.f32 %v2922_v7, %v6484_v41  ;;  %v2987_v61 = vadd.f32 %v2923_v19, %v6496_v3  ;;  %2865 = vst.msk [vmem:[#allocation3 + $0x110] sm:$0xff] %vm2457_vm4, %v2801_v16  ;;  %5367 = vmatprep.mubr.msk.bf16.mxu1 %vm2457_vm4, %v3303_v58  ;;  %v6825_v5 = vpop.f32.mrf.mxu1 }
 0x318   :  { %5368 = vmatmul.mubr.msk.bf16.gmra.mxu1 %vm2457_vm4, %v3304_v2  ;;  %v2629_v17 = vpop.permute.xlu1 %2628  ;;  %v3116_v41 = vld [vmem:[#allocation3 + $0xd9] sm:$0xff]  ;;  %v3117_v3 = vld [vmem:[#allocation3 + $0xe1] sm:$0xff] }
 0x319   :  { %v2542_v40 = vld [vmem:[#allocation3 + $0xf0] sm:$0xff]  ;;  %v2318_v34 = vpop.permute.xlu0 %2317  ;;  %3050 = vst.msk [vmem:[#allocation3 + $0xc2] sm:$0xff] %vm2457_vm4, %v2986_v38  ;;  %3051 = vst.msk [vmem:[#allocation3 + $0xca] sm:$0xff] %vm2457_vm4, %v2987_v61  ;;  %v3187_v49 = vadd.f32 %v6639_v14, %v3116_v41  ;;  %v3188_v62 = vadd.f32 %v6639_v14, %v3117_v3 }
 0x31a   :  { %v2798_v6 = vadd.f32 %v2627_v30, %v2542_v40  ;;  %2484 = vst.msk [vmem:[#allocation3 + $0x139] sm:$0xff] %vm2457_vm4, %v2318_v34  ;;  %2375 = vrot.lane.b32.xlu1 %v6817_v25, %s5570_s4 }
 0x31b   :  { %2694 = vrot.lane.b32.xlu0 %v6794_v59, %s5566_s27  ;;  %v3251_v19 = vmax.f32 %v3187_v49, 0.0  ;;  %v3252_v2 = vmax.f32 %v3188_v62, 0.0 }
 0x31c   :  { %2862 = vst.msk [vmem:[#allocation3 + $0xf0] sm:$0xff] %vm2457_vm4, %v2798_v6  ;;  %v2543_v22 = vld [vmem:[#allocation3 + $0xf8] sm:$0xff]  ;;  %v2320_v46 = vpop.permute.xlu1 %2319 }
 0x31d   :  { %v2639_v42 = vpop.permute.xlu0 %2638  ;;  %v2799_v37 = vadd.f32 %v2629_v17, %v2543_v22  ;;  %2485 = vst.msk [vmem:[#allocation3 + $0x141] sm:$0xff] %vm2457_vm4, %v2320_v46  ;;  %v6837_v23 = vpop.f32.mrf.mxu1  ;;  %v3306_v46 = vpack.c.bf16 %v3252_v2, %v3251_v19 }
 0x31e   :  { %v2928_v20 = vld [vmem:[#allocation3 + $0x10a] sm:$0xff]  ;;  %v2929_v18 = vld [vmem:[#allocation3 + $0x112] sm:$0xff]  ;;  %2696 = vrot.lane.b32.xlu1 %v6817_v25, %s5566_s27 }
 0x31f   :  { %2369 = vrot.lane.b32.xlu0 %v6803_v9, %s5570_s4  ;;  %v2992_v1 = vadd.f32 %v6502_v26, %v2928_v20  ;;  %v2993_v8 = vadd.f32 %v6510_v55, %v2929_v18  ;;  %2863 = vst.msk [vmem:[#allocation3 + $0xf8] sm:$0xff] %vm2457_vm4, %v2799_v37  ;;  %v6849_v38 = vpop.f32.mrf.mxu1 }
 0x320   :  { %v2641_v10 = vpop.permute.xlu1 %2640  ;;  %v3114_v16 = vld [vmem:[#allocation3 + $0xc1] sm:$0xff]  ;;  %v3115_v58 = vld [vmem:[#allocation3 + $0xc9] sm:$0xff] }
 0x321   :  { %v2548_v27 = vld [vmem:[#allocation3 + $0x138] sm:$0xff]  ;;  %v2314_v30 = vpop.permute.xlu0 %2313  ;;  %3056 = vst.msk [vmem:[#allocation3 + $0x10a] sm:$0xff] %vm2457_vm4, %v2992_v1  ;;  %3057 = vst.msk [vmem:[#allocation3 + $0x112] sm:$0xff] %vm2457_vm4, %v2993_v8  ;;  %v3185_v26 = vadd.f32 %v6639_v14, %v3114_v16  ;;  %v3186_v55 = vadd.f32 %v6639_v14, %v3115_v58  ;;  %v6859_v18 = vpop.f32.mrf.mxu1 }
 0x322   :  { %v2804_v7 = vadd.f32 %v2639_v42, %v2548_v27  ;;  %2482 = vst.msk [vmem:[#allocation3 + $0x121] sm:$0xff] %vm2457_vm4, %v2314_v30  ;;  %2371 = vrot.lane.b32.xlu1 %v6825_v5, %s5570_s4 }
 0x323   :  { %2690 = vrot.lane.b32.xlu0 %v6803_v9, %s5566_s27  ;;  %v3249_v61 = vmax.f32 %v3185_v26, 0.0  ;;  %v3250_v40 = vmax.f32 %v3186_v55, 0.0 }
 0x324   :  { %2868 = vst.msk [vmem:[#allocation3 + $0x138] sm:$0xff] %vm2457_vm4, %v2804_v7  ;;  %v2549_v17 = vld [vmem:[#allocation3 + $0x140] sm:$0xff]  ;;  %v2316_v6 = vpop.permute.xlu1 %2315 }
 0x325   :  { %v2635_v34 = vpop.permute.xlu0 %2634  ;;  %v2805_v41 = vadd.f32 %v2641_v10, %v2549_v17  ;;  %2483 = vst.msk [vmem:[#allocation3 + $0x129] sm:$0xff] %vm2457_vm4, %v2316_v6  ;;  %v3305_v3 = vpack.c.bf16 %v3250_v40, %v3249_v61 }
 0x326   :  { %v2926_v22 = vld [vmem:[#allocation3 + $0xf2] sm:$0xff]  ;;  %v2927_v42 = vld [vmem:[#allocation3 + $0xfa] sm:$0xff]  ;;  %2692 = vrot.lane.b32.xlu1 %v6825_v5, %s5566_s27 }
 0x327   :  { %2381 = vrot.lane.b32.xlu0 %v6837_v23, %s5570_s4  ;;  %v2990_v37 = vadd.f32 %v2926_v22, %v6508_v50  ;;  %v2991_v20 = vadd.f32 %v2927_v42, %v6520_v56  ;;  %2869 = vst.msk [vmem:[#allocation3 + $0x140] sm:$0xff] %vm2457_vm4, %v2805_v41  ;;  %5371 = vmatprep.mubr.msk.bf16.mxu1 %vm2457_vm4, %v3305_v3  ;;  %v6870_v50 = vpop.f32.mrf.mxu1 }
 0x328   :  { %5372 = vmatmul.mubr.msk.bf16.gmra.mxu1 %vm2457_vm4, %v3306_v46  ;;  %v2637_v1 = vpop.permute.xlu1 %2636  ;;  %v3120_v56 = vld [vmem:[#allocation3 + $0x109] sm:$0xff]  ;;  %v3121_v27 = vld [vmem:[#allocation3 + $0x111] sm:$0xff] }
 0x329   :  { %v2546_v49 = vld [vmem:[#allocation3 + $0x120] sm:$0xff]  ;;  %v2326_v62 = vpop.permute.xlu0 %2325  ;;  %3054 = vst.msk [vmem:[#allocation3 + $0xf2] sm:$0xff] %vm2457_vm4, %v2990_v37  ;;  %3055 = vst.msk [vmem:[#allocation3 + $0xfa] sm:$0xff] %vm2457_vm4, %v2991_v20  ;;  %v6873_v7 = vpop.f32.mrf.mxu1  ;;  %v3191_v19 = vadd.f32 %v6639_v14, %v3120_v56  ;;  %v3192_v2 = vadd.f32 %v6639_v14, %v3121_v27 }
 0x32a   :  { %v2802_v8 = vadd.f32 %v2635_v34, %v2546_v49  ;;  %2488 = vst.msk [vmem:[#allocation3 + $0x169] sm:$0xff] %vm2457_vm4, %v2326_v62  ;;  %2383 = vrot.lane.b32.xlu1 %v6859_v18, %s5570_s4 }
 0x32b   :  { %2377 = vrot.lane.b32.xlu0 %v6849_v38, %s5570_s4  ;;  %v6887_v42 = vpop.f32.mrf.mxu1  ;;  %v3255_v46 = vmax.f32 %v3191_v19, 0.0  ;;  %v3256_v37 = vmax.f32 %v3192_v2, 0.0 }
 0x32c   :  { %2866 = vst.msk [vmem:[#allocation3 + $0x120] sm:$0xff] %vm2457_vm4, %v2802_v8  ;;  %v2547_v30 = vld [vmem:[#allocation3 + $0x128] sm:$0xff]  ;;  %v2328_v16 = vpop.permute.xlu1 %2327 }
 0x32d   :  { %v2647_v10 = vpop.permute.xlu0 %2646  ;;  %v2803_v58 = vadd.f32 %v2637_v1, %v2547_v30  ;;  %2489 = vst.msk [vmem:[#allocation3 + $0x171] sm:$0xff] %vm2457_vm4, %v2328_v16  ;;  %v6897_v56 = vpop.f32.mrf.mxu1 }
 0x32e   :  { %v2932_v26 = vld [vmem:[#allocation3 + $0x13a] sm:$0xff]  ;;  %v2933_v55 = vld [vmem:[#allocation3 + $0x142] sm:$0xff]  ;;  %2379 = vrot.lane.b32.xlu1 %v6870_v50, %s5570_s4 }
 0x32f   :  { %2698 = vrot.lane.b32.xlu0 %v6849_v38, %s5566_s27  ;;  %v2996_v61 = vadd.f32 %v6526_v45, %v2932_v26  ;;  %v2997_v40 = vadd.f32 %v6534_v48, %v2933_v55  ;;  %2867 = vst.msk [vmem:[#allocation3 + $0x128] sm:$0xff] %vm2457_vm4, %v2803_v58  ;;  %v3308_v58 = vpack.c.bf16 %v3256_v37, %v3255_v46 }
 0x330   :  { %v2649_v6 = vpop.permute.xlu1 %2648  ;;  %v3118_v41 = vld [vmem:[#allocation3 + $0xf1] sm:$0xff]  ;;  %v3119_v3 = vld [vmem:[#allocation3 + $0xf9] sm:$0xff] }
 0x331   :  { %v2552_v17 = vld [vmem:[#allocation3 + $0x168] sm:$0xff]  ;;  %v2322_v34 = vpop.permute.xlu0 %2321  ;;  %3060 = vst.msk [vmem:[#allocation3 + $0x13a] sm:$0xff] %vm2457_vm4, %v2996_v61  ;;  %3061 = vst.msk [vmem:[#allocation3 + $0x142] sm:$0xff] %vm2457_vm4, %v2997_v40  ;;  %v3189_v45 = vadd.f32 %v6639_v14, %v3118_v41  ;;  %v3190_v48 = vadd.f32 %v6639_v14, %v3119_v3  ;;  %v6911_v40 = vpop.f32.mrf.mxu1 }
 0x332   :  { %v2808_v22 = vadd.f32 %v2647_v10, %v2552_v17  ;;  %2486 = vst.msk [vmem:[#allocation3 + $0x151] sm:$0xff] %vm2457_vm4, %v2322_v34  ;;  %2700 = vrot.lane.b32.xlu1 %v6870_v50, %s5566_s27 }
 0x333   :  { %2389 = vrot.lane.b32.xlu0 %v6873_v7, %s5570_s4  ;;  %v3253_v20 = vmax.f32 %v3189_v45, 0.0  ;;  %v3254_v49 = vmax.f32 %v3190_v48, 0.0 }
 0x334   :  { %2872 = vst.msk [vmem:[#allocation3 + $0x168] sm:$0xff] %vm2457_vm4, %v2808_v22  ;;  %v2553_v62 = vld [vmem:[#allocation3 + $0x170] sm:$0xff]  ;;  %v2324_v8 = vpop.permute.xlu1 %2323 }
 0x335   :  { %v2643_v1 = vpop.permute.xlu0 %2642  ;;  %v2809_v27 = vadd.f32 %v2649_v6, %v2553_v62  ;;  %2487 = vst.msk [vmem:[#allocation3 + $0x159] sm:$0xff] %vm2457_vm4, %v2324_v8  ;;  %v3307_v30 = vpack.c.bf16 %v3254_v49, %v3253_v20 }
 0x336   :  { %v2930_v10 = vld [vmem:[#allocation3 + $0x122] sm:$0xff]  ;;  %v2931_v16 = vld [vmem:[#allocation3 + $0x12a] sm:$0xff]  ;;  %2391 = vrot.lane.b32.xlu1 %v6897_v56, %s5570_s4 }
 0x337   :  { %2385 = vrot.lane.b32.xlu0 %v6887_v42, %s5570_s4  ;;  %v2994_v26 = vadd.f32 %v2930_v10, %v6532_v44  ;;  %v2995_v55 = vadd.f32 %v2931_v16, %v6544_v51  ;;  %2873 = vst.msk [vmem:[#allocation3 + $0x170] sm:$0xff] %vm2457_vm4, %v2809_v27  ;;  %5375 = vmatprep.mubr.msk.bf16.mxu1 %vm2457_vm4, %v3307_v30 }
 0x338   :  { %5376 = vmatmul.mubr.msk.bf16.gmra.mxu1 %vm2457_vm4, %v3308_v58  ;;  %v2645_v61 = vpop.permute.xlu1 %2644  ;;  %v3124_v44 = vld [vmem:[#allocation3 + $0x139] sm:$0xff]  ;;  %v3125_v51 = vld [vmem:[#allocation3 + $0x141] sm:$0xff] }
 0x339   :  { %v2550_v19 = vld [vmem:[#allocation3 + $0x150] sm:$0xff]  ;;  %v2334_v2 = vpop.permute.xlu0 %2333  ;;  %3058 = vst.msk [vmem:[#allocation3 + $0x122] sm:$0xff] %vm2457_vm4, %v2994_v26  ;;  %3059 = vst.msk [vmem:[#allocation3 + $0x12a] sm:$0xff] %vm2457_vm4, %v2995_v55  ;;  %v3195_v48 = vadd.f32 %v6639_v14, %v3124_v44  ;;  %v3196_v46 = vadd.f32 %v6639_v14, %v3125_v51 }
 0x33a   :  { %v2806_v17 = vadd.f32 %v2643_v1, %v2550_v19  ;;  %2492 = vst.msk [vmem:[#allocation3 + $0x199] sm:$0xff] %vm2457_vm4, %v2334_v2  ;;  %2387 = vrot.lane.b32.xlu1 %v6911_v40, %s5570_s4 }
 0x33b   :  { %2702 = vrot.lane.b32.xlu0 %v6837_v23, %s5566_s27  ;;  %v3260_v16 = vmax.f32 %v3196_v46, 0.0 }
 0x33c   :  { %2870 = vst.msk [vmem:[#allocation3 + $0x150] sm:$0xff] %vm2457_vm4, %v2806_v17  ;;  %v2551_v34 = vld [vmem:[#allocation3 + $0x158] sm:$0xff]  ;;  %v2336_v41 = vpop.permute.xlu1 %2335 }
 0x33d   :  { %v2655_v6 = vpop.permute.xlu0 %2654  ;;  %v2807_v3 = vadd.f32 %v2645_v61, %v2551_v34  ;;  %2493 = vst.msk [vmem:[#allocation3 + $0x1a1] sm:$0xff] %vm2457_vm4, %v2336_v41 }
 0x33e   :  { %v2936_v22 = vld [vmem:[#allocation3 + $0x16a] sm:$0xff]  ;;  %v2937_v45 = vld [vmem:[#allocation3 + $0x172] sm:$0xff]  ;;  %2704 = vrot.lane.b32.xlu1 %v6859_v18, %s5566_s27 }
 0x33f   :  { %2706 = vrot.lane.b32.xlu0 %v6887_v42, %s5566_s27  ;;  %v3000_v37 = vadd.f32 %v6546_v54, %v2936_v22  ;;  %v3001_v20 = vadd.f32 %v6558_v32, %v2937_v45  ;;  %2871 = vst.msk [vmem:[#allocation3 + $0x158] sm:$0xff] %vm2457_vm4, %v2807_v3  ;;  %v3259_v32 = vmax.f32 %v3195_v48, 0.0 }
 0x340   :  { %v2657_v1 = vpop.permute.xlu1 %2656  ;;  %v3122_v8 = vld [vmem:[#allocation3 + $0x121] sm:$0xff]  ;;  %v3123_v27 = vld [vmem:[#allocation3 + $0x129] sm:$0xff] }
 0x341   :  { %v2556_v49 = vld [vmem:[#allocation3 + $0x198] sm:$0xff]  ;;  %v2330_v62 = vpop.permute.xlu0 %2329  ;;  %3064 = vst.msk [vmem:[#allocation3 + $0x16a] sm:$0xff] %vm2457_vm4, %v3000_v37  ;;  %3065 = vst.msk [vmem:[#allocation3 + $0x172] sm:$0xff] %vm2457_vm4, %v3001_v20  ;;  %v3193_v10 = vadd.f32 %v6639_v14, %v3122_v8  ;;  %v3194_v54 = vadd.f32 %v6639_v14, %v3123_v27  ;;  %v3310_v34 = vpack.c.bf16 %v3260_v16, %v3259_v32 }
 0x342   :  { %v2812_v30 = vadd.f32 %v2655_v6, %v2556_v49  ;;  %2490 = vst.msk [vmem:[#allocation3 + $0x181] sm:$0xff] %vm2457_vm4, %v2330_v62  ;;  %2708 = vrot.lane.b32.xlu1 %v6911_v40, %s5566_s27 }
 0x343   :  { %2710 = vrot.lane.b32.xlu0 %v6873_v7, %s5566_s27  ;;  %v3257_v58 = vmax.f32 %v3193_v10, 0.0  ;;  %v3258_v26 = vmax.f32 %v3194_v54, 0.0 }
 0x344   :  { %2876 = vst.msk [vmem:[#allocation3 + $0x198] sm:$0xff] %vm2457_vm4, %v2812_v30  ;;  %v2557_v55 = vld [vmem:[#allocation3 + $0x1a0] sm:$0xff]  ;;  %v2332_v2 = vpop.permute.xlu1 %2331 }
 0x345   :  { %v2651_v19 = vpop.permute.xlu0 %2650  ;;  %v2813_v61 = vadd.f32 %v2657_v1, %v2557_v55  ;;  %2491 = vst.msk [vmem:[#allocation3 + $0x189] sm:$0xff] %vm2457_vm4, %v2332_v2  ;;  %v3309_v17 = vpack.c.bf16 %v3258_v26, %v3257_v58 }
 0x346   :  { %v2934_v44 = vld [vmem:[#allocation3 + $0x152] sm:$0xff]  ;;  %v2935_v51 = vld [vmem:[#allocation3 + $0x15a] sm:$0xff]  ;;  %2712 = vrot.lane.b32.xlu1 %v6897_v56, %s5566_s27 }
 0x347   :  { %v2998_v6 = vadd.f32 %v2934_v44, %v6552_v47  ;;  %v2999_v41 = vadd.f32 %v2935_v51, %v6570_v33  ;;  %2877 = vst.msk [vmem:[#allocation3 + $0x1a0] sm:$0xff] %vm2457_vm4, %v2813_v61  ;;  %5379 = vmatprep.mubr.msk.bf16.mxu1 %vm2457_vm4, %v3309_v17 }
 0x348   :  { %5380 = vmatmul.mubr.msk.bf16.gmra.mxu1 %vm2457_vm4, %v3310_v34  ;;  %v2653_v45 = vpop.permute.xlu1 %2652  ;;  %v3128_v47 = vld [vmem:[#allocation3 + $0x169] sm:$0xff]  ;;  %v3129_v33 = vld [vmem:[#allocation3 + $0x171] sm:$0xff] }
 0x349   :  { %v2554_v3 = vld [vmem:[#allocation3 + $0x180] sm:$0xff]  ;;  %v2342_v22 = vpop.permute.xlu0 %2341  ;;  %3062 = vst.msk [vmem:[#allocation3 + $0x152] sm:$0xff] %vm2457_vm4, %v2998_v6  ;;  %3063 = vst.msk [vmem:[#allocation3 + $0x15a] sm:$0xff] %vm2457_vm4, %v2999_v41  ;;  %v3199_v8 = vadd.f32 %v6639_v14, %v3128_v47  ;;  %v3200_v27 = vadd.f32 %v6639_v14, %v3129_v33 }
 0x34a   :  { %v2810_v48 = vadd.f32 %v2651_v19, %v2554_v3  ;;  %2496 = vst.msk [vmem:[#allocation3 + $0x1c9] sm:$0xff] %vm2457_vm4, %v2342_v22 }
 0x34b   :  { %v3263_v2 = vmax.f32 %v3199_v8, 0.0 }
 0x34c   :  { %2874 = vst.msk [vmem:[#allocation3 + $0x180] sm:$0xff] %vm2457_vm4, %v2810_v48  ;;  %v2555_v46 = vld [vmem:[#allocation3 + $0x188] sm:$0xff]  ;;  %v2344_v20 = vpop.permute.xlu1 %2343 }
 0x34d   :  { %v2663_v37 = vpop.permute.xlu0 %2662  ;;  %v2811_v49 = vadd.f32 %v2653_v45, %v2555_v46  ;;  %2497 = vst.msk [vmem:[#allocation3 + $0x1d1] sm:$0xff] %vm2457_vm4, %v2344_v20 }
 0x34e   :  { %v2940_v62 = vld [vmem:[#allocation3 + $0x19a] sm:$0xff]  ;;  %v2941_v1 = vld [vmem:[#allocation3 + $0x1a2] sm:$0xff] }
 0x34f   :  { %v3004_v30 = vadd.f32 %v6573_v31, %v2940_v62  ;;  %v3005_v10 = vadd.f32 %v6588_v11, %v2941_v1  ;;  %2875 = vst.msk [vmem:[#allocation3 + $0x188] sm:$0xff] %vm2457_vm4, %v2811_v49  ;;  %v3264_v11 = vmax.f32 %v3200_v27, 0.0 }
 0x350   :  { %v2665_v16 = vpop.permute.xlu1 %2664  ;;  %v3126_v58 = vld [vmem:[#allocation3 + $0x151] sm:$0xff]  ;;  %v3127_v26 = vld [vmem:[#allocation3 + $0x159] sm:$0xff] }
 0x351   :  { %v2560_v54 = vld [vmem:[#allocation3 + $0x1c8] sm:$0xff]  ;;  %v2338_v32 = vpop.permute.xlu0 %2337  ;;  %3068 = vst.msk [vmem:[#allocation3 + $0x19a] sm:$0xff] %vm2457_vm4, %v3004_v30  ;;  %3069 = vst.msk [vmem:[#allocation3 + $0x1a2] sm:$0xff] %vm2457_vm4, %v3005_v10  ;;  %v3197_v19 = vadd.f32 %v6639_v14, %v3126_v58  ;;  %v3198_v31 = vadd.f32 %v6639_v14, %v3127_v26  ;;  %v3312_v45 = vpack.c.bf16 %v3264_v11, %v3263_v2 }
 0x352   :  { %v2816_v55 = vadd.f32 %v2663_v37, %v2560_v54  ;;  %2494 = vst.msk [vmem:[#allocation3 + $0x1b1] sm:$0xff] %vm2457_vm4, %v2338_v32 }
 0x353   :  { %v3261_v61 = vmax.f32 %v3197_v19, 0.0  ;;  %v3262_v17 = vmax.f32 %v3198_v31, 0.0 }
 0x354   :  { %2880 = vst.msk [vmem:[#allocation3 + $0x1c8] sm:$0xff] %vm2457_vm4, %v2816_v55  ;;  %v2561_v44 = vld [vmem:[#allocation3 + $0x1d0] sm:$0xff]  ;;  %v2340_v34 = vpop.permute.xlu1 %2339 }
 0x355   :  { %v2659_v51 = vpop.permute.xlu0 %2658  ;;  %v2817_v6 = vadd.f32 %v2665_v16, %v2561_v44  ;;  %2495 = vst.msk [vmem:[#allocation3 + $0x1b9] sm:$0xff] %vm2457_vm4, %v2340_v34  ;;  %v3311_v41 = vpack.c.bf16 %v3262_v17, %v3261_v61 }
 0x356   :  { %v2938_v3 = vld [vmem:[#allocation3 + $0x182] sm:$0xff]  ;;  %v2939_v22 = vld [vmem:[#allocation3 + $0x18a] sm:$0xff] }
 0x357   :  { %v3002_v48 = vadd.f32 %v2938_v3, %v6580_v63  ;;  %v3003_v47 = vadd.f32 %v2939_v22, %v6603_v36  ;;  %2881 = vst.msk [vmem:[#allocation3 + $0x1d0] sm:$0xff] %vm2457_vm4, %v2817_v6  ;;  %5383 = vmatprep.mubr.msk.bf16.mxu1 %vm2457_vm4, %v3311_v41 }
 0x358   :  { %5384 = vmatmul.mubr.msk.bf16.gmra.mxu1 %vm2457_vm4, %v3312_v45  ;;  %v2661_v37 = vpop.permute.xlu1 %2660  ;;  %v3132_v63 = vld [vmem:[#allocation3 + $0x199] sm:$0xff]  ;;  %v3133_v36 = vld [vmem:[#allocation3 + $0x1a1] sm:$0xff] }
 0x359   :  { %v2558_v33 = vld [vmem:[#allocation3 + $0x1b0] sm:$0xff]  ;;  %v2350_v46 = vpop.permute.xlu0 %2349  ;;  %3066 = vst.msk [vmem:[#allocation3 + $0x182] sm:$0xff] %vm2457_vm4, %v3002_v48  ;;  %3067 = vst.msk [vmem:[#allocation3 + $0x18a] sm:$0xff] %vm2457_vm4, %v3003_v47  ;;  %v3203_v10 = vadd.f32 %v6639_v14, %v3132_v63  ;;  %v3204_v54 = vadd.f32 %v6639_v14, %v3133_v36 }
 0x35a   :  { %v2814_v20 = vadd.f32 %v2659_v51, %v2558_v33  ;;  %2500 = vst.msk [vmem:[#allocation3 + $0x1f9] sm:$0xff] %vm2457_vm4, %v2350_v46 }
 0x35b   :  { %v3267_v11 = vmax.f32 %v3203_v10, 0.0  ;;  %v3268_v61 = vmax.f32 %v3204_v54, 0.0 }
 0x35c   :  { %2878 = vst.msk [vmem:[#allocation3 + $0x1b0] sm:$0xff] %vm2457_vm4, %v2814_v20  ;;  %v2559_v49 = vld [vmem:[#allocation3 + $0x1b8] sm:$0xff]  ;;  %v2352_v1 = vpop.permute.xlu1 %2351 }
 0x35d   :  { %v2671_v62 = vpop.permute.xlu0 %2670  ;;  %v2815_v8 = vadd.f32 %v2661_v37, %v2559_v49  ;;  %2501 = vst.msk [vmem:[#allocation3 + $0x201] sm:$0xff] %vm2457_vm4, %v2352_v1  ;;  %v3314_v48 = vpack.c.bf16 %v3268_v61, %v3267_v11 }
 0x35e   :  { %v2944_v27 = vld [vmem:[#allocation3 + $0x1ca] sm:$0xff]  ;;  %v2945_v30 = vld [vmem:[#allocation3 + $0x1d2] sm:$0xff] }
 0x35f   :  { %v3008_v32 = vadd.f32 %v6609_v29, %v2944_v27  ;;  %v3009_v16 = vadd.f32 %v6628_v4, %v2945_v30  ;;  %2879 = vst.msk [vmem:[#allocation3 + $0x1b8] sm:$0xff] %vm2457_vm4, %v2815_v8  ;;  %v6985_v29 = vld [vmem:[%s7211_s5] ss:$0 sm:$0xff] }
 0x360   :  { %v2673_v55 = vpop.permute.xlu1 %2672  ;;  %v3130_v19 = vld [vmem:[#allocation3 + $0x181] sm:$0xff]  ;;  %v3131_v31 = vld [vmem:[#allocation3 + $0x189] sm:$0xff] }
 0x361   :  { %v2564_v58 = vld [vmem:[#allocation3 + $0x1f8] sm:$0xff]  ;;  %v2346_v26 = vpop.permute.xlu0 %2345  ;;  %3072 = vst.msk [vmem:[#allocation3 + $0x1ca] sm:$0xff] %vm2457_vm4, %v3008_v32  ;;  %3073 = vst.msk [vmem:[#allocation3 + $0x1d2] sm:$0xff] %vm2457_vm4, %v3009_v16  ;;  %v3201_v4 = vadd.f32 %v6985_v29, %v3130_v19  ;;  %v3202_v14 = vadd.f32 %v6985_v29, %v3131_v31 }
 0x362   :  { %v2820_v2 = vadd.f32 %v2671_v62, %v2564_v58  ;;  %2498 = vst.msk [vmem:[#allocation3 + $0x1e1] sm:$0xff] %vm2457_vm4, %v2346_v26 }
 0x363   :  { %v3265_v17 = vmax.f32 %v3201_v4, 0.0  ;;  %v3266_v44 = vmax.f32 %v3202_v14, 0.0 }
 0x364   :  { %2884 = vst.msk [vmem:[#allocation3 + $0x1f8] sm:$0xff] %vm2457_vm4, %v2820_v2  ;;  %v2565_v51 = vld [vmem:[#allocation3 + $0x200] sm:$0xff]  ;;  %v2348_v6 = vpop.permute.xlu1 %2347 }
 0x365   :  { %v2667_v34 = vpop.permute.xlu0 %2666  ;;  %v2821_v41 = vadd.f32 %v2673_v55, %v2565_v51  ;;  %2499 = vst.msk [vmem:[#allocation3 + $0x1e9] sm:$0xff] %vm2457_vm4, %v2348_v6  ;;  %v3313_v3 = vpack.c.bf16 %v3266_v44, %v3265_v17 }
 0x366   :  { %v2942_v22 = vld [vmem:[#allocation3 + $0x1b2] sm:$0xff]  ;;  %v2943_v45 = vld [vmem:[#allocation3 + $0x1ba] sm:$0xff] }
 0x367   :  { %v3006_v47 = vadd.f32 %v2942_v22, %v6616_v43  ;;  %v3007_v33 = vadd.f32 %v2943_v45, %v6650_v15  ;;  %2885 = vst.msk [vmem:[#allocation3 + $0x200] sm:$0xff] %vm2457_vm4, %v2821_v41  ;;  %5387 = vmatprep.mubr.msk.bf16.mxu1 %vm2457_vm4, %v3313_v3 }
 0x368   :  { %5388 = vmatmul.mubr.msk.bf16.gmra.mxu1 %vm2457_vm4, %v3314_v48  ;;  %v2669_v20 = vpop.permute.xlu1 %2668  ;;  %v3136_v43 = vld [vmem:[#allocation3 + $0x1c9] sm:$0xff]  ;;  %v3137_v15 = vld [vmem:[#allocation3 + $0x1d1] sm:$0xff] }
 0x369   :  { %v2562_v46 = vld [vmem:[#allocation3 + $0x1e0] sm:$0xff]  ;;  %v2358_v37 = vpop.permute.xlu0 %2357  ;;  %3070 = vst.msk [vmem:[#allocation3 + $0x1b2] sm:$0xff] %vm2457_vm4, %v3006_v47  ;;  %3071 = vst.msk [vmem:[#allocation3 + $0x1ba] sm:$0xff] %vm2457_vm4, %v3007_v33  ;;  %v3207_v30 = vadd.f32 %v6985_v29, %v3136_v43  ;;  %v3208_v10 = vadd.f32 %v6985_v29, %v3137_v15 }
 0x36a   :  { %v2818_v63 = vadd.f32 %v2667_v34, %v2562_v46  ;;  %2504 = vst.msk [vmem:[#allocation3 + $0x229] sm:$0xff] %vm2457_vm4, %v2358_v37 }
 0x36b   :  { %v3271_v4 = vmax.f32 %v3207_v30, 0.0 }
 0x36c   :  { %2882 = vst.msk [vmem:[#allocation3 + $0x1e0] sm:$0xff] %vm2457_vm4, %v2818_v63  ;;  %v2563_v36 = vld [vmem:[#allocation3 + $0x1e8] sm:$0xff]  ;;  %v2360_v62 = vpop.permute.xlu1 %2359 }
 0x36d   :  { %v2679_v49 = vpop.permute.xlu0 %2678  ;;  %v2819_v1 = vadd.f32 %v2669_v20, %v2563_v36  ;;  %2505 = vst.msk [vmem:[#allocation3 + $0x231] sm:$0xff] %vm2457_vm4, %v2360_v62 }
 0x36e   :  { %v2948_v8 = vld [vmem:[#allocation3 + $0x1fa] sm:$0xff]  ;;  %v2949_v27 = vld [vmem:[#allocation3 + $0x202] sm:$0xff] }
 0x36f   :  { %v3012_v54 = vadd.f32 %v6656_v53, %v2948_v8  ;;  %v3013_v32 = vadd.f32 %v6679_v35, %v2949_v27  ;;  %2883 = vst.msk [vmem:[#allocation3 + $0x1e8] sm:$0xff] %vm2457_vm4, %v2819_v1  ;;  %v3272_v35 = vmax.f32 %v3208_v10, 0.0 }
 0x370   :  { %v2681_v26 = vpop.permute.xlu1 %2680  ;;  %v3134_v55 = vld [vmem:[#allocation3 + $0x1b1] sm:$0xff]  ;;  %v3135_v19 = vld [vmem:[#allocation3 + $0x1b9] sm:$0xff] }
 0x371   :  { %v2568_v16 = vld [vmem:[#allocation3 + $0x228] sm:$0xff]  ;;  %v2354_v58 = vpop.permute.xlu0 %2353  ;;  %3076 = vst.msk [vmem:[#allocation3 + $0x1fa] sm:$0xff] %vm2457_vm4, %v3012_v54  ;;  %3077 = vst.msk [vmem:[#allocation3 + $0x202] sm:$0xff] %vm2457_vm4, %v3013_v32  ;;  %v3205_v2 = vadd.f32 %v6985_v29, %v3134_v55  ;;  %v3206_v53 = vadd.f32 %v6985_v29, %v3135_v19  ;;  %v3316_v3 = vpack.c.bf16 %v3272_v35, %v3271_v4 }
 0x372   :  { %v2824_v31 = vadd.f32 %v2679_v49, %v2568_v16  ;;  %2502 = vst.msk [vmem:[#allocation3 + $0x211] sm:$0xff] %vm2457_vm4, %v2354_v58 }
 0x373   :  { %v3269_v14 = vmax.f32 %v3205_v2, 0.0  ;;  %v3270_v11 = vmax.f32 %v3206_v53, 0.0 }
 0x374   :  { %2888 = vst.msk [vmem:[#allocation3 + $0x228] sm:$0xff] %vm2457_vm4, %v2824_v31  ;;  %v2569_v61 = vld [vmem:[#allocation3 + $0x230] sm:$0xff]  ;;  %v2356_v44 = vpop.permute.xlu1 %2355 }
 0x375   :  { %v2675_v17 = vpop.permute.xlu0 %2674  ;;  %v2825_v51 = vadd.f32 %v2681_v26, %v2569_v61  ;;  %2503 = vst.msk [vmem:[#allocation3 + $0x219] sm:$0xff] %vm2457_vm4, %v2356_v44  ;;  %v3315_v34 = vpack.c.bf16 %v3270_v11, %v3269_v14 }
 0x376   :  { %v2946_v6 = vld [vmem:[#allocation3 + $0x1e2] sm:$0xff]  ;;  %v2947_v41 = vld [vmem:[#allocation3 + $0x1ea] sm:$0xff] }
 0x377   :  { %v3010_v22 = vadd.f32 %v2946_v6, %v6665_v24  ;;  %v3011_v45 = vadd.f32 %v2947_v41, %v6696_v57  ;;  %2889 = vst.msk [vmem:[#allocation3 + $0x230] sm:$0xff] %vm2457_vm4, %v2825_v51  ;;  %5391 = vmatprep.mubr.msk.bf16.mxu1 %vm2457_vm4, %v3315_v34 }
 0x378   :  { %5392 = vmatmul.mubr.msk.bf16.gmra.mxu1 %vm2457_vm4, %v3316_v3  ;;  %v2677_v33 = vpop.permute.xlu1 %2676  ;;  %v3140_v24 = vld [vmem:[#allocation3 + $0x1f9] sm:$0xff]  ;;  %v3141_v57 = vld [vmem:[#allocation3 + $0x201] sm:$0xff] }
 0x379   :  { %v2566_v48 = vld [vmem:[#allocation3 + $0x210] sm:$0xff]  ;;  %v2366_v47 = vpop.permute.xlu0 %2365  ;;  %3074 = vst.msk [vmem:[#allocation3 + $0x1e2] sm:$0xff] %vm2457_vm4, %v3010_v22  ;;  %3075 = vst.msk [vmem:[#allocation3 + $0x1ea] sm:$0xff] %vm2457_vm4, %v3011_v45  ;;  %v3211_v49 = vadd.f32 %v6985_v29, %v3140_v24  ;;  %v3212_v62 = vadd.f32 %v6985_v29, %v3141_v57 }
 0x37a   :  { %v2822_v46 = vadd.f32 %v2675_v17, %v2566_v48  ;;  %2508 = vst.msk [vmem:[#allocation3 + $0x259] sm:$0xff] %vm2457_vm4, %v2366_v47 }
 0x37b   :  { %v3275_v26 = vmax.f32 %v3211_v49, 0.0 }
 0x37c   :  { %2886 = vst.msk [vmem:[#allocation3 + $0x210] sm:$0xff] %vm2457_vm4, %v2822_v46  ;;  %v2567_v37 = vld [vmem:[#allocation3 + $0x218] sm:$0xff]  ;;  %v2368_v63 = vpop.permute.xlu1 %2367 }
 0x37d   :  { %v2687_v20 = vpop.permute.xlu0 %2686  ;;  %v2823_v43 = vadd.f32 %v2677_v33, %v2567_v37  ;;  %2509 = vst.msk [vmem:[#allocation3 + $0x261] sm:$0xff] %vm2457_vm4, %v2368_v63 }
 0x37e   :  { %v2952_v15 = vld [vmem:[#allocation3 + $0x22a] sm:$0xff]  ;;  %v2953_v36 = vld [vmem:[#allocation3 + $0x232] sm:$0xff] }
 0x37f   :  { %v3016_v1 = vadd.f32 %v6702_v28, %v2952_v15  ;;  %v3017_v8 = vadd.f32 %v6725_v39, %v2953_v36  ;;  %2887 = vst.msk [vmem:[#allocation3 + $0x218] sm:$0xff] %vm2457_vm4, %v2823_v43  ;;  %v3276_v39 = vmax.f32 %v3212_v62, 0.0 }
 0x380   :  { %v2689_v10 = vpop.permute.xlu1 %2688  ;;  %v3138_v54 = vld [vmem:[#allocation3 + $0x1e1] sm:$0xff]  ;;  %v3139_v32 = vld [vmem:[#allocation3 + $0x1e9] sm:$0xff] }
 0x381   :  { %v2572_v27 = vld [vmem:[#allocation3 + $0x258] sm:$0xff]  ;;  %v2362_v30 = vpop.permute.xlu0 %2361  ;;  %3080 = vst.msk [vmem:[#allocation3 + $0x22a] sm:$0xff] %vm2457_vm4, %v3016_v1  ;;  %3081 = vst.msk [vmem:[#allocation3 + $0x232] sm:$0xff] %vm2457_vm4, %v3017_v8  ;;  %v3209_v58 = vadd.f32 %v6985_v29, %v3138_v54  ;;  %v3210_v28 = vadd.f32 %v6985_v29, %v3139_v32  ;;  %v3318_v61 = vpack.c.bf16 %v3276_v39, %v3275_v26 }
 0x382   :  { %v2828_v16 = vadd.f32 %v2687_v20, %v2572_v27  ;;  %2506 = vst.msk [vmem:[#allocation3 + $0x241] sm:$0xff] %vm2457_vm4, %v2362_v30 }
 0x383   :  { %v3273_v55 = vmax.f32 %v3209_v58, 0.0  ;;  %v3274_v19 = vmax.f32 %v3210_v28, 0.0 }
 0x384   :  { %2892 = vst.msk [vmem:[#allocation3 + $0x258] sm:$0xff] %vm2457_vm4, %v2828_v16  ;;  %v2573_v31 = vld [vmem:[#allocation3 + $0x260] sm:$0xff]  ;;  %v2364_v53 = vpop.permute.xlu1 %2363 }
 0x385   :  { %v2683_v2 = vpop.permute.xlu0 %2682  ;;  %v2829_v4 = vadd.f32 %v2689_v10, %v2573_v31  ;;  %2507 = vst.msk [vmem:[#allocation3 + $0x249] sm:$0xff] %vm2457_vm4, %v2364_v53  ;;  %v3317_v35 = vpack.c.bf16 %v3274_v19, %v3273_v55 }
 0x386   :  { %v2950_v14 = vld [vmem:[#allocation3 + $0x212] sm:$0xff]  ;;  %v2951_v11 = vld [vmem:[#allocation3 + $0x21a] sm:$0xff] }
 0x387   :  { %v3014_v17 = vadd.f32 %v2950_v14, %v6711_v60  ;;  %v3015_v44 = vadd.f32 %v2951_v11, %v6742_v13  ;;  %2893 = vst.msk [vmem:[#allocation3 + $0x260] sm:$0xff] %vm2457_vm4, %v2829_v4  ;;  %5395 = vmatprep.mubr.msk.bf16.mxu1 %vm2457_vm4, %v3317_v35 }
 0x388   :  { %5396 = vmatmul.mubr.msk.bf16.gmra.mxu1 %vm2457_vm4, %v3318_v61  ;;  %v2685_v6 = vpop.permute.xlu1 %2684  ;;  %v3144_v60 = vld [vmem:[#allocation3 + $0x229] sm:$0xff]  ;;  %v3145_v13 = vld [vmem:[#allocation3 + $0x231] sm:$0xff] }
 0x389   :  { %v2570_v51 = vld [vmem:[#allocation3 + $0x240] sm:$0xff]  ;;  %v2374_v34 = vpop.permute.xlu0 %2373  ;;  %3078 = vst.msk [vmem:[#allocation3 + $0x212] sm:$0xff] %vm2457_vm4, %v3014_v17  ;;  %3079 = vst.msk [vmem:[#allocation3 + $0x21a] sm:$0xff] %vm2457_vm4, %v3015_v44  ;;  %v3215_v46 = vadd.f32 %v6985_v29, %v3144_v60  ;;  %v3216_v24 = vadd.f32 %v6985_v29, %v3145_v13 }
 0x38a   :  { %v2826_v41 = vadd.f32 %v2683_v2, %v2570_v51  ;;  %2512 = vst.msk [vmem:[#allocation3 + $0x289] sm:$0xff] %vm2457_vm4, %v2374_v34 }
 0x38b   :  { %v3279_v1 = vmax.f32 %v3215_v46, 0.0 }
 0x38c   :  { %2890 = vst.msk [vmem:[#allocation3 + $0x240] sm:$0xff] %vm2457_vm4, %v2826_v41  ;;  %v2571_v3 = vld [vmem:[#allocation3 + $0x248] sm:$0xff]  ;;  %v2376_v45 = vpop.permute.xlu1 %2375 }
 0x38d   :  { %v2695_v22 = vpop.permute.xlu0 %2694  ;;  %v2827_v48 = vadd.f32 %v2685_v6, %v2571_v3  ;;  %2513 = vst.msk [vmem:[#allocation3 + $0x291] sm:$0xff] %vm2457_vm4, %v2376_v45 }
 0x38e   :  { %v2956_v47 = vld [vmem:[#allocation3 + $0x25a] sm:$0xff]  ;;  %v2957_v33 = vld [vmem:[#allocation3 + $0x262] sm:$0xff] }
 0x38f   :  { %v3020_v57 = vadd.f32 %v6748_v52, %v2956_v47  ;;  %v3021_v37 = vadd.f32 %v6771_v12, %v2957_v33  ;;  %2891 = vst.msk [vmem:[#allocation3 + $0x248] sm:$0xff] %vm2457_vm4, %v2827_v48  ;;  %v3280_v12 = vmax.f32 %v3216_v24, 0.0 }
 0x390   :  { %v2697_v43 = vpop.permute.xlu1 %2696  ;;  %v3142_v15 = vld [vmem:[#allocation3 + $0x211] sm:$0xff]  ;;  %v3143_v36 = vld [vmem:[#allocation3 + $0x219] sm:$0xff] }
 0x391   :  { %v2576_v20 = vld [vmem:[#allocation3 + $0x288] sm:$0xff]  ;;  %v2370_v63 = vpop.permute.xlu0 %2369  ;;  %3084 = vst.msk [vmem:[#allocation3 + $0x25a] sm:$0xff] %vm2457_vm4, %v3020_v57  ;;  %3085 = vst.msk [vmem:[#allocation3 + $0x262] sm:$0xff] %vm2457_vm4, %v3021_v37  ;;  %v3213_v62 = vadd.f32 %v6985_v29, %v3142_v15  ;;  %v3214_v52 = vadd.f32 %v6985_v29, %v3143_v36  ;;  %v3320_v26 = vpack.c.bf16 %v3280_v12, %v3279_v1  ;;  %v7082_v15 = vld [vmem:[%s7212_s6] ss:$0 sm:$0xff] }
 0x392   :  { %v2832_v49 = vadd.f32 %v2695_v22, %v2576_v20  ;;  %2510 = vst.msk [vmem:[#allocation3 + $0x271] sm:$0xff] %vm2457_vm4, %v2370_v63  ;;  %v5021_v20 = vld [vmem:[#allocation4 + $0x8] sm:$0xff]  }
 0x393   :  { %v3277_v8 = vmax.f32 %v3213_v62, 0.0  ;;  %v3278_v27 = vmax.f32 %v3214_v52, 0.0  ;;  %v4734_v52 = vld [vmem:[#allocation4] sm:$0xff]   ;;  %v4739_v12 = vunpack.c.l.bf16 %v5021_v20 }
 0x394   :  { %2896 = vst.msk [vmem:[#allocation3 + $0x288] sm:$0xff] %vm2457_vm4, %v2832_v49  ;;  %v2577_v30 = vld [vmem:[#allocation3 + $0x290] sm:$0xff]  ;;  %v2372_v54 = vpop.permute.xlu1 %2371 }
 0x395   :  { %v2691_v10 = vpop.permute.xlu0 %2690  ;;  %v2833_v32 = vadd.f32 %v2697_v43, %v2577_v30  ;;  %2511 = vst.msk [vmem:[#allocation3 + $0x279] sm:$0xff] %vm2457_vm4, %v2372_v54  ;;  %v3319_v16 = vpack.c.bf16 %v3278_v27, %v3277_v8  ;;  %v4735_v54 = vunpack.c.l.bf16 %v4734_v52 }
 0x396   :  { %v2954_v58 = vld [vmem:[#allocation3 + $0x242] sm:$0xff]  ;;  %v2955_v28 = vld [vmem:[#allocation3 + $0x24a] sm:$0xff] }
 0x397   :  { %v3018_v39 = vadd.f32 %v2954_v58, %v6757_v21  ;;  %v3019_v55 = vadd.f32 %v2955_v28, %v6788_v0  ;;  %2897 = vst.msk [vmem:[#allocation3 + $0x290] sm:$0xff] %vm2457_vm4, %v2833_v32  ;;  %5399 = vmatprep.mubr.msk.bf16.mxu1 %vm2457_vm4, %v3319_v16  ;;  %v4740_v58 = vunpack.c.h.bf16 %v5021_v20 }
 0x398   :  { %5400 = vmatmul.mubr.msk.bf16.gmra.mxu1 %vm2457_vm4, %v3320_v26  ;;  %v2693_v2 = vpop.permute.xlu1 %2692  ;;  %v3148_v21 = vld [vmem:[#allocation3 + $0x259] sm:$0xff]  ;;  %v3149_v0 = vld [vmem:[#allocation3 + $0x261] sm:$0xff] }
 0x399   :  { %v2574_v19 = vld [vmem:[#allocation3 + $0x270] sm:$0xff]  ;;  %v2382_v31 = vpop.permute.xlu0 %2381  ;;  %3082 = vst.msk [vmem:[#allocation3 + $0x242] sm:$0xff] %vm2457_vm4, %v3018_v39  ;;  %3083 = vst.msk [vmem:[#allocation3 + $0x24a] sm:$0xff] %vm2457_vm4, %v3019_v55  ;;  %v3219_v44 = vadd.f32 %v6985_v29, %v3148_v21  ;;  %v3220_v51 = vadd.f32 %v6985_v29, %v3149_v0  ;;  %v4736_v0 = vunpack.c.h.bf16 %v4734_v52 }
 0x39a   :  { %v2830_v53 = vadd.f32 %v2691_v10, %v2574_v19  ;;  %2516 = vst.msk [vmem:[#allocation3 + $0x2b9] sm:$0xff] %vm2457_vm4, %v2382_v31 }
 0x39b   :  { %v3283_v48 = vmax.f32 %v3219_v44, 0.0 }
 0x39c   :  { %2894 = vst.msk [vmem:[#allocation3 + $0x270] sm:$0xff] %vm2457_vm4, %v2830_v53  ;;  %v2575_v4 = vld [vmem:[#allocation3 + $0x278] sm:$0xff]  ;;  %v2384_v14 = vpop.permute.xlu1 %2383 }
 0x39d   :  { %v2378_v35 = vpop.permute.xlu0 %2377  ;;  %v2831_v11 = vadd.f32 %v2693_v2, %v2575_v4  ;;  %2517 = vst.msk [vmem:[#allocation3 + $0x2c1] sm:$0xff] %vm2457_vm4, %v2384_v14 }
 0x39e   :  { %2514 = vst.msk [vmem:[#allocation3 + $0x2a1] sm:$0xff] %vm2457_vm4, %v2378_v35  ;;  %v2960_v61 = vld [vmem:[#allocation3 + $0x28a] sm:$0xff]  ;;  %v2961_v17 = vld [vmem:[#allocation3 + $0x292] sm:$0xff] }
 0x39f   :  { %v3024_v34 = vadd.f32 %v6794_v59, %v2960_v61  ;;  %v3025_v6 = vadd.f32 %v6817_v25, %v2961_v17  ;;  %2895 = vst.msk [vmem:[#allocation3 + $0x278] sm:$0xff] %vm2457_vm4, %v2831_v11  ;;  %v3284_v59 = vmax.f32 %v3220_v51, 0.0 }
 0x3a0   :  { %v2380_v60 = vpop.permute.xlu1 %2379  ;;  %v3146_v13 = vld [vmem:[#allocation3 + $0x241] sm:$0xff]  ;;  %v3147_v3 = vld [vmem:[#allocation3 + $0x249] sm:$0xff] }
 0x3a1   :  { %v2699_v41 = vpop.permute.xlu0 %2698  ;;  %3088 = vst.msk [vmem:[#allocation3 + $0x28a] sm:$0xff] %vm2457_vm4, %v3024_v34  ;;  %3089 = vst.msk [vmem:[#allocation3 + $0x292] sm:$0xff] %vm2457_vm4, %v3025_v6  ;;  %v3217_v22 = vadd.f32 %v6985_v29, %v3146_v13  ;;  %v3218_v45 = vadd.f32 %v6985_v29, %v3147_v3  ;;  %v3322_v36 = vpack.c.bf16 %v3284_v59, %v3283_v48  ;;  %v2580_v55 = vld [vmem:[#allocation3 + $0x2b8] sm:$0xff] }
 0x3a2   :  { %2515 = vst.msk [vmem:[#allocation3 + $0x2a9] sm:$0xff] %vm2457_vm4, %v2380_v60 }
 0x3a3   :  { %v3281_v47 = vmax.f32 %v3217_v22, 0.0  ;;  %v3282_v25 = vmax.f32 %v3218_v45, 0.0 }
 0x3a4   :  { %v2701_v24 = vpop.permute.xlu1 %2700  ;;  %v2581_v22 = vld [vmem:[#allocation3 + $0x2c0] sm:$0xff] }
 0x3a5   :  { %v2578_v33 = vld [vmem:[#allocation3 + $0x2a0] sm:$0xff]  ;;  %v2390_v46 = vpop.permute.xlu0 %2389  ;;  %v3321_v37 = vpack.c.bf16 %v3282_v25, %v3281_v47 }
 0x3a6   :  { %v2834_v57 = vadd.f32 %v2699_v41, %v2578_v33  ;;  %2520 = vst.msk [vmem:[#allocation3 + $0x2e9] sm:$0xff] %vm2457_vm4, %v2390_v46  ;;  %v2958_v63 = vld [vmem:[#allocation3 + $0x272] sm:$0xff]  ;;  %v2959_v43 = vld [vmem:[#allocation3 + $0x27a] sm:$0xff] }
 0x3a7   :  { %v3022_v49 = vadd.f32 %v2958_v63, %v6803_v9  ;;  %v3023_v62 = vadd.f32 %v2959_v43, %v6825_v5  ;;  %5403 = vmatprep.mubr.msk.bf16.mxu1 %vm2457_vm4, %v3321_v37 }
 0x3a8   :  { %2898 = vst.msk [vmem:[#allocation3 + $0x2a0] sm:$0xff] %vm2457_vm4, %v2834_v57  ;;  %v5357_v8 = vpop.f32.mrf.mxu1  ;;  %5404 = vmatmul.mubr.msk.bf16.gmra.mxu1 %vm2457_vm4, %v3322_v36  ;;  %v2392_v5 = vpop.permute.xlu1 %2391  ;;  %v3152_v10 = vld [vmem:[#allocation3 + $0x289] sm:$0xff]  ;;  %v3153_v28 = vld [vmem:[#allocation3 + $0x291] sm:$0xff] }
 0x3a9   :  { %v2579_v1 = vld [vmem:[#allocation3 + $0x2a8] sm:$0xff]  ;;  %v2386_v27 = vpop.permute.xlu0 %2385  ;;  %3086 = vst.msk [vmem:[#allocation3 + $0x272] sm:$0xff] %vm2457_vm4, %v3022_v49  ;;  %3087 = vst.msk [vmem:[#allocation3 + $0x27a] sm:$0xff] %vm2457_vm4, %v3023_v62  ;;  %v3619_v9 = vadd.f32 %v5357_v8, %v7082_v15  ;;  %v3223_v31 = vadd.f32 %v6985_v29, %v3152_v10  ;;  %v3224_v14 = vadd.f32 %v6985_v29, %v3153_v28 }
 0x3aa   :  { %v2835_v30 = vadd.f32 %v2701_v24, %v2579_v1  ;;  %2518 = vst.msk [vmem:[#allocation3 + $0x2d1] sm:$0xff] %vm2457_vm4, %v2386_v27  ;;  %2521 = vst.msk [vmem:[#allocation3 + $0x2f1] sm:$0xff] %vm2457_vm4, %v2392_v5  ;;  %v3610_v32 = vpop.f32.mrf.mxu1  ;;  %v5023_v27 = vld [vmem:[#allocation4 + $0x18] sm:$0xff]   ;;  %v5022_v5 = vld [vmem:[#allocation4 + $0x10] sm:$0xff]  }
 0x3ab   :  { %v3611_v16 = vadd.f32 %v7082_v15, %v3610_v32  ;;  %v3867_v26 = vadd.f32 %v4739_v12, %v3619_v9  ;;  %v3287_v41 = vmax.f32 %v3223_v31, 0.0  ;;  %v3288_v24 = vmax.f32 %v3224_v14, 0.0 }
 0x3ac   :  { %2899 = vst.msk [vmem:[#allocation3 + $0x2a8] sm:$0xff] %vm2457_vm4, %v2835_v30  ;;  %v5358_v39 = vpop.f32.mrf.mxu1  ;;  %v2388_v21 = vpop.permute.xlu1 %2387  ;;  %v4747_v10 = vunpack.c.l.bf16 %v5023_v27  ;;  %v4748_v31 = vunpack.c.h.bf16 %v5023_v27 }
 0x3ad   :  { %v2703_v19 = vpop.permute.xlu0 %2702  ;;  %v3622_v2 = vadd.f32 %v5358_v39, %v7082_v15  ;;  %v3865_v4 = vadd.f32 %v4735_v54, %v3611_v16  ;;  %2519 = vst.msk [vmem:[#allocation3 + $0x2d9] sm:$0xff] %vm2457_vm4, %v2388_v21  ;;  %v3931_v17 = vmax.f32 %v3867_v26, 0.0  ;;  %v2584_v43 = vld [vmem:[#allocation3 + $0x2e8] sm:$0xff]  ;;  %v3324_v30 = vpack.c.bf16 %v3288_v24, %v3287_v41 }
 0x3ae   :  { %v2836_v53 = vadd.f32 %v2703_v19, %v2580_v55  ;;  %v3613_v35 = vpop.f32.mrf.mxu1  ;;  %v4743_v55 = vunpack.c.l.bf16 %v5022_v5 }
 0x3af   :  { %v3868_v11 = vadd.f32 %v4740_v58, %v3622_v2  ;;  %v3614_v61 = vadd.f32 %v7082_v15, %v3613_v35  ;;  %v3929_v25 = vmax.f32 %v3865_v4, 0.0 }
 0x3b0   :  { %2900 = vst.msk [vmem:[#allocation3 + $0x2b8] sm:$0xff] %vm2457_vm4, %v2836_v53  ;;  %v3150_v34 = vld [vmem:[#allocation3 + $0x271] sm:$0xff]  ;;  %v3151_v6 = vld [vmem:[#allocation3 + $0x279] sm:$0xff]  ;;  %v2705_v45 = vpop.permute.xlu1 %2704 }
 0x3b1   :  { %v2582_v44 = vld [vmem:[#allocation3 + $0x2d0] sm:$0xff]  ;;  %v2707_v51 = vpop.permute.xlu0 %2706  ;;  %v3932_v60 = vmax.f32 %v3868_v11, 0.0  ;;  %v3866_v13 = vadd.f32 %v4736_v0, %v3614_v61  ;;  %v3221_v48 = vadd.f32 %v6985_v29, %v3150_v34  ;;  %v2837_v33 = vadd.f32 %v2705_v45, %v2581_v22 }
 0x3b2   :  { %v2838_v3 = vadd.f32 %v2707_v51, %v2582_v44  ;;  %v3222_v46 = vadd.f32 %v6985_v29, %v3151_v6  ;;  %v2585_v32 = vld [vmem:[#allocation3 + $0x2f0] sm:$0xff]  ;;  %v4744_v11 = vunpack.c.h.bf16 %v5022_v5 }
 0x3b3   :  { %v2962_v59 = vld [vmem:[#allocation3 + $0x2a2] sm:$0xff]  ;;  %v2963_v47 = vld [vmem:[#allocation3 + $0x2aa] sm:$0xff]  ;;  %v4869_v20 = vpack.c.bf16 %v3932_v60, %v3931_v17  ;;  %v3930_v63 = vmax.f32 %v3866_v13, 0.0  ;;  %2901 = vst.msk [vmem:[#allocation3 + $0x2c0] sm:$0xff] %vm2457_vm4, %v2837_v33  ;;  %v3285_v49 = vmax.f32 %v3221_v48, 0.0 }
 0x3b4   :  { %v3026_v57 = vadd.f32 %v2962_v59, %v6849_v38  ;;  %v3027_v37 = vadd.f32 %v2963_v47, %v6870_v50  ;;  %2902 = vst.msk [vmem:[#allocation3 + $0x2d0] sm:$0xff] %vm2457_vm4, %v2838_v3  ;;  %v3286_v62 = vmax.f32 %v3222_v46, 0.0  ;;  %v2583_v38 = vld [vmem:[#allocation3 + $0x2d8] sm:$0xff]  ;;  %v2709_v12 = vpop.permute.xlu1 %2708 }
 0x3b5   :  { %v2711_v36 = vpop.permute.xlu0 %2710  ;;  %5052 = vst [vmem:[#allocation7 + $0x8] sm:$0xff] %v4869_v20   ;;  %v4864_v52 = vpack.c.bf16 %v3930_v63, %v3929_v25  ;;  %v2839_v50 = vadd.f32 %v2709_v12, %v2583_v38  ;;  %v5025_v63 = vld [vmem:[#allocation4 + $0x28] sm:$0xff]  }
 0x3b6   :  { %3090 = vst.msk [vmem:[#allocation3 + $0x2a2] sm:$0xff] %vm2457_vm4, %v3026_v57  ;;  %3091 = vst.msk [vmem:[#allocation3 + $0x2aa] sm:$0xff] %vm2457_vm4, %v3027_v37  ;;  %v2840_v1 = vadd.f32 %v2711_v36, %v2584_v43  ;;  %v3323_v8 = vpack.c.bf16 %v3286_v62, %v3285_v49 }
 0x3b7   :  { %4865 = vst [vmem:[#allocation7] sm:$0xff] %v4864_v52   ;;  %2903 = vst.msk [vmem:[#allocation3 + $0x2d8] sm:$0xff] %vm2457_vm4, %v2839_v50  ;;  %v4755_v52 = vunpack.c.l.bf16 %v5025_v63 }
 0x3b8   :  { %2904 = vst.msk [vmem:[#allocation3 + $0x2e8] sm:$0xff] %vm2457_vm4, %v2840_v1  ;;  %5407 = vmatprep.mubr.msk.bf16.mxu1 %vm2457_vm4, %v3323_v8  ;;  %v5361_v9 = vpop.f32.mrf.mxu1  ;;  %v2713_v16 = vpop.permute.xlu1 %2712 }
 0x3b9   :  { %v3635_v54 = vadd.f32 %v5361_v9, %v7082_v15  ;;  %5408 = vmatmul.mubr.msk.bf16.gmra.mxu1 %vm2457_vm4, %v3324_v30  ;;  %v2841_v58 = vadd.f32 %v2713_v16, %v2585_v32 }
 0x3ba   :  { %v3626_v28 = vpop.f32.mrf.mxu1  ;;  %v2964_v26 = vld [vmem:[#allocation3 + $0x2ba] sm:$0xff]  ;;  %v2965_v39 = vld [vmem:[#allocation3 + $0x2c2] sm:$0xff] }
 0x3bb   :  { %v3627_v19 = vadd.f32 %v7082_v15, %v3626_v28  ;;  %v3028_v2 = vadd.f32 %v6837_v23, %v2964_v26  ;;  %v3029_v53 = vadd.f32 %v6859_v18, %v2965_v39  ;;  %2905 = vst.msk [vmem:[#allocation3 + $0x2f0] sm:$0xff] %vm2457_vm4, %v2841_v58  ;;  %v3871_v35 = vadd.f32 %v4747_v10, %v3635_v54 }
 0x3bc   :  { %v5362_v21 = vpop.f32.mrf.mxu1  ;;  %v4756_v10 = vunpack.c.h.bf16 %v5025_v63 }
 0x3bd   :  { %v3154_v0 = vld [vmem:[#allocation3 + $0x2a1] sm:$0xff]  ;;  %v3155_v4 = vld [vmem:[#allocation3 + $0x2a9] sm:$0xff]  ;;  %v3638_v14 = vadd.f32 %v5362_v21, %v7082_v15  ;;  %3092 = vst.msk [vmem:[#allocation3 + $0x2ba] sm:$0xff] %vm2457_vm4, %v3028_v2  ;;  %3093 = vst.msk [vmem:[#allocation3 + $0x2c2] sm:$0xff] %vm2457_vm4, %v3029_v53  ;;  %v3869_v51 = vadd.f32 %v4743_v55, %v3627_v19  ;;  %v3935_v22 = vmax.f32 %v3871_v35, 0.0 }
 0x3be   :  { %v3225_v61 = vadd.f32 %v6985_v29, %v3154_v0  ;;  %v3629_v17 = vpop.f32.mrf.mxu1  ;;  %v3226_v23 = vadd.f32 %v6985_v29, %v3155_v4  ;;  %v2966_v44 = vld [vmem:[#allocation3 + $0x2d2] sm:$0xff]  ;;  %v2967_v18 = vld [vmem:[#allocation3 + $0x2da] sm:$0xff] }
 0x3bf   :  { %v3872_v34 = vadd.f32 %v4748_v31, %v3638_v14  ;;  %v3630_v6 = vadd.f32 %v7082_v15, %v3629_v17  ;;  %v3030_v60 = vadd.f32 %v2966_v44, %v6887_v42  ;;  %v3031_v13 = vadd.f32 %v2967_v18, %v6911_v40 }
 0x3c0   :  { %v3289_v41 = vmax.f32 %v3225_v61, 0.0  ;;  %v3290_v3 = vmax.f32 %v3226_v23, 0.0  ;;  %v3933_v33 = vmax.f32 %v3869_v51, 0.0 }
 0x3c1   :  { %v3936_v45 = vmax.f32 %v3872_v34, 0.0  ;;  %v3870_v48 = vadd.f32 %v4744_v11, %v3630_v6  ;;  %3094 = vst.msk [vmem:[#allocation3 + $0x2d2] sm:$0xff] %vm2457_vm4, %v3030_v60  ;;  %3095 = vst.msk [vmem:[#allocation3 + $0x2da] sm:$0xff] %vm2457_vm4, %v3031_v13 }
 0x3c2   :  { %v3325_v59 = vpack.c.bf16 %v3290_v3, %v3289_v41  ;;  %v2968_v47 = vld [vmem:[#allocation3 + $0x2ea] sm:$0xff]  ;;  %v2969_v25 = vld [vmem:[#allocation3 + $0x2f2] sm:$0xff] }
 0x3c3   :  { %v4879_v46 = vpack.c.bf16 %v3936_v45, %v3935_v22  ;;  %v3934_v24 = vmax.f32 %v3870_v48, 0.0  ;;  %v3032_v57 = vadd.f32 %v6873_v7, %v2968_v47  ;;  %v3033_v42 = vadd.f32 %v6897_v56, %v2969_v25  ;;  %v5024_v7 = vld [vmem:[#allocation4 + $0x20] sm:$0xff]   ;;  %v5026_v41 = vld [vmem:[#allocation4 + $0x30] sm:$0xff]  }
 0x3c4   :  { %5411 = vmatprep.mubr.msk.bf16.mxu1 %vm2457_vm4, %v3325_v59  ;;  %v3156_v37 = vld [vmem:[#allocation3 + $0x2b9] sm:$0xff]  ;;  %v3157_v20 = vld [vmem:[#allocation3 + $0x2c1] sm:$0xff]  ;;  %v4751_v9 = vunpack.c.l.bf16 %v5024_v7  ;;  %v4752_v26 = vunpack.c.h.bf16 %v5024_v7  ;;  %v4759_v22 = vunpack.c.l.bf16 %v5026_v41 }
 0x3c5   :  { %5054 = vst [vmem:[#allocation7 + $0x18] sm:$0xff] %v4879_v46   ;;  %v4874_v40 = vpack.c.bf16 %v3934_v24, %v3933_v33  ;;  %3096 = vst.msk [vmem:[#allocation3 + $0x2ea] sm:$0xff] %vm2457_vm4, %v3032_v57  ;;  %v3227_v43 = vadd.f32 %v6985_v29, %v3156_v37  ;;  %v3228_v36 = vadd.f32 %v6985_v29, %v3157_v20  ;;  %v4760_v33 = vunpack.c.h.bf16 %v5026_v41  ;;  %v5029_v7 = vld [vmem:[#allocation4 + $0x48] sm:$0xff]  }
 0x3c6   :  { %3097 = vst.msk [vmem:[#allocation3 + $0x2f2] sm:$0xff] %vm2457_vm4, %v3033_v42 }
 0x3c7   :  { %5053 = vst [vmem:[#allocation7 + $0x10] sm:$0xff] %v4874_v40   ;;  %v3291_v62 = vmax.f32 %v3227_v43, 0.0  ;;  %v3292_v56 = vmax.f32 %v3228_v36, 0.0 }
 0x3c8   :  { %v5365_v49 = vpop.f32.mrf.mxu1  ;;  %v3158_v38 = vld [vmem:[#allocation3 + $0x2d1] sm:$0xff]  ;;  %v3159_v12 = vld [vmem:[#allocation3 + $0x2d9] sm:$0xff] }
 0x3c9   :  { %v3651_v1 = vadd.f32 %v5365_v49, %v7082_v15  ;;  %v3326_v8 = vpack.c.bf16 %v3292_v56, %v3291_v62  ;;  %v3229_v27 = vadd.f32 %v6985_v29, %v3158_v38  ;;  %v3230_v30 = vadd.f32 %v6985_v29, %v3159_v12  ;;  %v5028_v56 = vld [vmem:[#allocation4 + $0x40] sm:$0xff]  }
 0x3ca   :  { %v3642_v50 = vpop.f32.mrf.mxu1  ;;  %v4767_v12 = vunpack.c.l.bf16 %v5028_v56 }
 0x3cb   :  { %v3643_v5 = vadd.f32 %v7082_v15, %v3642_v50  ;;  %5412 = vmatmul.mubr.msk.bf16.gmra.mxu1 %vm2457_vm4, %v3326_v8  ;;  %v3293_v32 = vmax.f32 %v3229_v27, 0.0  ;;  %v3294_v16 = vmax.f32 %v3230_v30, 0.0  ;;  %v3875_v58 = vadd.f32 %v4755_v52, %v3651_v1 }
 0x3cc   :  { %v5366_v54 = vpop.f32.mrf.mxu1  ;;  %v3160_v39 = vld [vmem:[#allocation3 + $0x2e9] sm:$0xff]  ;;  %v4771_v52 = vunpack.c.l.bf16 %v5029_v7  ;;  %v4772_v8 = vunpack.c.h.bf16 %v5029_v7 }
 0x3cd   :  { %v3654_v28 = vadd.f32 %v5366_v54, %v7082_v15  ;;  %v3161_v55 = vld [vmem:[#allocation3 + $0x2f1] sm:$0xff]  ;;  %v3327_v31 = vpack.c.bf16 %v3294_v16, %v3293_v32  ;;  %v3231_v2 = vadd.f32 %v6985_v29, %v3160_v39  ;;  %v3873_v21 = vadd.f32 %v4751_v9, %v3643_v5 }
 0x3ce   :  { %v3645_v19 = vpop.f32.mrf.mxu1  ;;  %v3232_v53 = vadd.f32 %v6985_v29, %v3161_v55  ;;  %v3939_v11 = vmax.f32 %v3875_v58, 0.0  ;;  %v5027_v29 = vld [vmem:[#allocation4 + $0x38] sm:$0xff]   ;;  %v4768_v5 = vunpack.c.h.bf16 %v5028_v56 }
 0x3cf   :  { %v3876_v0 = vadd.f32 %v4756_v10, %v3654_v28  ;;  %v3646_v4 = vadd.f32 %v7082_v15, %v3645_v19  ;;  %5415 = vmatprep.mubr.msk.bf16.mxu1 %vm2457_vm4, %v3327_v31  ;;  %v3295_v35 = vmax.f32 %v3231_v2, 0.0  ;;  %v3937_v44 = vmax.f32 %v3873_v21, 0.0  ;;  %v5031_v2 = vld [vmem:[#allocation4 + $0x58] sm:$0xff]   ;;  %v5030_v21 = vld [vmem:[#allocation4 + $0x50] sm:$0xff]  }
 0x3d0   :  { %v3296_v14 = vmax.f32 %v3232_v53, 0.0  ;;  %v4763_v60 = vunpack.c.l.bf16 %v5027_v29  ;;  %v4764_v48 = vunpack.c.h.bf16 %v5027_v29 }
 0x3d1   :  { %v3940_v61 = vmax.f32 %v3876_v0, 0.0  ;;  %v3874_v17 = vadd.f32 %v4752_v26, %v3646_v4  ;;  %v4779_v0 = vunpack.c.l.bf16 %v5031_v2 }
 0x3d2   :  { %v3328_v23 = vpack.c.bf16 %v3296_v14, %v3295_v35  ;;  %v4775_v14 = vunpack.c.l.bf16 %v5030_v21 }
 0x3d3   :  { %v4889_v18 = vpack.c.bf16 %v3940_v61, %v3939_v11  ;;  %v3938_v51 = vmax.f32 %v3874_v17, 0.0  ;;  %v4780_v61 = vunpack.c.h.bf16 %v5031_v2 }
 0x3d4   :  { %5416 = vmatmul.mubr.msk.bf16.gmra.mxu1 %vm2457_vm4, %v3328_v23 }
 0x3d5   :  { %5056 = vst [vmem:[#allocation7 + $0x28] sm:$0xff] %v4889_v18   ;;  %v4884_v34 = vpack.c.bf16 %v3938_v51, %v3937_v44  ;;  %v4776_v18 = vunpack.c.h.bf16 %v5030_v21 }
 0x3d7   :  { %5055 = vst [vmem:[#allocation7 + $0x20] sm:$0xff] %v4884_v34  }
 0x3d8   :  { %v5369_v6 = vpop.f32.mrf.mxu1 }
 0x3d9   :  { %v3667_v13 = vadd.f32 %v5369_v6, %v7082_v15 }
 0x3da   :  { %v3658_v3 = vpop.f32.mrf.mxu1 }
 0x3db   :  { %v3659_v45 = vadd.f32 %v7082_v15, %v3658_v3  ;;  %v3879_v47 = vadd.f32 %v4763_v60, %v3667_v13 }
 0x3dc   :  { %v5370_v59 = vpop.f32.mrf.mxu1 }
 0x3dd   :  { %v3670_v25 = vadd.f32 %v5370_v59, %v7082_v15  ;;  %v3877_v24 = vadd.f32 %v4759_v22, %v3659_v45  ;;  %v3943_v40 = vmax.f32 %v3879_v47, 0.0  ;;  %v5033_v59 = vld [vmem:[#allocation4 + $0x68] sm:$0xff]  }
 0x3de   :  { %v3661_v46 = vpop.f32.mrf.mxu1 }
 0x3df   :  { %v3880_v57 = vadd.f32 %v4764_v48, %v3670_v25  ;;  %v3662_v42 = vadd.f32 %v7082_v15, %v3661_v46  ;;  %v3941_v63 = vmax.f32 %v3877_v24, 0.0  ;;  %v5032_v25 = vld [vmem:[#allocation4 + $0x60] sm:$0xff]  }
 0x3e1   :  { %v3944_v37 = vmax.f32 %v3880_v57, 0.0  ;;  %v3878_v20 = vadd.f32 %v4760_v33, %v3662_v42  ;;  %v4787_v33 = vunpack.c.l.bf16 %v5033_v59  ;;  %v4783_v57 = vunpack.c.l.bf16 %v5032_v25 }
 0x3e3   :  { %v4899_v43 = vpack.c.bf16 %v3944_v37, %v3943_v40  ;;  %v3942_v36 = vmax.f32 %v3878_v20, 0.0  ;;  %v4788_v40 = vunpack.c.h.bf16 %v5033_v59 }
 0x3e5   :  { %5058 = vst [vmem:[#allocation7 + $0x38] sm:$0xff] %v4899_v43   ;;  %v4894_v49 = vpack.c.bf16 %v3942_v36, %v3941_v63  ;;  %v4784_v43 = vunpack.c.h.bf16 %v5032_v25 }
 0x3e7   :  { %5057 = vst [vmem:[#allocation7 + $0x30] sm:$0xff] %v4894_v49  }
 0x3e8   :  { %v5373_v62 = vpop.f32.mrf.mxu1 }
 0x3e9   :  { %v3683_v1 = vadd.f32 %v5373_v62, %v7082_v15 }
 0x3ea   :  { %v3674_v38 = vpop.f32.mrf.mxu1 }
 0x3eb   :  { %v3675_v50 = vadd.f32 %v7082_v15, %v3674_v38  ;;  %v3883_v30 = vadd.f32 %v4771_v52, %v3683_v1 }
 0x3ec   :  { %v5374_v27 = vpop.f32.mrf.mxu1 }
 0x3ed   :  { %v3686_v9 = vadd.f32 %v5374_v27, %v7082_v15  ;;  %v3881_v54 = vadd.f32 %v4767_v12, %v3675_v50  ;;  %v3947_v58 = vmax.f32 %v3883_v30, 0.0  ;;  %v5035_v27 = vld [vmem:[#allocation4 + $0x78] sm:$0xff]  }
 0x3ee   :  { %v3677_v10 = vpop.f32.mrf.mxu1 }
 0x3ef   :  { %v3884_v32 = vadd.f32 %v4772_v8, %v3686_v9  ;;  %v3678_v16 = vadd.f32 %v7082_v15, %v3677_v10  ;;  %v3945_v39 = vmax.f32 %v3881_v54, 0.0  ;;  %v5034_v9 = vld [vmem:[#allocation4 + $0x70] sm:$0xff]  }
 0x3f1   :  { %v3948_v28 = vmax.f32 %v3884_v32, 0.0  ;;  %v3882_v26 = vadd.f32 %v4768_v5, %v3678_v16  ;;  %v4795_v5 = vunpack.c.l.bf16 %v5035_v27  ;;  %v4791_v32 = vunpack.c.l.bf16 %v5034_v9 }
 0x3f3   :  { %v4909_v55 = vpack.c.bf16 %v3948_v28, %v3947_v58  ;;  %v3946_v19 = vmax.f32 %v3882_v26, 0.0  ;;  %v4796_v58 = vunpack.c.h.bf16 %v5035_v27 }
 0x3f5   :  { %5060 = vst [vmem:[#allocation7 + $0x48] sm:$0xff] %v4909_v55   ;;  %v4904_v31 = vpack.c.bf16 %v3946_v19, %v3945_v39  ;;  %v4792_v55 = vunpack.c.h.bf16 %v5034_v9 }
 0x3f7   :  { %5059 = vst [vmem:[#allocation7 + $0x40] sm:$0xff] %v4904_v31  }
 0x3f8   :  { %v5377_v53 = vpop.f32.mrf.mxu1 }
 0x3f9   :  { %v3699_v4 = vadd.f32 %v5377_v53, %v7082_v15 }
 0x3fa   :  { %v3690_v35 = vpop.f32.mrf.mxu1 }
 0x3fb   :  { %v3691_v11 = vadd.f32 %v7082_v15, %v3690_v35  ;;  %v3887_v23 = vadd.f32 %v4779_v0, %v3699_v4 }
 0x3fc   :  { %v5378_v17 = vpop.f32.mrf.mxu1 }
 0x3fd   :  { %v3702_v44 = vadd.f32 %v5378_v17, %v7082_v15  ;;  %v3885_v34 = vadd.f32 %v4775_v14, %v3691_v11  ;;  %v3951_v41 = vmax.f32 %v3887_v23, 0.0  ;;  %v5037_v17 = vld [vmem:[#allocation4 + $0x88] sm:$0xff]  }
 0x3fe   :  { %v3693_v51 = vpop.f32.mrf.mxu1 }
 0x3ff   :  { %v3888_v29 = vadd.f32 %v4780_v61, %v3702_v44  ;;  %v3694_v6 = vadd.f32 %v7082_v15, %v3693_v51  ;;  %v3949_v3 = vmax.f32 %v3885_v34, 0.0  ;;  %v5036_v44 = vld [vmem:[#allocation4 + $0x80] sm:$0xff]  }
 0x401   :  { %v3952_v60 = vmax.f32 %v3888_v29, 0.0  ;;  %v3886_v13 = vadd.f32 %v4776_v18, %v3694_v6  ;;  %v4803_v18 = vunpack.c.l.bf16 %v5037_v17  ;;  %v4799_v29 = vunpack.c.l.bf16 %v5036_v44 }
 0x403   :  { %v4919_v22 = vpack.c.bf16 %v3952_v60, %v3951_v41  ;;  %v3950_v45 = vmax.f32 %v3886_v13, 0.0  ;;  %v4804_v41 = vunpack.c.h.bf16 %v5037_v17 }
 0x405   :  { %5062 = vst [vmem:[#allocation7 + $0x58] sm:$0xff] %v4919_v22   ;;  %v4914_v48 = vpack.c.bf16 %v3950_v45, %v3949_v3  ;;  %v4800_v22 = vunpack.c.h.bf16 %v5036_v44 }
 0x407   :  { %5061 = vst [vmem:[#allocation7 + $0x50] sm:$0xff] %v4914_v48  }
 0x408   :  { %v5381_v47 = vpop.f32.mrf.mxu1 }
 0x409   :  { %v3715_v46 = vadd.f32 %v5381_v47, %v7082_v15 }
 0x40a   :  { %v3706_v24 = vpop.f32.mrf.mxu1 }
 0x40b   :  { %v3707_v42 = vadd.f32 %v7082_v15, %v3706_v24  ;;  %v3891_v20 = vadd.f32 %v4787_v33, %v3715_v46 }
 0x40c   :  { %v5382_v37 = vpop.f32.mrf.mxu1 }
 0x40d   :  { %v3718_v63 = vadd.f32 %v5382_v37, %v7082_v15  ;;  %v3889_v49 = vadd.f32 %v4783_v57, %v3707_v42  ;;  %v3955_v56 = vmax.f32 %v3891_v20, 0.0  ;;  %v5039_v37 = vld [vmem:[#allocation4 + $0x98] sm:$0xff]  }
 0x40e   :  { %v3709_v36 = vpop.f32.mrf.mxu1 }
 0x40f   :  { %v3892_v7 = vadd.f32 %v4788_v40, %v3718_v63  ;;  %v3710_v62 = vadd.f32 %v7082_v15, %v3709_v36  ;;  %v3953_v38 = vmax.f32 %v3889_v49, 0.0  ;;  %v5038_v63 = vld [vmem:[#allocation4 + $0x90] sm:$0xff]  }
 0x411   :  { %v3956_v52 = vmax.f32 %v3892_v7, 0.0  ;;  %v3890_v1 = vadd.f32 %v4784_v43, %v3710_v62  ;;  %v4811_v43 = vunpack.c.l.bf16 %v5039_v37  ;;  %v4807_v7 = vunpack.c.l.bf16 %v5038_v63 }
 0x413   :  { %v4929_v12 = vpack.c.bf16 %v3956_v52, %v3955_v56  ;;  %v3954_v50 = vmax.f32 %v3890_v1, 0.0  ;;  %v4812_v56 = vunpack.c.h.bf16 %v5039_v37 }
 0x415   :  { %5064 = vst [vmem:[#allocation7 + $0x68] sm:$0xff] %v4929_v12   ;;  %v4924_v8 = vpack.c.bf16 %v3954_v50, %v3953_v38  ;;  %v4808_v12 = vunpack.c.h.bf16 %v5038_v63 }
 0x417   :  { %5063 = vst [vmem:[#allocation7 + $0x60] sm:$0xff] %v4924_v8  }
 0x418   :  { %v5385_v30 = vpop.f32.mrf.mxu1 }
 0x419   :  { %v3731_v10 = vadd.f32 %v5385_v30, %v7082_v15 }
 0x41a   :  { %v3722_v54 = vpop.f32.mrf.mxu1 }
 0x41b   :  { %v3723_v16 = vadd.f32 %v7082_v15, %v3722_v54  ;;  %v3895_v26 = vadd.f32 %v4795_v5, %v3731_v10 }
 0x41c   :  { %v5386_v28 = vpop.f32.mrf.mxu1 }
 0x41d   :  { %v3734_v39 = vadd.f32 %v5386_v28, %v7082_v15  ;;  %v3893_v31 = vadd.f32 %v4791_v32, %v3723_v16  ;;  %v3959_v21 = vmax.f32 %v3895_v26, 0.0  ;;  %v5041_v28 = vld [vmem:[#allocation4 + $0xa8] sm:$0xff]  }
 0x41e   :  { %v3725_v19 = vpop.f32.mrf.mxu1 }
 0x41f   :  { %v3896_v2 = vadd.f32 %v4796_v58, %v3734_v39  ;;  %v3726_v53 = vadd.f32 %v7082_v15, %v3725_v19  ;;  %v3957_v35 = vmax.f32 %v3893_v31, 0.0  ;;  %v5040_v39 = vld [vmem:[#allocation4 + $0xa0] sm:$0xff]  }
 0x421   :  { %v3960_v0 = vmax.f32 %v3896_v2, 0.0  ;;  %v3894_v4 = vadd.f32 %v4792_v55, %v3726_v53  ;;  %v4819_v55 = vunpack.c.l.bf16 %v5041_v28  ;;  %v4815_v2 = vunpack.c.l.bf16 %v5040_v39 }
 0x423   :  { %v4939_v14 = vpack.c.bf16 %v3960_v0, %v3959_v21  ;;  %v3958_v11 = vmax.f32 %v3894_v4, 0.0  ;;  %v4820_v21 = vunpack.c.h.bf16 %v5041_v28 }
 0x425   :  { %5066 = vst [vmem:[#allocation7 + $0x78] sm:$0xff] %v4939_v14   ;;  %v4934_v61 = vpack.c.bf16 %v3958_v11, %v3957_v35  ;;  %v4816_v14 = vunpack.c.h.bf16 %v5040_v39 }
 0x427   :  { %5065 = vst [vmem:[#allocation7 + $0x70] sm:$0xff] %v4934_v61  }
 0x428   :  { %v5389_v23 = vpop.f32.mrf.mxu1 }
 0x429   :  { %v3747_v51 = vadd.f32 %v5389_v23, %v7082_v15 }
 0x42a   :  { %v3738_v34 = vpop.f32.mrf.mxu1 }
 0x42b   :  { %v3739_v6 = vadd.f32 %v7082_v15, %v3738_v34  ;;  %v3899_v13 = vadd.f32 %v4803_v18, %v3747_v51 }
 0x42c   :  { %v5390_v60 = vpop.f32.mrf.mxu1 }
 0x42d   :  { %v3750_v3 = vadd.f32 %v5390_v60, %v7082_v15  ;;  %v3897_v48 = vadd.f32 %v4799_v29, %v3739_v6  ;;  %v3963_v25 = vmax.f32 %v3899_v13, 0.0  ;;  %v5043_v60 = vld [vmem:[#allocation4 + $0xb8] sm:$0xff]  }
 0x42e   :  { %v3741_v45 = vpop.f32.mrf.mxu1 }
 0x42f   :  { %v3900_v59 = vadd.f32 %v4804_v41, %v3750_v3  ;;  %v3742_v47 = vadd.f32 %v7082_v15, %v3741_v45  ;;  %v3961_v24 = vmax.f32 %v3897_v48, 0.0  ;;  %v5042_v3 = vld [vmem:[#allocation4 + $0xb0] sm:$0xff]  }
 0x431   :  { %v3964_v33 = vmax.f32 %v3900_v59, 0.0  ;;  %v3898_v46 = vadd.f32 %v4800_v22, %v3742_v47  ;;  %v4827_v22 = vunpack.c.l.bf16 %v5043_v60  ;;  %v4823_v59 = vunpack.c.l.bf16 %v5042_v3 }
 0x433   :  { %v4949_v57 = vpack.c.bf16 %v3964_v33, %v3963_v25  ;;  %v3962_v42 = vmax.f32 %v3898_v46, 0.0  ;;  %v4828_v25 = vunpack.c.h.bf16 %v5043_v60 }
 0x435   :  { %5068 = vst [vmem:[#allocation7 + $0x88] sm:$0xff] %v4949_v57   ;;  %v4944_v40 = vpack.c.bf16 %v3962_v42, %v3961_v24  ;;  %v4824_v57 = vunpack.c.h.bf16 %v5042_v3 }
 0x437   :  { %5067 = vst [vmem:[#allocation7 + $0x80] sm:$0xff] %v4944_v40  }
 0x438   :  { %v5393_v20 = vpop.f32.mrf.mxu1 }
 0x439   :  { %v3763_v36 = vadd.f32 %v5393_v20, %v7082_v15 }
 0x43a   :  { %v3754_v49 = vpop.f32.mrf.mxu1 }
 0x43b   :  { %v3755_v62 = vadd.f32 %v7082_v15, %v3754_v49  ;;  %v3903_v1 = vadd.f32 %v4811_v43, %v3763_v36 }
 0x43c   :  { %v5394_v52 = vpop.f32.mrf.mxu1 }
 0x43d   :  { %v3766_v38 = vadd.f32 %v5394_v52, %v7082_v15  ;;  %v3901_v8 = vadd.f32 %v4807_v7, %v3755_v62  ;;  %v3967_v9 = vmax.f32 %v3903_v1, 0.0  ;;  %v5045_v52 = vld [vmem:[#allocation4 + $0xc8] sm:$0xff]  }
 0x43e   :  { %v3757_v50 = vpop.f32.mrf.mxu1 }
 0x43f   :  { %v3904_v27 = vadd.f32 %v4812_v56, %v3766_v38  ;;  %v3758_v30 = vadd.f32 %v7082_v15, %v3757_v50  ;;  %v3965_v54 = vmax.f32 %v3901_v8, 0.0  ;;  %v5044_v38 = vld [vmem:[#allocation4 + $0xc0] sm:$0xff]  }
 0x441   :  { %v3968_v5 = vmax.f32 %v3904_v27, 0.0  ;;  %v3902_v10 = vadd.f32 %v4808_v12, %v3758_v30  ;;  %v4835_v12 = vunpack.c.l.bf16 %v5045_v52  ;;  %v4831_v27 = vunpack.c.l.bf16 %v5044_v38 }
 0x443   :  { %v4959_v32 = vpack.c.bf16 %v3968_v5, %v3967_v9  ;;  %v3966_v16 = vmax.f32 %v3902_v10, 0.0  ;;  %v4836_v9 = vunpack.c.h.bf16 %v5045_v52 }
 0x445   :  { %5070 = vst [vmem:[#allocation7 + $0x98] sm:$0xff] %v4959_v32   ;;  %v4954_v58 = vpack.c.bf16 %v3966_v16, %v3965_v54  ;;  %v4832_v32 = vunpack.c.h.bf16 %v5044_v38 }
 0x447   :  { %5069 = vst [vmem:[#allocation7 + $0x90] sm:$0xff] %v4954_v58  }
 0x448   :  { %v5397_v26 = vpop.f32.mrf.mxu1 }
 0x449   :  { %v3779_v19 = vadd.f32 %v5397_v26, %v7082_v15 }
 0x44a   :  { %v3770_v31 = vpop.f32.mrf.mxu1 }
 0x44b   :  { %v3771_v53 = vadd.f32 %v7082_v15, %v3770_v31  ;;  %v3907_v4 = vadd.f32 %v4819_v55, %v3779_v19 }
 0x44c   :  { %v5398_v0 = vpop.f32.mrf.mxu1 }
 0x44d   :  { %v3782_v35 = vadd.f32 %v5398_v0, %v7082_v15  ;;  %v3905_v61 = vadd.f32 %v4815_v2, %v3771_v53  ;;  %v3971_v44 = vmax.f32 %v3907_v4, 0.0  ;;  %v5047_v0 = vld [vmem:[#allocation4 + $0xd8] sm:$0xff]  }
 0x44e   :  { %v3773_v11 = vpop.f32.mrf.mxu1 }
 0x44f   :  { %v3908_v17 = vadd.f32 %v4820_v21, %v3782_v35  ;;  %v3774_v23 = vadd.f32 %v7082_v15, %v3773_v11  ;;  %v3969_v34 = vmax.f32 %v3905_v61, 0.0  ;;  %v5046_v35 = vld [vmem:[#allocation4 + $0xd0] sm:$0xff]  }
 0x451   :  { %v3972_v18 = vmax.f32 %v3908_v17, 0.0  ;;  %v3906_v51 = vadd.f32 %v4816_v14, %v3774_v23  ;;  %v4843_v14 = vunpack.c.l.bf16 %v5047_v0  ;;  %v4839_v17 = vunpack.c.l.bf16 %v5046_v35 }
 0x453   :  { %v4969_v29 = vpack.c.bf16 %v3972_v18, %v3971_v44  ;;  %v3970_v6 = vmax.f32 %v3906_v51, 0.0  ;;  %v4844_v44 = vunpack.c.h.bf16 %v5047_v0 }
 0x455   :  { %5072 = vst [vmem:[#allocation7 + $0xa8] sm:$0xff] %v4969_v29   ;;  %v4964_v41 = vpack.c.bf16 %v3970_v6, %v3969_v34  ;;  %v4840_v29 = vunpack.c.h.bf16 %v5046_v35 }
 0x457   :  { %5071 = vst [vmem:[#allocation7 + $0xa0] sm:$0xff] %v4964_v41  }
 0x458   :  { %v5401_v13 = vpop.f32.mrf.mxu1 }
 0x459   :  { %v3795_v45 = vadd.f32 %v5401_v13, %v7082_v15 }
 0x45a   :  { %v3786_v48 = vpop.f32.mrf.mxu1 }
 0x45b   :  { %v3787_v47 = vadd.f32 %v7082_v15, %v3786_v48  ;;  %v3911_v46 = vadd.f32 %v4827_v22, %v3795_v45 }
 0x45c   :  { %v5402_v33 = vpop.f32.mrf.mxu1 }
 0x45d   :  { %v3798_v24 = vadd.f32 %v5402_v33, %v7082_v15  ;;  %v3909_v40 = vadd.f32 %v4823_v59, %v3787_v47  ;;  %v3975_v63 = vmax.f32 %v3911_v46, 0.0  ;;  %v5049_v33 = vld [vmem:[#allocation4 + $0xe8] sm:$0xff]  }
 0x45e   :  { %v3789_v42 = vpop.f32.mrf.mxu1 }
 0x45f   :  { %v3912_v37 = vadd.f32 %v4828_v25, %v3798_v24  ;;  %v3790_v20 = vadd.f32 %v7082_v15, %v3789_v42  ;;  %v3973_v49 = vmax.f32 %v3909_v40, 0.0  ;;  %v5048_v24 = vld [vmem:[#allocation4 + $0xe0] sm:$0xff]  }
 0x461   :  { %v3976_v43 = vmax.f32 %v3912_v37, 0.0  ;;  %v3910_v36 = vadd.f32 %v4824_v57, %v3790_v20  ;;  %v4851_v57 = vunpack.c.l.bf16 %v5049_v33  ;;  %v4847_v37 = vunpack.c.l.bf16 %v5048_v24 }
 0x463   :  { %v4979_v7 = vpack.c.bf16 %v3976_v43, %v3975_v63  ;;  %v3974_v62 = vmax.f32 %v3910_v36, 0.0  ;;  %v4852_v63 = vunpack.c.h.bf16 %v5049_v33 }
 0x465   :  { %5074 = vst [vmem:[#allocation7 + $0xb8] sm:$0xff] %v4979_v7   ;;  %v4974_v56 = vpack.c.bf16 %v3974_v62, %v3973_v49  ;;  %v4848_v7 = vunpack.c.h.bf16 %v5048_v24  ;;  %v5051_v62 = vld [vmem:[#allocation4 + $0xf8] sm:$0xff]  }
 0x467   :  { %5073 = vst [vmem:[#allocation7 + $0xb0] sm:$0xff] %v4974_v56  }
 0x468   :  { %v5405_v1 = vpop.f32.mrf.mxu1 }
 0x469   :  { %v3811_v50 = vadd.f32 %v5405_v1, %v7082_v15 }
 0x46a   :  { %v3802_v8 = vpop.f32.mrf.mxu1 }
 0x46b   :  { %v3803_v30 = vadd.f32 %v7082_v15, %v3802_v8  ;;  %v3915_v10 = vadd.f32 %v4835_v12, %v3811_v50  ;;  %v5050_v12 = vld [vmem:[#allocation4 + $0xf0] sm:$0xff]   ;;  %v4859_v50 = vunpack.c.l.bf16 %v5051_v62 }
 0x46c   :  { %v5406_v5 = vpop.f32.mrf.mxu1 }
 0x46d   :  { %v3814_v54 = vadd.f32 %v5406_v5, %v7082_v15  ;;  %v3913_v58 = vadd.f32 %v4831_v27, %v3803_v30  ;;  %v3979_v39 = vmax.f32 %v3915_v10, 0.0  ;;  %v4855_v10 = vunpack.c.l.bf16 %v5050_v12 }
 0x46e   :  { %v3805_v16 = vpop.f32.mrf.mxu1 }
 0x46f   :  { %v3916_v28 = vadd.f32 %v4836_v9, %v3814_v54  ;;  %v3806_v26 = vadd.f32 %v7082_v15, %v3805_v16  ;;  %v3977_v31 = vmax.f32 %v3913_v58, 0.0 }
 0x471   :  { %v3980_v55 = vmax.f32 %v3916_v28, 0.0  ;;  %v3914_v19 = vadd.f32 %v4832_v32, %v3806_v26  ;;  %v4860_v32 = vunpack.c.h.bf16 %v5051_v62 }
 0x473   :  { %v4989_v2 = vpack.c.bf16 %v3980_v55, %v3979_v39  ;;  %v3978_v53 = vmax.f32 %v3914_v19, 0.0 }
 0x475   :  { %5076 = vst [vmem:[#allocation7 + $0xc8] sm:$0xff] %v4989_v2   ;;  %v4984_v21 = vpack.c.bf16 %v3978_v53, %v3977_v31  ;;  %v5520_v31 = vld [vmem:[%s7212_s6] ss:$0 sm:$0xff]  ;;  %v4856_v53 = vunpack.c.h.bf16 %v5050_v12  ;;  %s5541_s6 = scalar_lea.vmem %s4319_s26, 4096 }
 0x476   :  { %p5542_p5 = scmp.ne.s32.totalorder %s4319_s26, %s5541_s6  ;;  %p5547_p7 = scmp.lt.s32.totalorder %s5541_s6, %s5541_s6 }
 0x477   :  { %5075 = vst [vmem:[#allocation7 + $0xc0] sm:$0xff] %v4984_v21  }
 0x478   :  { %p5548_p8 = por %p5547_p7, %p5546_p6 }
 0x479   :  { %v5409_v4 = vpop.f32.mrf.mxu1 }
 0x47a   :  { %v3827_v11 = vadd.f32 %v5409_v4, %v7082_v15  ;;  %p5549_p9 = pnand %p5548_p8, %p5542_p5 }
 0x47b   :  { %v3818_v61 = vpop.f32.mrf.mxu1 }
 0x47c   :  { %v3819_v23 = vadd.f32 %v7082_v15, %v3818_v61  ;;  %v3919_v51 = vadd.f32 %v4843_v14, %v3827_v11 }
 0x47d   :  { %v5410_v18 = vpop.f32.mrf.mxu1 }
 0x47e   :  { %v3830_v34 = vadd.f32 %v5410_v18, %v7082_v15  ;;  %v3917_v41 = vadd.f32 %v4839_v17, %v3819_v23  ;;  %v3983_v3 = vmax.f32 %v3919_v51, 0.0 }
 0x47f   :  { %v3821_v6 = vpop.f32.mrf.mxu1 }
 0x480   :  { %v3920_v60 = vadd.f32 %v4844_v44, %v3830_v34  ;;  %v3822_v13 = vadd.f32 %v7082_v15, %v3821_v6  ;;  %v3981_v48 = vmax.f32 %v3917_v41, 0.0 }
 0x482   :  { %v3984_v22 = vmax.f32 %v3920_v60, 0.0  ;;  %v3918_v45 = vadd.f32 %v4840_v29, %v3822_v13 }
 0x484   :  { %v4999_v59 = vpack.c.bf16 %v3984_v22, %v3983_v3  ;;  %v3982_v47 = vmax.f32 %v3918_v45, 0.0 }
 0x486   :  { %5078 = vst [vmem:[#allocation7 + $0xd8] sm:$0xff] %v4999_v59   ;;  %v4994_v25 = vpack.c.bf16 %v3982_v47, %v3981_v48 }
 0x488   :  { %5077 = vst [vmem:[#allocation7 + $0xd0] sm:$0xff] %v4994_v25  }
 0x48b   :  { %v5413_v46 = vpop.f32.mrf.mxu1 }
 0x48c   :  { %v3843_v42 = vadd.f32 %v5413_v46, %v7082_v15 }
 0x48d   :  { %v3834_v40 = vpop.f32.mrf.mxu1 }
 0x48e   :  { %v3835_v20 = vadd.f32 %v7082_v15, %v3834_v40  ;;  %v3923_v36 = vadd.f32 %v4851_v57, %v3843_v42 }
 0x48f   :  { %v5414_v43 = vpop.f32.mrf.mxu1 }
 0x490   :  { %v3846_v49 = vadd.f32 %v5414_v43, %v7082_v15  ;;  %v3921_v52 = vadd.f32 %v4847_v37, %v3835_v20  ;;  %v3987_v27 = vmax.f32 %v3923_v36, 0.0 }
 0x491   :  { %v3837_v56 = vpop.f32.mrf.mxu1 }
 0x492   :  { %v3924_v1 = vadd.f32 %v4852_v63, %v3846_v49  ;;  %v3838_v38 = vadd.f32 %v7082_v15, %v3837_v56  ;;  %v3985_v16 = vmax.f32 %v3921_v52, 0.0 }
 0x494   :  { %v5417_v8 = vpop.f32.mrf.mxu1  ;;  %v3988_v30 = vmax.f32 %v3924_v1, 0.0  ;;  %v3922_v9 = vadd.f32 %v4848_v7, %v3838_v38 }
 0x495   :  { %v3859_v5 = vadd.f32 %v5417_v8, %v7082_v15 }
 0x496   :  { %v3850_v54 = vpop.f32.mrf.mxu1  ;;  %v5009_v58 = vpack.c.bf16 %v3988_v30, %v3987_v27  ;;  %v3986_v28 = vmax.f32 %v3922_v9, 0.0 }
 0x497   :  { %v3851_v26 = vadd.f32 %v7082_v15, %v3850_v54  ;;  %v3927_v19 = vadd.f32 %v4859_v50, %v3859_v5 }
 0x498   :  { %v5418_v39 = vpop.f32.mrf.mxu1  ;;  %5080 = vst [vmem:[#allocation7 + $0xe8] sm:$0xff] %v5009_v58   ;;  %v5004_v55 = vpack.c.bf16 %v3986_v28, %v3985_v16 }
 0x499   :  { %v3862_v2 = vadd.f32 %v5520_v31, %v5418_v39  ;;  %v3925_v0 = vadd.f32 %v4855_v10, %v3851_v26  ;;  %v3991_v14 = vmax.f32 %v3927_v19, 0.0 }
 0x49a   :  { %v3853_v21 = vpop.f32.mrf.mxu1  ;;  %5079 = vst [vmem:[#allocation7 + $0xe0] sm:$0xff] %v5004_v55  }
 0x49b   :  { %v3928_v4 = vadd.f32 %v4860_v32, %v3862_v2  ;;  %v3854_v35 = vadd.f32 %v5520_v31, %v3853_v21  ;;  %v3989_v15 = vmax.f32 %v3925_v0, 0.0 }
 0x49d   :  { %v3992_v11 = vmax.f32 %v3928_v4, 0.0  ;;  %v3926_v61 = vadd.f32 %v4856_v53, %v3854_v35 }
 0x49f   :  { %v5019_v17 = vpack.c.bf16 %v3992_v11, %v3991_v14  ;;  %v3990_v23 = vmax.f32 %v3926_v61, 0.0 }
 0x4a1   :  { %5082 = vst [vmem:[#allocation7 + $0xf8] sm:$0xff] %v5019_v17   ;;  %v5014_v44 = vpack.c.bf16 %v3990_v23, %v3989_v15 }
 0x4a3   :  { %5081 = vst [vmem:[#allocation7 + $0xf0] sm:$0xff] %v5014_v44  }
 0x4a4   :  { %5552 = shalt.err (!%p5549_p9)
}
 0x4a5   :  { %4324 = dma.vmem_to_hbm [thread:$0]  %s4319_s26, 4096, %s7213_s7, [#allocation6], %s5566_s27, %s5566_s27, %s5567_s28  }
 0x4a6   :  { %5563 = dma.done.wait [#allocation6], 4096  }
 0x4a7   :  { %5564 = vsyncadd [#allocation6], 4294963200 }
 0x4a8   :  { %4328 = vsyncpa [#allocation5], 1 }
 0x4a9   :  { %4329 = vsyncpa [#allocation6], 1 }

</bundles_post_ra>
